<compile_context>
chip_gen: v6e
topology: v6e:2x2x1
jax: 0.10.0
libtpu: 0.0.40
codegen_flags: <defaults>
</compile_context>

<pallas_src>
import functools
import math

import jax
import jax.numpy as jnp
from jax.experimental import pallas as pl
from jax.experimental.pallas import tpu as pltpu


_TILE_VMEM_BUDGET = 24 * 1024 * 1024   # per-step working-set target (v7x-safe)
_VMEM_LIMIT_BYTES = 48 * 1024 * 1024   # explicit scoped-VMEM limit for all gens


# ----------------------------- Pallas kernel --------------------------------

def _conv3x3_bn_act_kernel(xm_ref, xh_ref, w_ref, b_ref, o_ref, *, th, wp, relu):
    """Fused 3x3 conv + (folded) BN bias + ReLU for one (batch, row-tile) block.

    xm_ref: (1, th*wp, Cin)  bf16  -- padded rows [t*th, t*th+th), spatially flattened
    xh_ref: (1, 8*wp,  Cin)  bf16  -- next 8 padded rows (halo view of the same array)
    w_ref : (9*Cin, Cout)    bf16  -- tap-major folded weights
    b_ref : (1, Cout)        f32   -- folded bias
    o_ref : (1, th*wp, Cout)       -- output rows (cols >= W per row are garbage,
                                      sliced off by the wrapper)
    """
    x_ext = jnp.concatenate([xm_ref[0], xh_ref[0]], axis=0)    # ((th+8)*wp, Cin)
    # tap (kh, kw) for flattened output position p is x_ext[p + kh*wp + kw]
    taps = [x_ext[kh * wp + kw: kh * wp + kw + th * wp, :]
            for kh in range(3) for kw in range(3)]
    patch = jnp.concatenate(taps, axis=-1)                     # (th*wp, 9*Cin) bf16
    acc = jnp.dot(patch, w_ref[...], preferred_element_type=jnp.float32)
    acc = acc + b_ref[...]
    if relu:
        acc = jnp.maximum(acc, 0.0)
    o_ref[0] = acc.astype(o_ref.dtype)


# ----------------------------- Pallas wrapper --------------------------------

def _pick_tile_rows(H, Wp, Cin, Cout, budget=_TILE_VMEM_BUDGET):
    """Largest multiple-of-8 divisor of H whose per-step VMEM footprint fits."""
    best = None
    th = 8
    while th <= H:
        if H % th == 0:
            m = th * Wp
            need = (2 * m * Cin * 2          # main input block, double buffered (bf16)
                    + 2 * 8 * Wp * Cin * 2   # halo block, double buffered
                    + 2 * m * Cout * 4       # output block, double buffered (f32 worst case)
                    + (th + 8) * Wp * Cin * 2    # x_ext copy
                    + m * 9 * Cin * 2            # tap patch
                    + m * Cout * 4               # f32 accumulator
                    + 9 * Cin * Cout * 2         # resident weights
                    + 2 * Cout * 4)
            if need <= budget:
                best = th
        th += 8
    return best if best is not None else 8


def pallas_conv3x3_bn_act(x, w_folded, b_folded, *, relu=True, out_dtype=None,
                          tile_rows=None):
    """3x3 conv (stride 1, pad 1) + folded BN + optional ReLU.

    x: (B, H, W, Cin) NHWC; w_folded: (9*Cin, Cout) bf16; b_folded: (1, Cout) f32.
    """
    B, H, W, Cin = x.shape
    Cout = w_folded.shape[-1]
    out_dtype = out_dtype or x.dtype
    # TODO(synk): row-tiled path needs H % 8 == 0 (true for BEV feature maps).
    assert H % 8 == 0, "pallas_conv3x3_bn_act requires H to be a multiple of 8"

    Wp = W + 2               # conv column padding (1 each side)
    Hp = H + 8               # 1 top pad + 1 bottom pad + 6 extra rows so the
                             # 8-row halo block of the last tile stays in range
    th = tile_rows if tile_rows is not None else _pick_tile_rows(H, Wp, Cin, Cout)
    assert th % 8 == 0 and H % th == 0, (th, H)
    nt = H // th

    # pad, flatten spatial, cast to bf16 for the MXU (halves HBM/VMEM traffic)
    xp = jnp.pad(x.astype(jnp.bfloat16), ((0, 0), (1, 7), (1, 1), (0, 0)))
    xf = xp.reshape(B, Hp * Wp, Cin)

    out = pl.pallas_call(
        functools.partial(_conv3x3_bn_act_kernel, th=th, wp=Wp, relu=relu),
        grid=(B, nt),
        in_specs=[
            # main rows of the tile: padded rows [t*th, t*th+th)
            pl.BlockSpec((1, th * Wp, Cin), lambda b, t: (b, t, 0)),
            # halo: the next 8 padded rows, expressed as a second blocked view
            pl.BlockSpec((1, 8 * Wp, Cin), lambda b, t: (b, (t + 1) * (th // 8), 0)),
            pl.BlockSpec((9 * Cin, Cout), lambda b, t: (0, 0)),
            pl.BlockSpec((1, Cout), lambda b, t: (0, 0)),
        ],
        out_specs=pl.BlockSpec((1, th * Wp, Cout), lambda b, t: (b, t, 0)),
        out_shape=jax.ShapeDtypeStruct((B, H * Wp, Cout), out_dtype),
        compiler_params=pltpu.CompilerParams(
            dimension_semantics=("parallel", "parallel"),
            vmem_limit_bytes=_VMEM_LIMIT_BYTES),
    )(xf, xf, w_folded, b_folded)

    # drop the 2 garbage columns per row produced by the flattened-shift taps
    return out.reshape(B, H, Wp, Cout)[:, :, :W, :]


# ------------------------------ model pieces ---------------------------------

def fold_conv_bn(w, gamma, beta, mean, var, eps=1e-5):
    """Fold eval-mode BatchNorm into conv weights/bias; weights cast to bf16."""
    s = gamma / jnp.sqrt(var + eps)                       # (Cout,)
    w_f = (w * s).reshape(-1, w.shape[-1]).astype(jnp.bfloat16)   # (9*Cin, Cout)
    b_f = (beta - mean * s).reshape(1, -1).astype(jnp.float32)    # (1, Cout)
    return w_f, b_f


def merge_forward(x_low, x_high, params, *, scale_factor, tile_rows=None):
    """Merge.forward.  x_low: (B, cin_low, H, W); x_high: (B, cin_high, H/s, W/s) NCHW."""
    xl = jnp.transpose(x_low, (0, 2, 3, 1))               # NCHW -> NHWC
    xh = jnp.transpose(x_high, (0, 2, 3, 1))
    B, Hh, Wh, Ch = xh.shape
    # F.upsample(mode='bilinear', align_corners=False): jax.image.resize matches
    # for exact integer scale factors (half-pixel centers).
    xh_up = jax.image.resize(xh, (B, Hh * scale_factor, Wh * scale_factor, Ch),
                             method='bilinear')
    x_merge = jnp.concatenate([xl, xh_up], axis=-1)
    # F.dropout(p=0.2) is identity in eval mode.
    w1, b1 = params['conv1']
    w2, b2 = params['conv2']
    h = pallas_conv3x3_bn_act(x_merge, w1, b1, relu=True,
                              out_dtype=jnp.bfloat16, tile_rows=tile_rows)
    y = pallas_conv3x3_bn_act(h, w2, b2, relu=True,
                              out_dtype=jnp.float32, tile_rows=tile_rows)
    return jnp.transpose(y, (0, 3, 1, 2))                 # NHWC -> NCHW


# ------------------------- pure-XLA reference (f32) ---------------------------

def _reference_forward(x_low, x_high, params, *, scale_factor):
    xl = jnp.transpose(x_low, (0, 2, 3, 1))
    xh = jnp.transpose(x_high, (0, 2, 3, 1))
    B, Hh, Wh, Ch = xh.shape
    xh_up = jax.image.resize(xh, (B, Hh * scale_factor, Wh * scale_factor, Ch),
                             method='bilinear')
    x = jnp.concatenate([xl, xh_up], axis=-1)

    def conv_bn_relu(x, raw):
        w, gamma, beta, mean, var = raw
        y = jax.lax.conv_general_dilated(
            x, w, window_strides=(1, 1), padding='SAME',
            dimension_numbers=('NHWC', 'HWIO', 'NHWC'))
        s = gamma / jnp.sqrt(var + 1e-5)
        return jnp.maximum(y * s + (beta - mean * s), 0.0)

    x = conv_bn_relu(x, params['raw1'])
    x = conv_bn_relu(x, params['raw2'])
    return jnp.transpose(x, (0, 3, 1, 2))


# ------------------------------ parameter init --------------------------------

def init_merge_params(key, cin_low, cin_high, cout):
    cin = cin_low + cin_high
    cmid = cin // 2

    def conv_bn(k, ci, co):
        kw, kg, kb, km, kv = jax.random.split(k, 5)
        w = jax.random.normal(kw, (3, 3, ci, co), jnp.float32) / math.sqrt(9 * ci)
        gamma = 1.0 + 0.1 * jax.random.normal(kg, (co,), jnp.float32)
        beta = 0.1 * jax.random.normal(kb, (co,), jnp.float32)
        mean = 0.1 * jax.random.normal(km, (co,), jnp.float32)
        var = 1.0 + jnp.abs(0.1 * jax.random.normal(kv, (co,), jnp.float32))
        return fold_conv_bn(w, gamma, beta, mean, var), (w, gamma, beta, mean, var)

    k1, k2 = jax.random.split(key)
    p1, raw1 = conv_bn(k1, cin, cmid)
    p2, raw2 = conv_bn(k2, cmid, cout)
    return {'conv1': p1, 'conv2': p2, 'raw1': raw1, 'raw2': raw2}


# ----------------------------------- main -------------------------------------

if __name__ == "__main__":
    key = jax.random.PRNGKey(0)
    B, c_low, c_high, cout, scale = 2, 32, 64, 64, 2
    H = W = 16
    params = init_merge_params(key, c_low, c_high, cout)
    x_low = jax.random.normal(jax.random.fold_in(key, 101),
                              (B, c_low, H, W), jnp.float32)
    x_high = jax.random.normal(jax.random.fold_in(key, 202),
                               (B, c_high, H // scale, W // scale), jnp.float32)

    fwd = jax.jit(functools.partial(merge_forward, scale_factor=scale))
    out = jax.block_until_ready(fwd(x_low, x_high, params))
    assert out.shape == (B, cout, H, W), out.shape
    assert bool(jnp.all(jnp.isfinite(out)))

    ref = _reference_forward(x_low, x_high, params, scale_factor=scale)
    tol = 5e-2 * (1.0 + float(jnp.max(jnp.abs(ref))))       # bf16-matmul tolerance
    err = float(jnp.max(jnp.abs(out - ref)))
    assert err < tol, (err, tol)

    # exercise the multi-row-tile (cross-tile halo) path explicitly
    fwd_tiled = jax.jit(functools.partial(merge_forward, scale_factor=scale,
                                          tile_rows=8))
    out_t = jax.block_until_ready(fwd_tiled(x_low, x_high, params))
    err_t = float(jnp.max(jnp.abs(out_t - ref)))
    assert err_t < tol, (err_t, tol)

    print("KERNEL_OK")
</pallas_src>

<mosaic_0001>
module attributes {stable_mosaic.version = 11 : i64} {
  func.func @_conv3x3_bn_act_kernel(%arg0: i32, %arg1: i32, %arg2: memref<1x288x96xbf16, #tpu.memory_space<vmem>>, %arg3: memref<1x144x96xbf16, #tpu.memory_space<vmem>>, %arg4: memref<864x48xbf16, #tpu.memory_space<vmem>>, %arg5: memref<1x48xf32, #tpu.memory_space<vmem>>, %arg6: memref<1x288x48xbf16, #tpu.memory_space<vmem>>) attributes {dimension_semantics = [#tpu.dimension_semantics<parallel>, #tpu.dimension_semantics<parallel>], iteration_bounds = array<i64: 2, 1>, scalar_prefetch = 0 : i64, scratch_operands = 0 : i64, tpu.core_type = #tpu.core_type<tc>, window_params = [{transform_indices = @transform_0, window_bounds = array<i64: 1, 288, 96>}, {transform_indices = @transform_1, window_bounds = array<i64: 1, 144, 96>}, {pipeline_mode = #tpu.pipeline_mode<synchronous>, transform_indices = @transform_2, window_bounds = array<i64: 864, 48>}, {pipeline_mode = #tpu.pipeline_mode<synchronous>, transform_indices = @transform_3, window_bounds = array<i64: 1, 48>}, {transform_indices = @transform_4, window_bounds = array<i64: 1, 288, 48>}]} {
    %c0 = arith.constant 0 : index
    %c0_0 = arith.constant 0 : index
    %c0_1 = arith.constant 0 : index
    %0 = vector.load %arg2[%c0, %c0_0, %c0_1] : memref<1x288x96xbf16, #tpu.memory_space<vmem>>, vector<1x288x96xbf16>
    %1 = vector.shape_cast %0 : vector<1x288x96xbf16> to vector<288x96xbf16>
    %c0_2 = arith.constant 0 : index
    %c0_3 = arith.constant 0 : index
    %c0_4 = arith.constant 0 : index
    %2 = vector.load %arg3[%c0_2, %c0_3, %c0_4] : memref<1x144x96xbf16, #tpu.memory_space<vmem>>, vector<1x144x96xbf16>
    %3 = vector.shape_cast %2 : vector<1x144x96xbf16> to vector<144x96xbf16>
    %4 = tpu.concatenate %1, %3 in 0 : vector<288x96xbf16>, vector<144x96xbf16> -> vector<432x96xbf16>
    %5 = vector.extract_strided_slice %4 {offsets = [0, 0], sizes = [288, 96], strides = [1, 1]} : vector<432x96xbf16> to vector<288x96xbf16>
    %6 = vector.extract_strided_slice %4 {offsets = [1, 0], sizes = [288, 96], strides = [1, 1]} : vector<432x96xbf16> to vector<288x96xbf16>
    %7 = vector.extract_strided_slice %4 {offsets = [2, 0], sizes = [288, 96], strides = [1, 1]} : vector<432x96xbf16> to vector<288x96xbf16>
    %8 = vector.extract_strided_slice %4 {offsets = [18, 0], sizes = [288, 96], strides = [1, 1]} : vector<432x96xbf16> to vector<288x96xbf16>
    %9 = vector.extract_strided_slice %4 {offsets = [19, 0], sizes = [288, 96], strides = [1, 1]} : vector<432x96xbf16> to vector<288x96xbf16>
    %10 = vector.extract_strided_slice %4 {offsets = [20, 0], sizes = [288, 96], strides = [1, 1]} : vector<432x96xbf16> to vector<288x96xbf16>
    %11 = vector.extract_strided_slice %4 {offsets = [36, 0], sizes = [288, 96], strides = [1, 1]} : vector<432x96xbf16> to vector<288x96xbf16>
    %12 = vector.extract_strided_slice %4 {offsets = [37, 0], sizes = [288, 96], strides = [1, 1]} : vector<432x96xbf16> to vector<288x96xbf16>
    %13 = vector.extract_strided_slice %4 {offsets = [38, 0], sizes = [288, 96], strides = [1, 1]} : vector<432x96xbf16> to vector<288x96xbf16>
    %14 = tpu.concatenate %5, %6, %7, %8, %9, %10, %11, %12, %13 in 1 : vector<288x96xbf16>, vector<288x96xbf16>, vector<288x96xbf16>, vector<288x96xbf16>, vector<288x96xbf16>, vector<288x96xbf16>, vector<288x96xbf16>, vector<288x96xbf16>, vector<288x96xbf16> -> vector<288x864xbf16>
    %c0_5 = arith.constant 0 : index
    %c0_6 = arith.constant 0 : index
    %15 = vector.load %arg4[%c0_5, %c0_6] : memref<864x48xbf16, #tpu.memory_space<vmem>>, vector<864x48xbf16>
    %cst = arith.constant dense<0.000000e+00> : vector<288x48xf32>
    %16 = tpu.matmul %14, %15, %cst {dimension_numbers = #tpu.dot_dimension_numbers<[1], [0], [0], [1], [0, 0, 1, 1], [], []>} : vector<288x864xbf16>, vector<864x48xbf16>, vector<288x48xf32> -> vector<288x48xf32>
    %c0_7 = arith.constant 0 : index
    %c0_8 = arith.constant 0 : index
    %17 = vector.load %arg5[%c0_7, %c0_8] : memref<1x48xf32, #tpu.memory_space<vmem>>, vector<1x48xf32>
    %18 = vector.broadcast %17 : vector<1x48xf32> to vector<288x48xf32>
    %19 = arith.addf %16, %18 : vector<288x48xf32>
    %cst_9 = arith.constant 0.000000e+00 : f32
    %20 = vector.broadcast %cst_9 : f32 to vector<288x48xf32>
    %21 = arith.maximumf %19, %20 : vector<288x48xf32>
    %22 = arith.truncf %21 : vector<288x48xf32> to vector<288x48xbf16>
    %c0_10 = arith.constant 0 : index
    %c0_11 = arith.constant 0 : index
    %c0_12 = arith.constant 0 : index
    %23 = vector.load %arg6[%c0_10, %c0_11, %c0_12] : memref<1x288x48xbf16, #tpu.memory_space<vmem>>, vector<1x288x48xbf16>
    %24 = vector.shape_cast %23 : vector<1x288x48xbf16> to vector<288x48xbf16>
    %25 = vector.shape_cast %22 : vector<288x48xbf16> to vector<1x288x48xbf16>
    tpu.vector_store %arg6[%c0_10, %c0_11, %c0_12], %25 {strides = array<i32>} : memref<1x288x48xbf16, #tpu.memory_space<vmem>>, vector<1x288x48xbf16>,
    return
  }
  func.func @transform_0(%arg0: i32, %arg1: i32) -> (i32, i32, i32) {
    %c0_i32 = arith.constant 0 : i32
    %c0_i32_0 = arith.constant 0 : i32
    return %arg0, %arg1, %c0_i32 : i32, i32, i32
  }
  func.func @transform_1(%arg0: i32, %arg1: i32) -> (i32, i32, i32) {
    %c1_i32 = arith.constant 1 : i32
    %0 = arith.addi %arg1, %c1_i32 : i32
    %c2_i32 = arith.constant 2 : i32
    %1 = arith.muli %0, %c2_i32 : i32
    %c0_i32 = arith.constant 0 : i32
    %c0_i32_0 = arith.constant 0 : i32
    return %arg0, %1, %c0_i32 : i32, i32, i32
  }
  func.func @transform_2(%arg0: i32, %arg1: i32) -> (i32, i32) {
    %c0_i32 = arith.constant 0 : i32
    %c0_i32_0 = arith.constant 0 : i32
    %c0_i32_1 = arith.constant 0 : i32
    return %c0_i32, %c0_i32_0 : i32, i32
  }
  func.func @transform_3(%arg0: i32, %arg1: i32) -> (i32, i32) {
    %c0_i32 = arith.constant 0 : i32
    %c0_i32_0 = arith.constant 0 : i32
    %c0_i32_1 = arith.constant 0 : i32
    return %c0_i32, %c0_i32_0 : i32, i32
  }
  func.func @transform_4(%arg0: i32, %arg1: i32) -> (i32, i32, i32) {
    %c0_i32 = arith.constant 0 : i32
    %c0_i32_0 = arith.constant 0 : i32
    return %arg0, %arg1, %c0_i32 : i32, i32, i32
  }
}

module attributes {stable_mosaic.version = 11 : i64} {
  func.func @_conv3x3_bn_act_kernel(%arg0: i32, %arg1: i32, %arg2: memref<1x288x48xbf16, #tpu.memory_space<vmem>>, %arg3: memref<1x144x48xbf16, #tpu.memory_space<vmem>>, %arg4: memref<432x64xbf16, #tpu.memory_space<vmem>>, %arg5: memref<1x64xf32, #tpu.memory_space<vmem>>, %arg6: memref<1x288x64xf32, #tpu.memory_space<vmem>>) attributes {dimension_semantics = [#tpu.dimension_semantics<parallel>, #tpu.dimension_semantics<parallel>], iteration_bounds = array<i64: 2, 1>, scalar_prefetch = 0 : i64, scratch_operands = 0 : i64, tpu.core_type = #tpu.core_type<tc>, window_params = [{transform_indices = @transform_0, window_bounds = array<i64: 1, 288, 48>}, {transform_indices = @transform_1, window_bounds = array<i64: 1, 144, 48>}, {pipeline_mode = #tpu.pipeline_mode<synchronous>, transform_indices = @transform_2, window_bounds = array<i64: 432, 64>}, {pipeline_mode = #tpu.pipeline_mode<synchronous>, transform_indices = @transform_3, window_bounds = array<i64: 1, 64>}, {transform_indices = @transform_4, window_bounds = array<i64: 1, 288, 64>}]} {
    %c0 = arith.constant 0 : index
    %c0_0 = arith.constant 0 : index
    %c0_1 = arith.constant 0 : index
    %0 = vector.load %arg2[%c0, %c0_0, %c0_1] : memref<1x288x48xbf16, #tpu.memory_space<vmem>>, vector<1x288x48xbf16>
    %1 = vector.shape_cast %0 : vector<1x288x48xbf16> to vector<288x48xbf16>
    %c0_2 = arith.constant 0 : index
    %c0_3 = arith.constant 0 : index
    %c0_4 = arith.constant 0 : index
    %2 = vector.load %arg3[%c0_2, %c0_3, %c0_4] : memref<1x144x48xbf16, #tpu.memory_space<vmem>>, vector<1x144x48xbf16>
    %3 = vector.shape_cast %2 : vector<1x144x48xbf16> to vector<144x48xbf16>
    %4 = tpu.concatenate %1, %3 in 0 : vector<288x48xbf16>, vector<144x48xbf16> -> vector<432x48xbf16>
    %5 = vector.extract_strided_slice %4 {offsets = [0, 0], sizes = [288, 48], strides = [1, 1]} : vector<432x48xbf16> to vector<288x48xbf16>
    %6 = vector.extract_strided_slice %4 {offsets = [1, 0], sizes = [288, 48], strides = [1, 1]} : vector<432x48xbf16> to vector<288x48xbf16>
    %7 = vector.extract_strided_slice %4 {offsets = [2, 0], sizes = [288, 48], strides = [1, 1]} : vector<432x48xbf16> to vector<288x48xbf16>
    %8 = vector.extract_strided_slice %4 {offsets = [18, 0], sizes = [288, 48], strides = [1, 1]} : vector<432x48xbf16> to vector<288x48xbf16>
    %9 = vector.extract_strided_slice %4 {offsets = [19, 0], sizes = [288, 48], strides = [1, 1]} : vector<432x48xbf16> to vector<288x48xbf16>
    %10 = vector.extract_strided_slice %4 {offsets = [20, 0], sizes = [288, 48], strides = [1, 1]} : vector<432x48xbf16> to vector<288x48xbf16>
    %11 = vector.extract_strided_slice %4 {offsets = [36, 0], sizes = [288, 48], strides = [1, 1]} : vector<432x48xbf16> to vector<288x48xbf16>
    %12 = vector.extract_strided_slice %4 {offsets = [37, 0], sizes = [288, 48], strides = [1, 1]} : vector<432x48xbf16> to vector<288x48xbf16>
    %13 = vector.extract_strided_slice %4 {offsets = [38, 0], sizes = [288, 48], strides = [1, 1]} : vector<432x48xbf16> to vector<288x48xbf16>
    %14 = tpu.concatenate %5, %6, %7, %8, %9, %10, %11, %12, %13 in 1 : vector<288x48xbf16>, vector<288x48xbf16>, vector<288x48xbf16>, vector<288x48xbf16>, vector<288x48xbf16>, vector<288x48xbf16>, vector<288x48xbf16>, vector<288x48xbf16>, vector<288x48xbf16> -> vector<288x432xbf16>
    %c0_5 = arith.constant 0 : index
    %c0_6 = arith.constant 0 : index
    %15 = vector.load %arg4[%c0_5, %c0_6] : memref<432x64xbf16, #tpu.memory_space<vmem>>, vector<432x64xbf16>
    %cst = arith.constant dense<0.000000e+00> : vector<288x64xf32>
    %16 = tpu.matmul %14, %15, %cst {dimension_numbers = #tpu.dot_dimension_numbers<[1], [0], [0], [1], [0, 0, 1, 1], [], []>} : vector<288x432xbf16>, vector<432x64xbf16>, vector<288x64xf32> -> vector<288x64xf32>
    %c0_7 = arith.constant 0 : index
    %c0_8 = arith.constant 0 : index
    %17 = vector.load %arg5[%c0_7, %c0_8] : memref<1x64xf32, #tpu.memory_space<vmem>>, vector<1x64xf32>
    %18 = vector.broadcast %17 : vector<1x64xf32> to vector<288x64xf32>
    %19 = arith.addf %16, %18 : vector<288x64xf32>
    %cst_9 = arith.constant 0.000000e+00 : f32
    %20 = vector.broadcast %cst_9 : f32 to vector<288x64xf32>
    %21 = arith.maximumf %19, %20 : vector<288x64xf32>
    %c0_10 = arith.constant 0 : index
    %c0_11 = arith.constant 0 : index
    %c0_12 = arith.constant 0 : index
    %22 = vector.load %arg6[%c0_10, %c0_11, %c0_12] : memref<1x288x64xf32, #tpu.memory_space<vmem>>, vector<1x288x64xf32>
    %23 = vector.shape_cast %22 : vector<1x288x64xf32> to vector<288x64xf32>
    %24 = vector.shape_cast %21 : vector<288x64xf32> to vector<1x288x64xf32>
    tpu.vector_store %arg6[%c0_10, %c0_11, %c0_12], %24 {strides = array<i32>} : memref<1x288x64xf32, #tpu.memory_space<vmem>>, vector<1x288x64xf32>,
    return
  }
  func.func @transform_0(%arg0: i32, %arg1: i32) -> (i32, i32, i32) {
    %c0_i32 = arith.constant 0 : i32
    %c0_i32_0 = arith.constant 0 : i32
    return %arg0, %arg1, %c0_i32 : i32, i32, i32
  }
  func.func @transform_1(%arg0: i32, %arg1: i32) -> (i32, i32, i32) {
    %c1_i32 = arith.constant 1 : i32
    %0 = arith.addi %arg1, %c1_i32 : i32
    %c2_i32 = arith.constant 2 : i32
    %1 = arith.muli %0, %c2_i32 : i32
    %c0_i32 = arith.constant 0 : i32
    %c0_i32_0 = arith.constant 0 : i32
    return %arg0, %1, %c0_i32 : i32, i32, i32
  }
  func.func @transform_2(%arg0: i32, %arg1: i32) -> (i32, i32) {
    %c0_i32 = arith.constant 0 : i32
    %c0_i32_0 = arith.constant 0 : i32
    %c0_i32_1 = arith.constant 0 : i32
    return %c0_i32, %c0_i32_0 : i32, i32
  }
  func.func @transform_3(%arg0: i32, %arg1: i32) -> (i32, i32) {
    %c0_i32 = arith.constant 0 : i32
    %c0_i32_0 = arith.constant 0 : i32
    %c0_i32_1 = arith.constant 0 : i32
    return %c0_i32, %c0_i32_0 : i32, i32
  }
  func.func @transform_4(%arg0: i32, %arg1: i32) -> (i32, i32, i32) {
    %c0_i32 = arith.constant 0 : i32
    %c0_i32_0 = arith.constant 0 : i32
    return %arg0, %arg1, %c0_i32 : i32, i32, i32
  }
}

</mosaic_0001>

<bundles_post_ra>
// kernel: merge_forward.2
= control target key start
LH: loop header
LB: loop body
LE: loop exit
PB: predicated region body
PF: predicated region fallthrough
CT: control target
= control target key end

     0   :  { %s3432_s15 = smov 0   ;;  %s3434_s16 = smov 0   ;;  %s4953_s0 = inlined_call_operand.vmem [shape: bf16[2,432,96], index: 0, kind: input, shape index: {}, may-alias: {0,1}]   ;;  %s4954_s1 = inlined_call_operand.vmem [shape: bf16[2,432,96], index: 1, kind: input, shape index: {}, may-alias: {0,1}]   ;;  %s4955_s2 = inlined_call_operand.vmem [shape: bf16[864,48], index: 2, kind: input, shape index: {}]   ;;  %s4956_s3 = inlined_call_operand.vmem [shape: f32[1,48], index: 3, kind: input, shape index: {}]   ;;  %s4957_s4 = inlined_call_operand.vmem [shape: bf16[2,288,48], index: 4, kind: output, shape index: {}]  }
   0x1   :  { %s3436_s17 = smov 0  }
   0x2 LB: > { %s26_s18 = sadd.s32 1, %s3397_s16  ;;  %p2974_p0 = scmp.ge.s32.totalorder %s3401_s17, 1  ;;  %s3401_s17 = sphi %s3436_s17, %s14_s17   ;;  %s3397_s16 = sphi %s3434_s16, %s5013_s16   ;;  %s3393_s15 = sphi %s3432_s15, %s5012_s15  }
   0x3   : > { %p28_p1 = scmp.ge.s32.totalorder %s26_s18, 2  ;;  %p216_p2 = scmp.lt.s32.totalorder %s3401_s17, 3 }
   0x5   : > { %s5015_s18 = smov (%p28_p1, %s26_s18), 0  ;;  %p217_p3 = pnand %p2974_p0, %p216_p2 }
   0x7   : > { %220 = sbr.rel (%p217_p3) target bundleno = 602 (0x25a), region = 36 }
   0xc   : > { %p270_p4 = scmp.lt.s32.totalorder %s3393_s15, 1  ;;  %v3294_v0 = vld [vmem:[%s4955_s2 + $0x38] sm:$0xff]   ;;  %v4958_v1 = vmov 0   ;;  %v3295_v2 = vld [vmem:[%s4955_s2 + $0x30] sm:$0xff]   ;;  %v3298_v4 = vld [vmem:[%s4955_s2 + $0x28] sm:$0xff]   ;;  %vm640_vm0 = vcmask 1046528  }
   0xd   : > { %1940 = vmatprep.subr.bf16.mxu0 %v4958_v1  ;;  %2117 = vmatprep.subr.bf16.mxu1 %v4958_v1  ;;  %v3296_v3 = vld [vmem:[%s4955_s2 + $0xb8] sm:$0xff]   ;;  %v3299_v5 = vld [vmem:[%s4955_s2 + $0xb0] sm:$0xff]   ;;  %s3404_s7 = smov 64   ;;  %vm455_vm1 = vsmask.f32 7424  ;;  %s3405_s8 = smov 32  }
   0xe   : > { %s5017_s15 = smov (!%p270_p4, %s3393_s15), 1  ;;  %1941 = vmatpush1.bf16.msra.mxu0 %v3294_v0  ;;  %2118 = vmatpush1.bf16.msra.mxu1 %v3296_v3  ;;  %s3406_s9 = smov 96   ;;  %vm835_vm2 = vcmask 1045504   ;;  %v3300_v31 = vld [vmem:[%s4955_s2 + $0x20] sm:$0xff]   ;;  %v3301_v34 = vld [vmem:[%s4955_s2 + $0xa8] sm:$0xff]   ;;  %v3303_v38 = vld [vmem:[%s4955_s2 + $0x18] sm:$0xff]  }
   0xf   : > { %s3252_s23 = smul.u32 216, %s5017_s15  ;;  %1942 = vmatprep.subr.bf16.mxu0 %v4958_v1  ;;  %2119 = vmatprep.subr.bf16.mxu1 %v4958_v1  ;;  %v3304_v41 = vld [vmem:[%s4955_s2 + $0xa0] sm:$0xff]   ;;  %v3305_v46 = vld [vmem:[%s4955_s2 + $0x10] sm:$0xff]   ;;  %v3306_v47 = vld [vmem:[%s4955_s2 + $0x98] sm:$0xff]   ;;  %vm752_vm3 = vsmask.f32 6400 }
  0x10   : > { %v3308_v53 = vld [vmem:[%s4955_s2 + $0x8] sm:$0xff]   ;;  %v3309_v54 = vld [vmem:[%s4955_s2 + $0x90] sm:$0xff]   ;;  %v3310_v61 = vld [vmem:[%s4955_s2] sm:$0xff]   ;;  %vm947_vm4 = vsmask.f32 5376  ;;  %vm1157_vm5 = vcmask 523264  }
  0x11   : > { %s3473_s30 = scalar_lea.vmem %s4953_s0, %s3252_s23  ;;  %v3311_v62 = vld [vmem:[%s4955_s2 + $0x88] sm:$0xff]   ;;  %s3111_s14 = sadd.s32 144, %s3252_s23  ;;  %vm1102_vm6 = vcmask 785408   ;;  %vm1212_vm7 = vcmask 261120   ;;  %vm1064_vm8 = vcmask 1044480   ;;  %vm2828_vm9 = vcmask 388096  }
  0x12   : > { %1943 = vmatpush1.bf16.msra.mxu0 %v3295_v2  ;;  %v3480_v6 = vld [vmem:[%s3473_s30 + $0x8] sm:$0xff]   ;;  %v3285_v7 = vld [vmem:[%s3473_s30 + $0x10] sm:$0xff]   ;;  %v3286_v8 = vld [vmem:[%s3473_s30] sm:$0xff]   ;;  %2120 = vmatpush1.bf16.msra.mxu1 %v3299_v5  ;;  %s3708_s22 = scalar_lea.vmem %s4954_s1, %s3111_s14 }
  0x13   : > { %1944 = vmatprep.subr.bf16.mxu0 %v4958_v1  ;;  %v642_v9 = vrot.slane %v3480_v6, 1  ;;  %v644_v10 = vrot.slane %v3285_v7, 1  ;;  %v464_v11 = vshll.u32 %v3480_v6, 16  ;;  %v468_v12 = vshrl.u32 %v3480_v6, 16  ;;  %2121 = vmatprep.subr.bf16.mxu1 %v4958_v1  ;;  %v3500_v21 = vld [vmem:[%s3473_s30 + $0x18] sm:$0xff]   ;;  %v3511_v30 = vld [vmem:[%s3473_s30 + $0x20] sm:$0xff]  }
  0x14   : > { %v457_v13 = vshrl.u32 %v3286_v8, 16  ;;  %v459_v14 = vshll.u32 %v3286_v8, 16  ;;  %v3488_v15 = vshll.u32 %v3285_v7, 16  ;;  %v641_v23 = vrot.slane %v3286_v8, 1  ;;  %v3563_v49 = vld [vmem:[%s3473_s30 + $0x28] sm:$0xff]   ;;  %v3581_v57 = vld [vmem:[%s3473_s30 + $0x30] sm:$0xff]  }
  0x15   : > { %v645_v16 = vsel %vm640_vm0, %v642_v9, %v644_v10  ;;  %v466_v17 = vrot.slane %v464_v11, 1  ;;  %v646_v26 = vrot.slane %v3500_v21, 1  ;;  %v836_v28 = vrot.slane %v3480_v6, 2 }
  0x16   : > { %1945 = vmatpush1.bf16.msra.mxu0 %v3298_v4  ;;  %680 = vrot.lane.b32.xlu1 %v645_v16, %s3404_s7  ;;  %v461_v18 = vrot.slane %v459_v14, 1  ;;  %v474_v20 = vrot.slane %v3488_v15, 1  ;;  %v643_v27 = vsel %vm640_vm0, %v641_v23, %v642_v9  ;;  %v837_v29 = vrot.slane %v3285_v7, 2  ;;  %v3313_v4 = vld [vmem:[%s4955_s2 + $0x78] sm:$0xff]   ;;  %v3319_v23 = vld [vmem:[%s4955_s2 + $0xf0] sm:$0xff]  }
  0x17   : > { %1946 = vmatprep.subr.bf16.mxu0 %v4958_v1  ;;  %v470_v19 = vor.u32 %v468_v12, %v466_v17  ;;  %v647_v32 = vsel %vm640_vm0, %v644_v10, %v646_v26  ;;  %v3518_v33 = vshrl.u32 %v3285_v7, 16  ;;  %v839_v36 = vrot.slane %v3500_v21, 2  ;;  %2122 = vmatpush1.bf16.msra.mxu1 %v3301_v34  ;;  %v3314_v7 = vld [vmem:[%s4955_s2 + $0x80] sm:$0xff]   ;;  %v3680_v34 = vld [vmem:[%s3473_s30 + $0x48] sm:$0xff]  }
  0x18   : > { %v462_v22 = vor.u32 %v461_v18, %v457_v13  ;;  %v838_v35 = vsel %vm835_vm2, %v836_v28, %v837_v29  ;;  %v3526_v37 = vshll.u32 %v3500_v21, 16  ;;  %v648_v39 = vrot.slane %v3511_v30, 1  ;;  %2123 = vmatprep.subr.bf16.mxu1 %v4958_v1  ;;  %v3315_v13 = vld [vmem:[%s4955_s2 + $0x70] sm:$0xff]   ;;  %v3320_v28 = vld [vmem:[%s4955_s2 + $0x60] sm:$0xff]  }
  0x19   : > { %v475_v25 = vsel %vm455_vm1, %v470_v19, %v474_v20  ;;  %v3537_v40 = vshrl.u32 %v3500_v21, 16  ;;  %v3543_v42 = vsel %vm835_vm2, %v837_v29, %v839_v36  ;;  %v478_v43 = vor.u32 %v3518_v33, %v474_v20 }
  0x1a   : > { %716 = vrot.lane.b32.xlu1 %v645_v16, %s3405_s8  ;;  %v467_v24 = vsel %vm455_vm1, %v462_v22, %v466_v17  ;;  %1947 = vmatpush1.bf16.msra.mxu0 %v3300_v31  ;;  %v482_v44 = vrot.slane %v3526_v37, 1  ;;  %v3548_v45 = vshll.u32 %v3511_v30, 16  ;;  %v649_v48 = vsel %vm640_vm0, %v646_v26, %v648_v39  ;;  %v3316_v16 = vld [vmem:[%s4955_s2 + $0xf8] sm:$0xff]   ;;  %v3318_v22 = vld [vmem:[%s4955_s2 + $0x68] sm:$0xff]  }
  0x1b   : > { %604 = vrot.lane.b32.xlu0 %v467_v24, %s3406_s9  ;;  %1948 = vmatprep.subr.bf16.mxu0 %v4958_v1  ;;  %v650_v55 = vrot.slane %v3563_v49, 1  ;;  %v841_v56 = vrot.slane %v3511_v30, 2  ;;  %v3585_v59 = vshrl.u32 %v3511_v30, 16  ;;  %v3588_v60 = vshll.u32 %v3563_v49, 16  ;;  %v3635_v17 = vld [vmem:[%s3473_s30 + $0x38] sm:$0xff]   ;;  %v3669_v30 = vld [vmem:[%s3473_s30 + $0x40] sm:$0xff]  }
  0x1c   : > { %2124 = vmatpush1.bf16.msra.mxu1 %v3304_v41  ;;  %v483_v50 = vsel %vm455_vm1, %v478_v43, %v482_v44  ;;  %v486_v51 = vor.u32 %v3537_v40, %v482_v44  ;;  %v490_v52 = vrot.slane %v3548_v45, 1  ;;  %v652_v5 = vrot.slane %v3581_v57, 1  ;;  %v3321_v31 = vld [vmem:[%s4955_s2 + $0xe8] sm:$0xff]   ;;  %v3324_v41 = vld [vmem:[%s4955_s2 + $0xe0] sm:$0xff]  }
  0x1d   : > { %2125 = vmatprep.subr.bf16.mxu1 %v4958_v1  ;;  %v651_v63 = vsel %vm640_vm0, %v648_v39, %v650_v55  ;;  %v3602_v0 = vsel %vm835_vm2, %v839_v36, %v841_v56  ;;  %v498_v3 = vrot.slane %v3588_v60, 1  ;;  %v843_v8 = vrot.slane %v3563_v49, 2 }
  0x1e   : > { %606 = vrot.lane.b32.xlu1 %v475_v25, %s3406_s9  ;;  %1949 = vmatpush1.bf16.msra.mxu0 %v3303_v38  ;;  %v491_v58 = vsel %vm455_vm1, %v486_v51, %v490_v52  ;;  %v494_v2 = vor.u32 %v3585_v59, %v490_v52  ;;  %v3620_v9 = vshrl.u32 %v3563_v49, 16  ;;  %v3623_v10 = vshll.u32 %v3581_v57, 16  ;;  %v3325_v49 = vld [vmem:[%s4955_s2 + $0x50] sm:$0xff]   ;;  %v3326_v51 = vld [vmem:[%s4955_s2 + $0xd8] sm:$0xff]  }
  0x1f   : > { %678 = vrot.lane.b32.xlu0 %v643_v27, %s3404_s7  ;;  %1950 = vmatprep.subr.bf16.mxu0 %v4958_v1  ;;  %v653_v18 = vsel %vm640_vm0, %v650_v55, %v652_v5  ;;  %v3641_v19 = vsel %vm835_vm2, %v841_v56, %v843_v8  ;;  %v654_v24 = vrot.slane %v3635_v17, 1  ;;  %v845_v25 = vrot.slane %v3581_v57, 2 }
  0x20   : > { %2126 = vmatpush1.bf16.msra.mxu1 %v3306_v47  ;;  %v499_v14 = vsel %vm455_vm1, %v494_v2, %v498_v3  ;;  %v502_v20 = vor.u32 %v3620_v9, %v498_v3  ;;  %v506_v21 = vrot.slane %v3623_v10, 1  ;;  %v3656_v26 = vshrl.u32 %v3581_v57, 16  ;;  %v3329_v3 = vld [vmem:[%s4955_s2 + $0xd0] sm:$0xff]  }
  0x21   : > { %2127 = vmatprep.subr.bf16.mxu1 %v4958_v1  ;;  %v3662_v27 = vshll.u32 %v3635_v17, 16  ;;  %v3688_v36 = vsel %vm835_vm2, %v843_v8, %v845_v25  ;;  %v656_v43 = vrot.slane %v3669_v30, 1  ;;  %v847_v44 = vrot.slane %v3635_v17, 2 }
  0x22   : > { %682 = vrot.lane.b32.xlu1 %v647_v32, %s3404_s7  ;;  %1951 = vmatpush1.bf16.msra.mxu0 %v3305_v46  ;;  %v507_v29 = vsel %vm455_vm1, %v502_v20, %v506_v21  ;;  %v510_v38 = vor.u32 %v3656_v26, %v506_v21  ;;  %v3700_v46 = vshrl.u32 %v3635_v17, 16  ;;  %v753_v52 = vrot.slane %v468_v12, 1 }
  0x23   : > { %873 = vrot.lane.b32.xlu0 %v838_v35, %s3406_s9  ;;  %1952 = vmatprep.subr.bf16.mxu0 %v4958_v1  ;;  %v3323_v35 = vld [vmem:[%s4955_s2 + $0x58] sm:$0xff]   ;;  %v514_v39 = vrot.slane %v3662_v27, 1  ;;  %v756_v55 = vrot.slane %v3518_v33, 1  ;;  %v757_v56 = vrot.slane %v3488_v15, 2  ;;  %v3733_v57 = vsel %vm835_vm2, %v845_v25, %v847_v44 }
  0x24   : > { %2128 = vmatpush1.bf16.msra.mxu1 %v3309_v54  ;;  %v657_v54 = vsel %vm640_vm0, %v654_v24, %v656_v43  ;;  %v760_v2 = vrot.slane %v3537_v40, 1  ;;  %v3761_v8 = vshll.u32 %v3680_v34, 16  ;;  %v765_v20 = vrot.slane %v3548_v45, 2 }
  0x25   : > { %2129 = vmatprep.subr.bf16.mxu1 %v4958_v1  ;;  %v515_v47 = vsel %vm455_vm1, %v510_v38, %v514_v39  ;;  %v518_v12 = vor.u32 %v3700_v46, %v514_v39  ;;  %v948_v25 = vrot.slane %v3518_v33, 2  ;;  %v3798_v33 = vshrl.u32 %v3680_v34, 16 }
  0x26   : > { %718 = vrot.lane.b32.xlu1 %v647_v32, %s3405_s8  ;;  %1953 = vmatpush1.bf16.msra.mxu0 %v3308_v53  ;;  %v655_v32 = vsel %vm640_vm0, %v652_v5, %v654_v24  ;;  %v754_v53 = vrot.slane %v464_v11, 2  ;;  %v530_v39 = vrot.slane %v3761_v8, 1 }
  0x27   : > { %875 = vrot.lane.b32.xlu0 %v3543_v42, %s3406_s9  ;;  %1954 = vmatprep.subr.bf16.mxu0 %v4958_v1 }
  0x28   : > { %2130 = vmatpush1.bf16.msra.mxu1 %v3311_v62  ;;  %v755_v6 = vor.u32 %v754_v53, %v753_v52  ;;  %v3328_v62 = vld [vmem:[%s4955_s2 + $0x48] sm:$0xff]   ;;  %v956_v53 = vrot.slane %v3548_v45, 3 }
  0x29   : > { %2131 = vmatprep.subr.bf16.mxu1 %v4958_v1 }
  0x2a   : > { %684 = vrot.lane.b32.xlu1 %v649_v48, %s3404_s7  ;;  %1955 = vmatpush1.bf16.msra.mxu0 %v3310_v61  ;;  %v849_v61 = vrot.slane %v3669_v30, 2 }
  0x2b   : > { %608 = vrot.lane.b32.xlu0 %v483_v50, %s3406_s9  ;;  %1956 = vmatprep.subr.bf16.mxu0 %v4958_v1  ;;  %v658_v50 = vrot.slane %v3680_v34, 1 }
  0x2c   : > { %2132 = vmatpush1.bf16.msra.mxu1 %v3314_v7  ;;  %v3758_v7 = vshrl.u32 %v3669_v30, 16 }
  0x2d   : > { %2133 = vmatprep.subr.bf16.mxu1 %v4958_v1  ;;  %v659_v21 = vsel %vm640_vm0, %v656_v43, %v658_v50  ;;  %v768_v43 = vrot.slane %v3620_v9, 1 }
  0x2e   : > { %720 = vrot.lane.b32.xlu1 %v649_v48, %s3405_s8  ;;  %1957 = vmatpush2.bf16.msra.mxu0 %v3313_v4  ;;  %v3712_v48 = vshll.u32 %v3669_v30, 16  ;;  %v761_v4 = vrot.slane %v3526_v37, 2  ;;  %v964_v30 = vrot.slane %v3623_v10, 3 }
  0x2f   : > { %610 = vrot.lane.b32.xlu0 %v491_v58, %s3406_s9  ;;  %1958 = vmatprep.subr.bf16.mxu0 %v4958_v1  ;;  %v3737_v58 = vld [vmem:[%s3473_s30 + $0x50] sm:$0xff]  }
  0x30   : > { %2134 = vmatpush2.bf16.msra.mxu1 %v3316_v16  ;;  %v522_v11 = vrot.slane %v3712_v48, 1  ;;  %v660_v17 = vrot.slane %v3737_v58, 1  ;;  %v853_v45 = vrot.slane %v3737_v58, 2 }
  0x31   : > { %2135 = vmatprep.subr.bf16.mxu1 %v4958_v1 }
  0x32   : > { %686 = vrot.lane.b32.xlu1 %v651_v63, %s3404_s7  ;;  %1959 = vmatpush2.bf16.msra.mxu0 %v3315_v13  ;;  %v762_v13 = vor.u32 %v761_v4, %v760_v2  ;;  %v523_v16 = vsel %vm455_vm1, %v518_v12, %v522_v11  ;;  %v526_v38 = vor.u32 %v3758_v7, %v522_v11  ;;  %v959_v11 = vrot.slane %v3620_v9, 2  ;;  %v3831_v2 = vld [vmem:[%s3473_s30 + $0x60] sm:$0xff]  }
  0x33   : > { %877 = vrot.lane.b32.xlu0 %v3602_v0, %s3406_s9  ;;  %1960 = vmatprep.subr.bf16.mxu0 %v4958_v1 }
  0x34   : > { %2136 = vmatpush2.bf16.msra.mxu1 %v3319_v23  ;;  %v3331_v23 = vld [vmem:[%s4955_s2 + $0xc8] sm:$0xff]   ;;  %v531_v12 = vsel %vm455_vm1, %v526_v38, %v530_v39  ;;  %v781_v38 = vrot.slane %v3712_v48, 2 }
  0x35   : > { %2137 = vmatprep.subr.bf16.mxu1 %v4958_v1 }
  0x36   : > { %722 = vrot.lane.b32.xlu1 %v651_v63, %s3405_s8  ;;  %1961 = vmatpush2.bf16.msra.mxu0 %v3318_v22  ;;  %v758_v63 = vor.u32 %v757_v56, %v756_v55  ;;  %v3776_v22 = vsel %vm835_vm2, %v847_v44, %v849_v61  ;;  %v769_v44 = vrot.slane %v3588_v60, 2  ;;  %v772_v55 = vrot.slane %v3656_v26, 1 }
  0x37   : > { %612 = vrot.lane.b32.xlu0 %v499_v14, %s3406_s9  ;;  %1962 = vmatprep.subr.bf16.mxu0 %v4958_v1  ;;  %v764_v14 = vrot.slane %v3585_v59, 1  ;;  %v773_v56 = vrot.slane %v3623_v10, 2 }
  0x38   : > { %2138 = vmatpush2.bf16.msra.mxu1 %v3321_v31  ;;  %v3753_v5 = vsel %vm752_vm3, %v755_v6, %v758_v63  ;;  %v3783_v24 = vsel %vm752_vm3, %v758_v63, %v762_v13  ;;  %v949_v31 = vrot.slane %v3488_v15, 3  ;;  %v534_v63 = vor.u32 %v3798_v33, %v530_v39 }
  0x39   : > { %2139 = vmatprep.subr.bf16.mxu1 %v4958_v1  ;;  %v774_v4 = vor.u32 %v773_v56, %v772_v55 }
  0x3a   : > { %688 = vrot.lane.b32.xlu1 %v653_v18, %s3404_s7  ;;  %1963 = vmatpush2.bf16.msra.mxu0 %v3320_v28  ;;  %v3788_v28 = vld [vmem:[%s3473_s30 + $0x58] sm:$0xff]  }
  0x3b   : > { %879 = vrot.lane.b32.xlu0 %v3641_v19, %s3406_s9  ;;  %1964 = vmatprep.subr.bf16.mxu0 %v4958_v1 }
  0x3c   : > { %2140 = vmatpush2.bf16.msra.mxu1 %v3324_v41  ;;  %v3334_v41 = vld [vmem:[%s4955_s2 + $0xc0] sm:$0xff]  }
  0x3d   : > { %2141 = vmatprep.subr.bf16.mxu1 %v4958_v1 }
  0x3e   : > { %724 = vrot.lane.b32.xlu1 %v653_v18, %s3405_s8  ;;  %1965 = vmatpush2.bf16.msra.mxu0 %v3323_v35  ;;  %v3330_v18 = vld [vmem:[%s4955_s2 + $0x40] sm:$0xff]   ;;  %v952_v35 = vrot.slane %v3526_v37, 3 }
  0x3f   : > { %614 = vrot.lane.b32.xlu0 %v507_v29, %s3406_s9  ;;  %1966 = vmatprep.subr.bf16.mxu0 %v4958_v1  ;;  %v766_v29 = vor.u32 %v765_v20, %v764_v14  ;;  %v776_v14 = vrot.slane %v3700_v46, 1 }
  0x40   : > { %2142 = vmatpush2.bf16.msra.mxu1 %v3326_v51  ;;  %v3813_v51 = vshll.u32 %v3737_v58, 16 }
  0x41   : > { %2143 = vmatprep.subr.bf16.mxu1 %v4958_v1  ;;  %v3804_v15 = vsel %vm752_vm3, %v762_v13, %v766_v29 }
  0x42   : > { %690 = vrot.lane.b32.xlu1 %v655_v32, %s3404_s7  ;;  %1967 = vmatpush2.bf16.msra.mxu0 %v3325_v49  ;;  %v851_v49 = vrot.slane %v3680_v34, 2  ;;  %v538_v13 = vrot.slane %v3813_v51, 1  ;;  %v963_v34 = vrot.slane %v3656_v26, 2  ;;  %v664_v26 = vrot.slane %v3831_v2, 1 }
  0x43   : > { %881 = vrot.lane.b32.xlu0 %v3688_v36, %s3406_s9  ;;  %1968 = vmatprep.subr.bf16.mxu0 %v4958_v1 }
  0x44   : > { %2144 = vmatpush2.bf16.msra.mxu1 %v3329_v3  ;;  %v965_v39 = vor.u32 %v964_v30, %v963_v34 }
  0x45   : > { %2145 = vmatprep.subr.bf16.mxu1 %v4958_v1 }
  0x46   : > { %726 = vrot.lane.b32.xlu1 %v655_v32, %s3405_s8  ;;  %1969 = vmatpush2.bf16.msra.mxu0 %v3328_v62  ;;  %v951_v32 = vrot.slane %v3537_v40, 2  ;;  %v950_v40 = vor.u32 %v949_v31, %v948_v25  ;;  %v960_v62 = vrot.slane %v3588_v60, 3  ;;  %v3860_v25 = vshll.u32 %v3788_v28, 16 }
  0x47   : > { %616 = vrot.lane.b32.xlu0 %v515_v47, %s3406_s9  ;;  %1970 = vmatprep.subr.bf16.mxu0 %v4958_v1  ;;  %v955_v47 = vrot.slane %v3585_v59, 2  ;;  %v662_v59 = vrot.slane %v3788_v28, 1 }
  0x48   : > { %v953_v37 = vor.u32 %v952_v35, %v951_v32  ;;  %2146 = vmatpush2.bf16.msra.mxu1 %v3331_v23  ;;  %v961_v60 = vor.u32 %v960_v62, %v959_v11  ;;  %v3857_v23 = vsel %vm835_vm2, %v849_v61, %v851_v49  ;;  %v780_v61 = vrot.slane %v3758_v7, 1 }
  0x49   : > { %2147 = vmatprep.subr.bf16.mxu1 %v4958_v1  ;;  %v957_v6 = vor.u32 %v956_v53, %v955_v47  ;;  %v539_v32 = vsel %vm455_vm1, %v534_v63, %v538_v13  ;;  %v3878_v35 = vsel %vm835_vm2, %v851_v49, %v853_v45  ;;  %v784_v49 = vrot.slane %v3798_v33, 1 }
  0x4a   : > { %692 = vrot.lane.b32.xlu1 %v657_v54, %s3404_s7  ;;  %1971 = vmatpush2.bf16.msra.mxu0 %v3330_v18  ;;  %v3817_v52 = vsel %vm947_vm4, %v950_v40, %v953_v37  ;;  %v540_v18 = vshrl.u32 %v3737_v58, 16  ;;  %v546_v40 = vrot.slane %v3860_v25, 1  ;;  %v3892_v47 = vsel %vm947_vm4, %v961_v60, %v965_v39 }
  0x4b   : > { %883 = vrot.lane.b32.xlu0 %v3733_v57, %s3406_s9  ;;  %2294 = vmatprep.subr.bf16.mxu0 %v4958_v1  ;;  %v3840_v9 = vsel %vm947_vm4, %v953_v37, %v957_v6  ;;  %v548_v37 = vshrl.u32 %v3788_v28, 16  ;;  %v785_v53 = vrot.slane %v3761_v8, 2  ;;  %v789_v11 = vrot.slane %v3813_v51, 2 }
  0x4c   : > { %2148 = vmatpush2.bf16.msra.mxu1 %v3334_v41  ;;  %v967_v41 = vrot.slane %v3700_v46, 2  ;;  %v3899_v46 = vshll.u32 %v3831_v2, 16  ;;  %v975_v62 = vrot.slane %v3798_v33, 2  ;;  %v979_v34 = vrot.slane %v540_v18, 2 }
  0x4d   : > { %3220 = vmatprep.subr.bf16.mxu1 %v4958_v1  ;;  %v857_v58 = vrot.slane %v3831_v2, 2 }
  0x4e   : > { %728 = vrot.lane.b32.xlu1 %v657_v54, %s3405_s8  ;;  %v770_v54 = vor.u32 %v769_v44, %v768_v43  ;;  %v782_v43 = vor.u32 %v781_v38, %v780_v61  ;;  %v968_v44 = vrot.slane %v3662_v27, 3 }
  0x4f   : > { %618 = vrot.lane.b32.xlu0 %v523_v16, %s3406_s9  ;;  %v661_v16 = vsel %vm640_vm0, %v658_v50, %v660_v17  ;;  %v663_v50 = vsel %vm640_vm0, %v660_v17, %v662_v59  ;;  %v542_v17 = vor.u32 %v540_v18, %v538_v13  ;;  %v976_v13 = vrot.slane %v3761_v8, 3 }
  0x50   : > { %v3834_v3 = vsel %vm752_vm3, %v766_v29, %v770_v54  ;;  %v3851_v20 = vsel %vm752_vm3, %v770_v54, %v774_v4  ;;  %v3863_v29 = vsel %vm947_vm4, %v957_v6, %v961_v60  ;;  %v971_v54 = vrot.slane %v3758_v7, 2 }
  0x51   : > { %v969_v56 = vor.u32 %v968_v44, %v967_v41  ;;  %v788_v6 = vrot.slane %v540_v18, 1  ;;  %v556_v7 = vshrl.u32 %v3831_v2, 16  ;;  %v977_v33 = vor.u32 %v976_v13, %v975_v62 }
  0x52   : > { %694 = vrot.lane.b32.xlu1 %v659_v21, %s3404_s7  ;;  %v547_v38 = vsel %vm455_vm1, %v542_v17, %v546_v40  ;;  %v665_v17 = vsel %vm640_vm0, %v662_v59, %v664_v26  ;;  %v984_v59 = vrot.slane %v3860_v25, 3 }
  0x53   : > { %885 = vrot.lane.b32.xlu0 %v3776_v22, %s3406_s9  ;;  %v3910_v63 = vsel %vm947_vm4, %v965_v39, %v969_v56  ;;  %v796_v61 = vrot.slane %v556_v7, 1  ;;  %v855_v39 = vrot.slane %v3788_v28, 2  ;;  %v983_v28 = vrot.slane %v548_v37, 2 }
  0x54   : > { %v987_v13 = vrot.slane %v556_v7, 2 }
  0x56   : > { %730 = vrot.lane.b32.xlu1 %v659_v21, %s3405_s8  ;;  %v777_v21 = vrot.slane %v3662_v27, 2  ;;  %v972_v27 = vrot.slane %v3712_v48, 3  ;;  %v790_v48 = vor.u32 %v789_v11, %v788_v6  ;;  %v3983_v11 = vsel %vm835_vm2, %v855_v39, %v857_v58 }
  0x57   : > { %620 = vrot.lane.b32.xlu0 %v531_v12, %s3406_s9  ;;  %v786_v12 = vor.u32 %v785_v53, %v784_v49  ;;  %v3949_v49 = vld [vmem:[%s3473_s30 + $0x68] sm:$0xff]   ;;  %4982 = vst [vmem:[#allocation7_spill] sm:$0xff] %v3983_v11 }
  0x58   : > { %v778_v31 = vor.u32 %v777_v21, %v776_v14  ;;  %v792_v14 = vrot.slane %v548_v37, 1  ;;  %4979 = vst [vmem:[#allocation4_spill] sm:$0xff] %v3949_v49 }
  0x59   : > { %v3914_v60 = vsel %vm752_vm3, %v782_v43, %v786_v12  ;;  %v3925_v8 = vsel %vm752_vm3, %v786_v12, %v790_v48 }
  0x5a   : > { %696 = vrot.lane.b32.xlu1 %v661_v16, %s3404_s7  ;;  %v3885_v10 = vsel %vm752_vm3, %v774_v4, %v778_v31  ;;  %v3902_v55 = vsel %vm752_vm3, %v778_v31, %v782_v43  ;;  %v973_v4 = vor.u32 %v972_v27, %v971_v54  ;;  %v980_v31 = vrot.slane %v3813_v51, 3 }
  0x5b   : > { %887 = vrot.lane.b32.xlu0 %v3857_v23, %s3406_s9  ;;  %v550_v54 = vor.u32 %v548_v37, %v546_v40  ;;  %v666_v27 = vrot.slane %v3949_v49, 1  ;;  %v985_v40 = vor.u32 %v984_v59, %v983_v28  ;;  %v3980_v37 = vld [vmem:[%s3473_s30 + $0x70] sm:$0xff]  }
  0x5c   : > { %v3919_v21 = vsel %vm947_vm4, %v969_v56, %v973_v4  ;;  %v3931_v41 = vsel %vm947_vm4, %v973_v4, %v977_v33  ;;  %v981_v18 = vor.u32 %v980_v31, %v979_v34  ;;  %v554_v56 = vrot.slane %v3899_v46, 1  ;;  %4981 = vst [vmem:[#allocation6_spill] sm:$0xff] %v3980_v37  ;;  %v4009_v31 = vld [vmem:[%s3473_s30 + $0x78] sm:$0xff]  }
  0x5d   : > { %v668_v2 = vrot.slane %v3980_v37, 1  ;;  %4983 = vst [vmem:[#allocation8_spill] sm:$0xff] %v4009_v31 }
  0x5e   : > { %732 = vrot.lane.b32.xlu1 %v661_v16, %s3405_s8  ;;  %v793_v16 = vrot.slane %v3860_v25, 2  ;;  %v3940_v44 = vsel %vm947_vm4, %v977_v33, %v981_v18  ;;  %v555_v12 = vsel %vm455_vm1, %v550_v54, %v554_v56  ;;  %v3973_v6 = vsel %vm947_vm4, %v981_v18, %v985_v40 }
  0x5f   : > { %622 = vrot.lane.b32.xlu0 %v539_v32, %s3406_s9  ;;  %v797_v32 = vrot.slane %v3899_v46, 2  ;;  %v667_v25 = vsel %vm640_vm0, %v664_v26, %v666_v27  ;;  %v558_v62 = vor.u32 %v556_v7, %v554_v56  ;;  %v859_v26 = vrot.slane %v3949_v49, 2  ;;  %v4029_v56 = vld [vmem:[%s3473_s30 + $0x80] sm:$0xff]  }
  0x60   : > { %v794_v30 = vor.u32 %v793_v16, %v792_v14  ;;  %v3994_v16 = vshrl.u32 %v3949_v49, 16  ;;  %v3997_v33 = vshll.u32 %v3980_v37, 16  ;;  %v669_v7 = vsel %vm640_vm0, %v666_v27, %v668_v2  ;;  %4986 = vst [vmem:[#allocation11_spill] sm:$0xff] %v4029_v56 }
  0x61   : > { %v3936_v43 = vor.u32 %v797_v32, %v796_v61  ;;  %v861_v18 = vrot.slane %v3980_v37, 2  ;;  %v4026_v54 = vshll.u32 %v4009_v31, 16  ;;  %v4035_v59 = vshll.u32 %v4029_v56, 16 }
  0x62   : > { %698 = vrot.lane.b32.xlu1 %v663_v50, %s3404_s7  ;;  %v3934_v51 = vsel %vm752_vm3, %v790_v48, %v794_v30  ;;  %v988_v48 = vrot.slane %v3899_v46, 3  ;;  %v570_v32 = vrot.slane %v3997_v33, 1  ;;  %v4038_v27 = vshrl.u32 %v4029_v56, 16 }
  0x63   : > { %889 = vrot.lane.b32.xlu0 %v3878_v35, %s3406_s9  ;;  %4977 = vst [vmem:[#allocation2_spill] sm:$0xff] %v3934_v51  ;;  %4978 = vst [vmem:[#allocation3_spill] sm:$0xff] %v3936_v43  ;;  %v3953_v53 = vsel %vm752_vm3, %v794_v30, %v3936_v43  ;;  %v4012_v30 = vsel %vm835_vm2, %v857_v58, %v859_v26 }
  0x64   : > { %4980 = vst [vmem:[#allocation5_spill] sm:$0xff] %v3953_v53  ;;  %v3999_v34 = vor.u32 %v988_v48, %v987_v13  ;;  %4984 = vst [vmem:[#allocation9_spill] sm:$0xff] %v4012_v30 }
  0x65   : > { %4985 = vst [vmem:[#allocation10_spill] sm:$0xff] %v4026_v54 }
  0x66   : > { %734 = vrot.lane.b32.xlu1 %v663_v50, %s3405_s8  ;;  %v3958_v50 = vsel %vm835_vm2, %v853_v45, %v855_v39  ;;  %v3969_v45 = vshll.u32 %v3949_v49, 16  ;;  %v4004_v46 = vsel %vm947_vm4, %v985_v40, %v3999_v34  ;;  %v578_v40 = vrot.slane %v4026_v54, 1  ;;  %v4086_v49 = vld [vmem:[%s3708_s22] sm:$0xff]  }
  0x67   : > { %624 = vrot.lane.b32.xlu0 %v547_v38, %s3406_s9  ;;  %v670_v38 = vrot.slane %v4009_v31, 1 }
  0x68   : > { %v562_v4 = vrot.slane %v3969_v45, 1 }
  0x69   : > { %v671_v28 = vsel %vm640_vm0, %v668_v2, %v670_v38  ;;  %v863_v2 = vrot.slane %v4009_v31, 2 }
  0x6a   : > { %700 = vrot.lane.b32.xlu1 %v665_v17, %s3404_s7  ;;  %v563_v14 = vsel %vm455_vm1, %v558_v62, %v562_v4  ;;  %v566_v61 = vor.u32 %v3994_v16, %v562_v4  ;;  %v813_v62 = vrot.slane %v4035_v59, 2  ;;  %v672_v4 = vrot.slane %v4029_v56, 1 }
  0x6b   : > { %891 = vrot.lane.b32.xlu0 %v3958_v50, %s3406_s9 }
  0x6c   : > { %v571_v39 = vsel %vm455_vm1, %v566_v61, %v570_v32 }
  0x6e   : > { %736 = vrot.lane.b32.xlu1 %v665_v17, %s3405_s8  ;;  %v4023_v17 = vshrl.u32 %v3980_v37, 16  ;;  %v865_v37 = vrot.slane %v4029_v56, 2 }
  0x6f   : > { %626 = vrot.lane.b32.xlu0 %v555_v12, %s3406_s9  ;;  %v4041_v12 = vsel %vm835_vm2, %v859_v26, %v861_v18  ;;  %v4056_v26 = vshrl.u32 %v4009_v31, 16 }
  0x70   : > { %4987 = vst [vmem:[#allocation12_spill] sm:$0xff] %v4041_v12  ;;  %v574_v58 = vor.u32 %v4023_v17, %v570_v32  ;;  %v4100_v56 = vsel %vm835_vm2, %v863_v2, %v865_v37 }
  0x71   : > { %4989 = vst [vmem:[#allocation14_spill] sm:$0xff] %v4056_v26 }
  0x72   : > { %702 = vrot.lane.b32.xlu1 %v667_v25, %s3404_s7  ;;  %v579_v48 = vsel %vm455_vm1, %v574_v58, %v578_v40  ;;  %v4073_v58 = vsel %vm835_vm2, %v861_v18, %v863_v2 }
  0x73   : > { %893 = vrot.lane.b32.xlu0 %v3983_v11, %s3406_s9  ;;  %4990 = vst [vmem:[#allocation15_spill] sm:$0xff] %v4073_v58 }
  0x76   : > { %738 = vrot.lane.b32.xlu1 %v667_v25, %s3405_s8  ;;  %v812_v25 = vrot.slane %v4038_v27, 1 }
  0x77   : > { %628 = vrot.lane.b32.xlu0 %v563_v14, %s3406_s9  ;;  %v4059_v14 = vld [vmem:[%s3473_s30 + $0x88] sm:$0xff]  }
  0x78   : > { %v4051_v13 = vor.u32 %v813_v62, %v812_v25  ;;  %v4065_v61 = vshll.u32 %v4059_v14, 16  ;;  %v4068_v32 = vshrl.u32 %v4059_v14, 16  ;;  %v582_v25 = vor.u32 %v4056_v26, %v578_v40 }
  0x79   : > { %v867_v26 = vrot.slane %v4059_v14, 2 }
  0x7a   : > { %704 = vrot.lane.b32.xlu1 %v669_v7, %s3404_s7  ;;  %4988 = vst [vmem:[#allocation13_spill] sm:$0xff] %v4051_v13  ;;  %v816_v62 = vrot.slane %v4068_v32, 1 }
  0x7b   : > { %895 = vrot.lane.b32.xlu0 %v4012_v30, %s3406_s9  ;;  %v4976_v30 = vrot.slane %v4086_v49, 1 }
  0x7e   : > { %740 = vrot.lane.b32.xlu1 %v669_v7, %s3405_s8  ;;  %v673_v7 = vsel %vm640_vm0, %v670_v38, %v672_v4  ;;  %v817_v38 = vrot.slane %v4065_v61, 2 }
  0x7f   : > { %630 = vrot.lane.b32.xlu0 %v571_v39, %s3406_s9 }
  0x80   : > { %v818_v1 = vor.u32 %v817_v38, %v816_v62  ;;  %v4096_v62 = vshll.u32 %v4086_v49, 16 }
  0x82   : > { %706 = vrot.lane.b32.xlu1 %v671_v28, %s3404_s7  ;;  %v4090_v43 = vsel %vm752_vm3, %v4051_v13, %v818_v1 }
  0x83   : > { %897 = vrot.lane.b32.xlu0 %v4041_v12, %s3406_s9  ;;  %4991 = vst [vmem:[#allocation16_spill] sm:$0xff] %v4090_v43  ;;  %v823_v12 = vrot.slane %v4096_v62, 2 }
  0x86   : > { %742 = vrot.lane.b32.xlu1 %v671_v28, %s3405_s8  ;;  %v586_v28 = vrot.slane %v4035_v59, 1 }
  0x87   : > { %632 = vrot.lane.b32.xlu0 %v579_v48, %s3406_s9  ;;  %v674_v48 = vrot.slane %v4059_v14, 1 }
  0x88   : > { %v4070_v39 = vpop.permute.xlu1 %680  ;;  %v587_v18 = vsel %vm455_vm1, %v582_v25, %v586_v28  ;;  %v4970_v25 = vshrl.u32 %v4086_v49, 16  ;;  %v590_v43 = vor.u32 %v4038_v27, %v586_v28  ;;  %v3359_v28 = vld [vmem:[%s3473_s30] sm:$0xff]  }
  0x8a   : > { %708 = vrot.lane.b32.xlu1 %v673_v7, %s3404_s7 }
  0x8b   : > { %899 = vrot.lane.b32.xlu0 %v4073_v58, %s3406_s9  ;;  %v675_v58 = vsel %vm640_vm0, %v672_v4, %v674_v48  ;;  %v3333_v4 = vld [vmem:[%s4955_s2 + $0x138] sm:$0xff]  }
  0x8c   : > { %v717_v31 = vpop.permute.xlu1 %716 }
  0x8d   : > { %v605_v40 = vpop.permute.xlu0 %604 }
  0x8e   : > { %744 = vrot.lane.b32.xlu1 %v673_v7, %s3405_s8  ;;  %v594_v7 = vrot.slane %v4065_v61, 1  ;;  %v1104_v53 = vsel %vm1102_vm6, %v3359_v28, %v605_v40 }
  0x8f   : > { %634 = vrot.lane.b32.xlu0 %v587_v18, %s3406_s9  ;;  %v822_v18 = vrot.slane %v4970_v25, 1 }
  0x90   : > { %v607_v38 = vpop.permute.xlu1 %606  ;;  %v595_v54 = vsel %vm455_vm1, %v590_v43, %v594_v7  ;;  %v598_v28 = vor.u32 %v4068_v32, %v594_v7  ;;  %v869_v7 = vrot.slane %v4086_v49, 2 }
  0x91   : > { %v679_v13 = vpop.permute.xlu0 %678  ;;  %v4117_v11 = vor.u32 %v823_v12, %v822_v18  ;;  %v1162_v25 = vsel %vm1157_vm5, %v607_v38, %v4070_v39  ;;  %v3336_v12 = vld [vmem:[%s4955_s2 + $0x130] sm:$0xff]   ;;  %v677_v18 = vsel %vm640_vm0, %v674_v48, %v4976_v30 }
  0x92   : > { %710 = vrot.lane.b32.xlu1 %v675_v58, %s3404_s7  ;;  %v1159_v2 = vsel %vm1157_vm5, %v605_v40, %v679_v13  ;;  %v4993_v40 = vmov 0  }
  0x93   : > { %901 = vrot.lane.b32.xlu0 %v4100_v56, %s3406_s9  ;;  %1972 = vmatprep.mubr.bf16.mxu0 %v1159_v2 }
  0x94   : > { %1973 = vmatmul.mubr.bf16.vlgmr.msra.gmra.mxu0 %v1104_v53  ;;  %v4119_v51 = vpop.permute.xlu1 %682  ;;  %v4132_v53 = vsel %vm752_vm3, %v818_v1, %v4117_v11 }
  0x95   : > { %2295 = vmatpush1.bf16.msra.mxu0 %v3333_v4  ;;  %1980 = vmatprep.mubr.bf16.mxu0 %v1162_v25  ;;  %v4125_v2 = vpop.permute.xlu0 %873  ;;  %v1214_v25 = vsel %vm1212_vm7, %v679_v13, %v717_v31  ;;  %v3337_v31 = vld [vmem:[%s4955_s2 + $0x128] sm:$0xff]  }
  0x96   : > { %4992 = vst [vmem:[#allocation17_spill] sm:$0xff] %v4125_v2  ;;  %746 = vrot.lane.b32.xlu1 %v675_v58, %s3405_s8  ;;  %v1269_v43 = vsel %vm1102_vm6, %v3753_v5, %v4125_v2  ;;  %2296 = vmatprep.subr.bf16.mxu0 %v4993_v40  ;;  %v4145_v58 = vsel %vm835_vm2, %v865_v37, %v867_v26  ;;  %v602_v5 = vrot.slane %v4096_v62, 1  ;;  %v4162_v13 = vld [vmem:[%s3708_s22 + $0x8] sm:$0xff]  }
  0x97   : > { %636 = vrot.lane.b32.xlu0 %v595_v54, %s3406_s9  ;;  %2149 = vmatprep.mubr.bf16.mxu1 %v1269_v43  ;;  %v3360_v54 = vld [vmem:[%s3473_s30 + $0x8] sm:$0xff]  }
  0x98   : > { %2150 = vmatmul.mubr.bf16.vlgmr.msra.gmra.mxu1 %v1214_v25  ;;  %v719_v1 = vpop.permute.xlu1 %718  ;;  %v1107_v43 = vsel %vm1102_vm6, %v3360_v54, %v607_v38  ;;  %v603_v38 = vsel %vm455_vm1, %v598_v28, %v602_v5  ;;  %v714_v54 = vrot.slane %v4162_v13, 1  ;;  %v4183_v5 = vsel %vm835_vm2, %v867_v26, %v869_v7 }
  0x99   : > { %v4149_v2 = vpop.permute.xlu0 %875  ;;  %3236 = vmatpush1.bf16.msra.mxu1 %v3333_v4  ;;  %2297 = vmatpush1.bf16.msra.mxu0 %v3336_v12 }
  0x9a   : > { %712 = vrot.lane.b32.xlu1 %v677_v18, %s3404_s7  ;;  %v1273_v37 = vsel %vm1102_vm6, %v3783_v24, %v4149_v2  ;;  %3221 = vmatprep.subr.bf16.mxu1 %v4993_v40  ;;  %v3339_v24 = vld [vmem:[%s4955_s2 + $0x120] sm:$0xff]  }
  0x9b   : > { %903 = vrot.lane.b32.xlu0 %v4145_v58, %s3406_s9  ;;  %2157 = vmatprep.mubr.bf16.mxu1 %v1273_v37  ;;  %v4188_v37 = vld [vmem:[%s3473_s30 + $0x10] sm:$0xff]  }
  0x9c   : > { %1981 = vmatmul.mubr.bf16.gmra.mxu0 %v1107_v43  ;;  %v4166_v48 = vpop.permute.xlu1 %684  ;;  %2298 = vmatprep.subr.bf16.mxu0 %v4993_v40 }
  0x9d   : > { %v609_v4 = vpop.permute.xlu0 %608  ;;  %3237 = vmatpush1.bf16.msra.mxu1 %v3336_v12  ;;  %2299 = vmatpush1.bf16.msra.mxu0 %v3337_v31  ;;  %v1217_v12 = vsel %vm1212_vm7, %v4070_v39, %v719_v1  ;;  %v4994_v39 = vrot.slane %v4086_v49, 1 }
  0x9e   : > { %748 = vrot.lane.b32.xlu1 %v677_v18, %s3405_s8  ;;  %v1165_v25 = vsel %vm1157_vm5, %v609_v4, %v4119_v51  ;;  %3222 = vmatprep.subr.bf16.mxu1 %v4993_v40  ;;  %v871_v18 = vrot.slane %v4162_v13, 2  ;;  %v1110_v30 = vsel %vm1102_vm6, %v4188_v37, %v609_v4  ;;  %v1007_v4 = vrot.slane %v4068_v32, 2 }
  0x9f   : > { %638 = vrot.lane.b32.xlu0 %v603_v38, %s3406_s9  ;;  %1988 = vmatprep.mubr.bf16.mxu0 %v1165_v25  ;;  %v715_v26 = vsel %vm640_vm0, %v4994_v39, %v714_v54  ;;  %v3340_v38 = vld [vmem:[%s4955_s2 + $0x118] sm:$0xff]   ;;  %v1008_v25 = vrot.slane %v4065_v61, 3 }
  0xa0   : > { %2158 = vmatmul.mubr.bf16.gmra.mxu1 %v1217_v12  ;;  %v721_v28 = vpop.permute.xlu1 %720  ;;  %2300 = vmatprep.subr.bf16.mxu0 %v4993_v40  ;;  %v4215_v12 = vsel %vm835_vm2, %v869_v7, %v871_v18 }
  0xa1   : > { %v611_v43 = vpop.permute.xlu0 %610  ;;  %3238 = vmatpush1.bf16.msra.mxu1 %v3337_v31  ;;  %2301 = vmatpush1.bf16.msra.mxu0 %v3339_v24  ;;  %v1003_v31 = vrot.slane %v4038_v27, 2  ;;  %v1220_v27 = vsel %vm1212_vm7, %v4119_v51, %v721_v28  ;;  %v1009_v32 = vor.u32 %v1008_v25, %v1007_v4  ;;  %v3343_v51 = vld [vmem:[%s4955_s2 + $0x108] sm:$0xff]   ;;  %v4244_v28 = vld [vmem:[%s3473_s30 + $0x18] sm:$0xff]   ;;  %v827_v25 = vshrl.u32 %v4162_v13, 16 }
  0xa2   : > { %911 = vrot.lane.b32.xlu1 %v3543_v42, %s3404_s7  ;;  %v1168_v1 = vsel %vm1157_vm5, %v611_v43, %v4166_v48  ;;  %3223 = vmatprep.subr.bf16.mxu1 %v4993_v40  ;;  %v1004_v42 = vrot.slane %v4035_v59, 3 }
  0xa3   : > { %905 = vrot.lane.b32.xlu0 %v4183_v5, %s3406_s9  ;;  %2302 = vmatprep.subr.bf16.mxu0 %v4993_v40 }
  0xa4   : > { %1989 = vmatmul.mubr.bf16.gmra.mxu0 %v1110_v30  ;;  %v4210_v54 = vpop.permute.xlu1 %686  ;;  %v3341_v30 = vld [vmem:[%s4955_s2 + $0x110] sm:$0xff]   ;;  %v4230_v61 = vor.u32 %v1004_v42, %v1003_v31  ;;  %v1012_v31 = vrot.slane %v4096_v62, 3  ;;  %v3344_v62 = vld [vmem:[%s4955_s2 + $0x100] sm:$0xff]  }
  0xa5   : > { %v4217_v39 = vpop.permute.xlu0 %877  ;;  %1996 = vmatprep.mubr.bf16.mxu0 %v1168_v1  ;;  %3239 = vmatpush1.bf16.msra.mxu1 %v3339_v24 }
  0xa6   : > { %750 = vrot.lane.b32.xlu1 %v715_v26, %s3405_s8  ;;  %v1277_v59 = vsel %vm1102_vm6, %v3804_v15, %v4217_v39  ;;  %2303 = vmatpush1.bf16.msra.mxu0 %v3340_v38  ;;  %v1113_v26 = vsel %vm1102_vm6, %v4244_v28, %v611_v43  ;;  %v1010_v1 = vsel %vm947_vm4, %v4230_v61, %v1009_v32 }
  0xa7   : > { %907 = vrot.lane.b32.xlu0 %v4215_v12, %s3406_s9  ;;  %2165 = vmatprep.mubr.bf16.mxu1 %v1277_v59  ;;  %v830_v59 = vshll.u32 %v4162_v13, 16 }
  0xa8   : > { %2166 = vmatmul.mubr.bf16.gmra.mxu1 %v1220_v27  ;;  %v723_v7 = vpop.permute.xlu1 %722  ;;  %3224 = vmatprep.subr.bf16.mxu1 %v4993_v40  ;;  %v4284_v27 = vld [vmem:[%s3473_s30 + $0x20] sm:$0xff]  }
  0xa9   : > { %v613_v15 = vpop.permute.xlu0 %612  ;;  %3240 = vmatpush1.bf16.msra.mxu1 %v3340_v38  ;;  %2304 = vmatprep.subr.bf16.mxu0 %v4993_v40  ;;  %v1223_v43 = vsel %vm1212_vm7, %v4166_v48, %v723_v7  ;;  %v3345_v48 = vld [vmem:[%s4955_s2 + $0x178] sm:$0xff]  }
  0xaa   : > { %939 = vrot.lane.b32.xlu1 %v4145_v58, %s3404_s7  ;;  %v1171_v24 = vsel %vm1157_vm5, %v613_v15, %v4210_v54  ;;  %2305 = vmatpush1.bf16.msra.mxu0 %v3341_v30  ;;  %v4995_v58 = vshrl.u32 %v4086_v49, 16  ;;  %v1116_v7 = vsel %vm1102_vm6, %v4284_v27, %v613_v15  ;;  %v3346_v15 = vld [vmem:[%s4955_s2 + $0x170] sm:$0xff]  }
  0xab   : > { %1028 = vrot.lane.b32.xlu0 %v3817_v52, %s3405_s8  ;;  %3225 = vmatprep.subr.bf16.mxu1 %v4993_v40 }
  0xac   : > { %v1011_v38 = vrot.slane %v4995_v58, 2  ;;  %1997 = vmatmul.mubr.bf16.gmra.mxu0 %v1113_v26  ;;  %v4254_v42 = vpop.permute.xlu1 %688  ;;  %2306 = vmatprep.subr.bf16.mxu0 %v4993_v40 }
  0xad   : > { %v4257_v52 = vpop.permute.xlu0 %879  ;;  %2004 = vmatprep.mubr.bf16.mxu0 %v1171_v24  ;;  %3241 = vmatpush1.bf16.msra.mxu1 %v3341_v30 }
  0xae   : > { %1056 = vrot.lane.b32.xlu1 %v1010_v1, %s3405_s8  ;;  %v1281_v49 = vsel %vm1102_vm6, %v3834_v3, %v4257_v52  ;;  %2307 = vmatpush1.bf16.msra.mxu0 %v3343_v51  ;;  %v1013_v4 = vor.u32 %v1012_v31, %v1011_v38  ;;  %v4300_v1 = vld [vmem:[%s3708_s22 + $0x10] sm:$0xff]  }
  0xaf   : > { %913 = vrot.lane.b32.xlu0 %v3602_v0, %s3404_s7  ;;  %2173 = vmatprep.mubr.bf16.mxu1 %v1281_v49  ;;  %v1020_v31 = vshrl.u32 %v4300_v1, 16  ;;  %v1023_v49 = vshll.u32 %v4300_v1, 16 }
  0xb0   : > { %2174 = vmatmul.mubr.bf16.gmra.mxu1 %v1223_v43  ;;  %v725_v3 = vpop.permute.xlu1 %724  ;;  %3226 = vmatprep.subr.bf16.mxu1 %v4993_v40  ;;  %v1014_v24 = vsel %vm947_vm4, %v1009_v32, %v1013_v4  ;;  %v3347_v43 = vld [vmem:[%s4955_s2 + $0x168] sm:$0xff]  }
  0xb1   : > { %v615_v30 = vpop.permute.xlu0 %614  ;;  %3242 = vmatpush1.bf16.msra.mxu1 %v3343_v51  ;;  %2308 = vmatprep.subr.bf16.mxu0 %v4993_v40  ;;  %v1016_v51 = vrot.slane %v830_v59, 3  ;;  %v1226_v58 = vsel %vm1212_vm7, %v4210_v54, %v725_v3  ;;  %v909_v54 = vrot.slane %v4300_v1, 2  ;;  %v4328_v3 = vld [vmem:[%s3473_s30 + $0x28] sm:$0xff]  }
  0xb2   : > { %941 = vrot.lane.b32.xlu1 %v4183_v5, %s3404_s7  ;;  %v1174_v0 = vsel %vm1157_vm5, %v615_v30, %v4254_v42  ;;  %2309 = vmatpush1.bf16.msra.mxu0 %v3344_v62  ;;  %v1015_v5 = vrot.slane %v827_v25, 2 }
  0xb3   : > { %1030 = vrot.lane.b32.xlu0 %v3840_v9, %s3405_s8  ;;  %3227 = vmatprep.subr.bf16.mxu1 %v4993_v40 }
  0xb4   : > { %2005 = vmatmul.mubr.bf16.gmra.mxu0 %v1116_v7  ;;  %v4294_v26 = vpop.permute.xlu1 %690  ;;  %2310 = vmatprep.subr.bf16.mxu0 %v4993_v40  ;;  %v1017_v38 = vor.u32 %v1016_v51, %v1015_v5  ;;  %v1025_v7 = vrot.slane %v1023_v49, 3  ;;  %v910_v51 = vsel %vm835_vm2, %v871_v18, %v909_v54  ;;  %v4364_v18 = vld [vmem:[%s3473_s30 + $0x30] sm:$0xff]  }
  0xb5   : > { %v4297_v9 = vpop.permute.xlu0 %881  ;;  %2012 = vmatprep.mubr.bf16.mxu0 %v1174_v0  ;;  %3243 = vmatpush1.bf16.msra.mxu1 %v3344_v62  ;;  %v1119_v0 = vsel %vm1102_vm6, %v4328_v3, %v615_v30 }
  0xb6   : > { %1058 = vrot.lane.b32.xlu1 %v1014_v24, %s3405_s8  ;;  %v1285_v32 = vsel %vm1102_vm6, %v3851_v20, %v4297_v9  ;;  %2311 = vmatpush2.bf16.msra.mxu0 %v3345_v48 }
  0xb7   : > { %915 = vrot.lane.b32.xlu0 %v3641_v19, %s3404_s7  ;;  %2181 = vmatprep.mubr.bf16.mxu1 %v1285_v32 }
  0xb8   : > { %2182 = vmatmul.mubr.bf16.gmra.mxu1 %v1226_v58  ;;  %v727_v20 = vpop.permute.xlu1 %726  ;;  %3228 = vmatprep.subr.bf16.mxu1 %v4993_v40 }
  0xb9   : > { %v617_v62 = vpop.permute.xlu0 %616  ;;  %3244 = vmatpush2.bf16.msra.mxu1 %v3345_v48  ;;  %2312 = vmatprep.subr.bf16.mxu0 %v4993_v40  ;;  %v1022_v48 = vrot.slane %v1020_v31, 2  ;;  %v1229_v30 = vsel %vm1212_vm7, %v4254_v42, %v727_v20  ;;  %v3349_v42 = vld [vmem:[%s4955_s2 + $0x158] sm:$0xff]  }
  0xba   : > { %943 = vrot.lane.b32.xlu1 %v4215_v12, %s3404_s7  ;;  %v1177_v19 = vsel %vm1157_vm5, %v617_v62, %v4294_v26  ;;  %2313 = vmatpush2.bf16.msra.mxu0 %v3346_v15  ;;  %v1018_v12 = vsel %vm947_vm4, %v1013_v4, %v1017_v38  ;;  %v3348_v4 = vld [vmem:[%s4955_s2 + $0x160] sm:$0xff]   ;;  %v1122_v58 = vsel %vm1102_vm6, %v4364_v18, %v617_v62 }
  0xbb   : > { %1032 = vrot.lane.b32.xlu0 %v3863_v29, %s3405_s8  ;;  %3229 = vmatprep.subr.bf16.mxu1 %v4993_v40  ;;  %v1026_v32 = vor.u32 %v1025_v7, %v1022_v48 }
  0xbc   : > { %2013 = vmatmul.mubr.bf16.gmra.mxu0 %v1119_v0  ;;  %v4334_v24 = vpop.permute.xlu1 %692  ;;  %2314 = vmatprep.subr.bf16.mxu0 %v4993_v40 }
  0xbd   : > { %v4337_v5 = vpop.permute.xlu0 %883  ;;  %2020 = vmatprep.mubr.bf16.mxu0 %v1177_v19  ;;  %3245 = vmatpush2.bf16.msra.mxu1 %v3346_v15  ;;  %v1027_v31 = vsel %vm947_vm4, %v1017_v38, %v1026_v32  ;;  %v3350_v38 = vld [vmem:[%s4955_s2 + $0x150] sm:$0xff]  }
  0xbe   : > { %1060 = vrot.lane.b32.xlu1 %v1018_v12, %s3405_s8  ;;  %v1289_v29 = vsel %vm1102_vm6, %v3885_v10, %v4337_v5  ;;  %2315 = vmatpush2.bf16.msra.mxu0 %v3347_v43  ;;  %v3352_v12 = vld [vmem:[%s4955_s2 + $0x140] sm:$0xff]  }
  0xbf   : > { %917 = vrot.lane.b32.xlu0 %v3688_v36, %s3404_s7  ;;  %2189 = vmatprep.mubr.bf16.mxu1 %v1289_v29  ;;  %v992_v29 = vrot.slane %v3969_v45, 3 }
  0xc0   : > { %2190 = vmatmul.mubr.bf16.gmra.mxu1 %v1229_v30  ;;  %v729_v10 = vpop.permute.xlu1 %728  ;;  %3230 = vmatprep.subr.bf16.mxu1 %v4993_v40 }
  0xc1   : > { %v619_v15 = vpop.permute.xlu0 %618  ;;  %3246 = vmatpush2.bf16.msra.mxu1 %v3347_v43  ;;  %2316 = vmatprep.subr.bf16.mxu0 %v4993_v40  ;;  %v1232_v62 = vsel %vm1212_vm7, %v4294_v26, %v729_v10  ;;  %v4398_v26 = vld [vmem:[%s3473_s30 + $0x38] sm:$0xff]   ;;  %v995_v10 = vrot.slane %v4023_v17, 2 }
  0xc2   : > { %945 = vrot.lane.b32.xlu1 %v910_v51, %s3404_s7  ;;  %v1180_v36 = vsel %vm1157_vm5, %v619_v15, %v4334_v24  ;;  %2317 = vmatpush2.bf16.msra.mxu0 %v3348_v4  ;;  %v1125_v43 = vsel %vm1102_vm6, %v4398_v26, %v619_v15  ;;  %v996_v15 = vrot.slane %v3997_v33, 3 }
  0xc3   : > { %1034 = vrot.lane.b32.xlu0 %v3892_v47, %s3405_s8  ;;  %3231 = vmatprep.subr.bf16.mxu1 %v4993_v40 }
  0xc4   : > { %2021 = vmatmul.mubr.bf16.gmra.mxu0 %v1122_v58  ;;  %v4370_v49 = vpop.permute.xlu1 %694  ;;  %2318 = vmatprep.subr.bf16.mxu0 %v4993_v40 }
  0xc5   : > { %v4373_v20 = vpop.permute.xlu0 %885  ;;  %2028 = vmatprep.mubr.bf16.mxu0 %v1180_v36  ;;  %3247 = vmatpush2.bf16.msra.mxu1 %v3348_v4  ;;  %v4436_v4 = vld [vmem:[%s3473_s30 + $0x40] sm:$0xff]  }
  0xc6   : > { %v1293_v47 = vsel %vm1102_vm6, %v3902_v55, %v4373_v20  ;;  %1062 = vrot.lane.b32.xlu1 %v1027_v31, %s3405_s8  ;;  %2319 = vmatpush2.bf16.msra.mxu0 %v3349_v42  ;;  %v997_v31 = vor.u32 %v996_v15, %v995_v10  ;;  %v5002_v10 = vld [vmem:[#allocation12_spill] sm:$0xff] }
  0xc7   : > { %919 = vrot.lane.b32.xlu0 %v3733_v57, %s3404_s7  ;;  %2197 = vmatprep.mubr.bf16.mxu1 %v1293_v47  ;;  %v3351_v57 = vld [vmem:[%s4955_s2 + $0x148] sm:$0xff]  }
  0xc8   : > { %2198 = vmatmul.mubr.bf16.gmra.mxu1 %v1232_v62  ;;  %v731_v19 = vpop.permute.xlu1 %730  ;;  %3232 = vmatprep.subr.bf16.mxu1 %v4993_v40 }
  0xc9   : > { %v621_v55 = vpop.permute.xlu0 %620  ;;  %3248 = vmatpush2.bf16.msra.mxu1 %v3349_v42  ;;  %2320 = vmatprep.subr.bf16.mxu0 %v4993_v40  ;;  %v1235_v48 = vsel %vm1212_vm7, %v4334_v24, %v731_v19  ;;  %v4431_v24 = vld [vmem:[%s4955_s2 + $0x1a8] sm:$0xff]  }
  0xca   : > { %v1183_v54 = vsel %vm1157_vm5, %v621_v55, %v4370_v49  ;;  %1038 = vrot.lane.b32.xlu1 %v3919_v21, %s3405_s8  ;;  %2321 = vmatpush2.bf16.msra.mxu0 %v3350_v38  ;;  %v1128_v30 = vsel %vm1102_vm6, %v4436_v4, %v621_v55  ;;  %v4999_v55 = vld [vmem:[#allocation7_spill] sm:$0xff] }
  0xcb   : > { %1036 = vrot.lane.b32.xlu0 %v3910_v63, %s3405_s8  ;;  %3233 = vmatprep.subr.bf16.mxu1 %v4993_v40 }
  0xcc   : > { %2029 = vmatmul.mubr.bf16.gmra.mxu0 %v1125_v43  ;;  %v4403_v0 = vpop.permute.xlu1 %696  ;;  %2322 = vmatprep.subr.bf16.mxu0 %v4993_v40 }
  0xcd   : > { %v4406_v21 = vpop.permute.xlu0 %887  ;;  %2036 = vmatprep.mubr.bf16.mxu0 %v1183_v54  ;;  %3249 = vmatpush2.bf16.msra.mxu1 %v3350_v38  ;;  %v4997_v38 = vld [vmem:[#allocation10_spill] sm:$0xff] }
  0xce   : > { %v1297_v63 = vsel %vm1102_vm6, %v3914_v60, %v4406_v21  ;;  %1040 = vrot.lane.b32.xlu1 %v3931_v41, %s3405_s8  ;;  %2323 = vmatpush2.bf16.msra.mxu0 %v3351_v57  ;;  %v1000_v62 = vrot.slane %v4997_v38, 3 }
  0xcf   : > { %921 = vrot.lane.b32.xlu0 %v3776_v22, %s3404_s7  ;;  %2205 = vmatprep.mubr.bf16.mxu1 %v1297_v63  ;;  %v991_v22 = vrot.slane %v3994_v16, 2 }
  0xd0   : > { %2206 = vmatmul.mubr.bf16.gmra.mxu1 %v1235_v48  ;;  %v733_v7 = vpop.permute.xlu1 %732  ;;  %3234 = vmatprep.subr.bf16.mxu1 %v4993_v40 }
  0xd1   : > { %v623_v60 = vpop.permute.xlu0 %622  ;;  %3250 = vmatpush2.bf16.msra.mxu1 %v3351_v57  ;;  %2324 = vmatprep.subr.bf16.mxu0 %v4993_v40 }
  0xd2   : > { %v1186_v41 = vsel %vm1157_vm5, %v623_v60, %v4403_v0  ;;  %1042 = vrot.lane.b32.xlu1 %v3940_v44, %s3405_s8  ;;  %2325 = vmatpush2.bf16.msra.mxu0 %v3352_v12 }
  0xd3   : > { %923 = vrot.lane.b32.xlu0 %v3857_v23, %s3404_s7  ;;  %3235 = vmatprep.subr.bf16.mxu1 %v4993_v40  ;;  %v993_v23 = vor.u32 %v992_v29, %v991_v22  ;;  %v1238_v40 = vsel %vm1212_vm7, %v4370_v49, %v733_v7  ;;  %v4996_v49 = vld [vmem:[#allocation14_spill] sm:$0xff]  ;;  %v5000_v7 = vld [vmem:[#allocation9_spill] sm:$0xff]  ;;  %v801_v22 = vrot.slane %v3969_v45, 2 }
  0xd4   : > { %2037 = vmatmul.mubr.bf16.gmra.mxu0 %v1128_v30  ;;  %v699_v44 = vpop.permute.xlu1 %698  ;;  %v999_v47 = vrot.slane %v4996_v49, 2 }
  0xd5   : > { %v4441_v51 = vpop.permute.xlu0 %889  ;;  %2044 = vmatprep.mubr.bf16.mxu0 %v1186_v41  ;;  %3251 = vmatpush2.bf16.msra.mxu1 %v3352_v12  ;;  %v998_v57 = vsel %vm947_vm4, %v993_v23, %v997_v31 }
  0xd6   : > { %v1301_v32 = vsel %vm1102_vm6, %v3925_v8, %v4441_v51  ;;  %1044 = vrot.lane.b32.xlu1 %v3973_v6, %s3405_s8  ;;  %3172 = vmatprep.subr.bf16.mxu1 %v4431_v24  ;;  %v994_v6 = vsel %vm947_vm4, %v3999_v34, %v993_v23  ;;  %v4998_v34 = vld [vmem:[#allocation2_spill] sm:$0xff]  ;;  %v1001_v43 = vor.u32 %v1000_v62, %v999_v47  ;;  %v5001_v23 = vld [vmem:[#allocation5_spill] sm:$0xff]  ;;  %v805_v62 = vrot.slane %v3997_v33, 2 }
  0xd7   : > { %925 = vrot.lane.b32.xlu0 %v3878_v35, %s3404_s7  ;;  %2213 = vmatprep.mubr.bf16.mxu1 %v1301_v32  ;;  %v4463_v35 = vld [vmem:[%s3473_s30 + $0x48] sm:$0xff]  }
  0xd8   : > { %2214 = vmatmul.mubr.bf16.gmra.mxu1 %v1238_v40  ;;  %v735_v8 = vpop.permute.xlu1 %734  ;;  %v1131_v58 = vsel %vm1102_vm6, %v4463_v35, %v623_v60  ;;  %v4485_v60 = vld [vmem:[%s3473_s30 + $0x50] sm:$0xff]   ;;  %v1002_v29 = vsel %vm947_vm4, %v997_v31, %v1001_v43  ;;  %v1006_v15 = vsel %vm947_vm4, %v1001_v43, %v4230_v61  ;;  %v804_v61 = vrot.slane %v4023_v17, 1 }
  0xd9   : > { %v625_v36 = vpop.permute.xlu0 %624  ;;  %v1241_v54 = vsel %vm1212_vm7, %v4403_v0, %v735_v8  ;;  %v800_v0 = vrot.slane %v3994_v16, 1 }
  0xda   : > { %v1189_v42 = vsel %vm1157_vm5, %v625_v36, %v699_v44  ;;  %1046 = vrot.lane.b32.xlu1 %v4004_v46, %s3405_s8  ;;  %v1134_v41 = vsel %vm1102_vm6, %v4485_v60, %v625_v36 }
  0xdb   : > { %927 = vrot.lane.b32.xlu0 %v3958_v50, %s3404_s7  ;;  %v802_v16 = vor.u32 %v801_v22, %v800_v0 }
  0xdc   : > { %2045 = vmatmul.mubr.bf16.gmra.mxu0 %v1131_v58  ;;  %v701_v19 = vpop.permute.xlu1 %700  ;;  %v4508_v58 = vld [vmem:[%s3473_s30 + $0x58] sm:$0xff]  }
  0xdd   : > { %v4469_v46 = vpop.permute.xlu0 %891  ;;  %2052 = vmatprep.mubr.bf16.mxu0 %v1189_v42 }
  0xde   : > { %v1305_v50 = vsel %vm1102_vm6, %v4998_v34, %v4469_v46  ;;  %1048 = vrot.lane.b32.xlu1 %v994_v6, %s3405_s8  ;;  %v5003_v6 = vld [vmem:[#allocation15_spill] sm:$0xff] }
  0xdf   : > { %929 = vrot.lane.b32.xlu0 %v4999_v55, %s3404_s7  ;;  %2221 = vmatprep.mubr.bf16.mxu1 %v1305_v50 }
  0xe0   : > { %2222 = vmatmul.mubr.bf16.gmra.mxu1 %v1241_v54  ;;  %v737_v63 = vpop.permute.xlu1 %736 }
  0xe1   : > { %v627_v12 = vpop.permute.xlu0 %626  ;;  %v1244_v45 = vsel %vm1212_vm7, %v699_v44, %v737_v63  ;;  %v5004_v44 = vld [vmem:[#allocation3_spill] sm:$0xff]  ;;  %v4525_v63 = vld [vmem:[%s3473_s30 + $0x60] sm:$0xff]  }
  0xe2   : > { %v1192_v48 = vsel %vm1157_vm5, %v627_v12, %v701_v19  ;;  %1050 = vrot.lane.b32.xlu1 %v998_v57, %s3405_s8  ;;  %v1137_v31 = vsel %vm1102_vm6, %v4508_v58, %v627_v12  ;;  %v803_v47 = vsel %vm752_vm3, %v5004_v44, %v802_v16  ;;  %v806_v57 = vor.u32 %v805_v62, %v804_v61 }
  0xe3   : > { %931 = vrot.lane.b32.xlu0 %v5000_v7, %s3404_s7  ;;  %v808_v7 = vrot.slane %v4996_v49, 1  ;;  %v5005_v49 = vld [vmem:[#allocation4_spill] sm:$0xff] }
  0xe4   : > { %2053 = vmatmul.mubr.bf16.gmra.mxu0 %v1134_v41  ;;  %v703_v30 = vpop.permute.xlu1 %702 }
  0xe5   : > { %v4492_v32 = vpop.permute.xlu0 %893  ;;  %2060 = vmatprep.mubr.bf16.mxu0 %v1192_v48  ;;  %v807_v48 = vsel %vm752_vm3, %v802_v16, %v806_v57 }
  0xe6   : > { %v1309_v40 = vsel %vm1102_vm6, %v5001_v23, %v4492_v32  ;;  %1052 = vrot.lane.b32.xlu1 %v1002_v29, %s3405_s8 }
  0xe7   : > { %933 = vrot.lane.b32.xlu0 %v5002_v10, %s3404_s7  ;;  %2229 = vmatprep.mubr.bf16.mxu1 %v1309_v40 }
  0xe8   : > { %2230 = vmatmul.mubr.bf16.gmra.mxu1 %v1244_v45  ;;  %v739_v8 = vpop.permute.xlu1 %738 }
  0xe9   : > { %v629_v36 = vpop.permute.xlu0 %628  ;;  %v1247_v54 = vsel %vm1212_vm7, %v701_v19, %v739_v8 }
  0xea   : > { %v1195_v42 = vsel %vm1157_vm5, %v629_v36, %v703_v30  ;;  %1054 = vrot.lane.b32.xlu1 %v1006_v15, %s3405_s8  ;;  %v1140_v12 = vsel %vm1102_vm6, %v4525_v63, %v629_v36 }
  0xeb   : > { %935 = vrot.lane.b32.xlu0 %v5003_v6, %s3404_s7 }
  0xec   : > { %2061 = vmatmul.mubr.bf16.gmra.mxu0 %v1137_v31  ;;  %v705_v34 = vpop.permute.xlu1 %704  ;;  %v5006_v31 = vld [vmem:[#allocation6_spill] sm:$0xff] }
  0xed   : > { %v4516_v50 = vpop.permute.xlu0 %895  ;;  %2068 = vmatprep.mubr.bf16.mxu0 %v1195_v42 }
  0xee   : > { %v1313_v55 = vsel %vm1102_vm6, %v803_v47, %v4516_v50  ;;  %v5007_v47 = vld [vmem:[#allocation13_spill] sm:$0xff] }
  0xef   : > { %937 = vrot.lane.b32.xlu0 %v4100_v56, %s3404_s7  ;;  %2237 = vmatprep.mubr.bf16.mxu1 %v1313_v55  ;;  %v809_v56 = vrot.slane %v4997_v38, 2 }
  0xf0   : > { %2238 = vmatmul.mubr.bf16.gmra.mxu1 %v1247_v54  ;;  %v741_v43 = vpop.permute.xlu1 %740 }
  0xf1   : > { %v631_v17 = vpop.permute.xlu0 %630  ;;  %v1250_v22 = vsel %vm1212_vm7, %v703_v30, %v741_v43  ;;  %v810_v29 = vor.u32 %v809_v56, %v808_v7  ;;  %v5009_v56 = vld [vmem:[#allocation16_spill] sm:$0xff] }
  0xf2   : > { %v1198_v33 = vsel %vm1157_vm5, %v631_v17, %v705_v34  ;;  %v1143_v38 = vsel %vm1102_vm6, %v5005_v49, %v631_v17  ;;  %v5010_v49 = vld [vmem:[#allocation11_spill] sm:$0xff] }
  0xf3   : > { %v811_v45 = vsel %vm752_vm3, %v806_v57, %v810_v29  ;;  %v815_v61 = vsel %vm752_vm3, %v810_v29, %v5007_v47  ;;  %v832_v29 = vrot.slane %v830_v59, 2 }
  0xf4   : > { %2069 = vmatmul.mubr.bf16.gmra.mxu0 %v1140_v12  ;;  %v707_v41 = vpop.permute.xlu1 %706 }
  0xf5   : > { %v4532_v19 = vpop.permute.xlu0 %897  ;;  %2076 = vmatprep.mubr.bf16.mxu0 %v1198_v33  ;;  %v5008_v33 = vld [vmem:[#allocation8_spill] sm:$0xff] }
  0xf6   : > { %v1317_v0 = vsel %vm1102_vm6, %v807_v48, %v4532_v19 }
  0xf7   : > { %2245 = vmatprep.mubr.bf16.mxu1 %v1317_v0 }
  0xf8   : > { %2246 = vmatmul.mubr.bf16.gmra.mxu1 %v1250_v22  ;;  %v743_v23 = vpop.permute.xlu1 %742  ;;  %v829_v22 = vrot.slane %v827_v25, 1 }
  0xf9   : > { %v633_v40 = vpop.permute.xlu0 %632  ;;  %v1253_v30 = vsel %vm1212_vm7, %v705_v34, %v743_v23 }
  0xfa   : > { %v1201_v10 = vsel %vm1157_vm5, %v633_v40, %v707_v41  ;;  %v1146_v44 = vsel %vm1102_vm6, %v5006_v31, %v633_v40 }
  0xfc   : > { %2077 = vmatmul.mubr.bf16.gmra.mxu0 %v1143_v38  ;;  %v709_v16 = vpop.permute.xlu1 %708 }
  0xfd   : > { %v4541_v15 = vpop.permute.xlu0 %899  ;;  %2084 = vmatprep.mubr.bf16.mxu0 %v1201_v10 }
  0xfe   : > { %v1321_v8 = vsel %vm1102_vm6, %v811_v45, %v4541_v15  ;;  %v833_v45 = vor.u32 %v832_v29, %v829_v22 }
  0xff   : > { %2253 = vmatprep.mubr.bf16.mxu1 %v1321_v8 }
 0x100   : > { %2254 = vmatmul.mubr.bf16.gmra.mxu1 %v1253_v30  ;;  %v745_v36 = vpop.permute.xlu1 %744  ;;  %v834_v59 = vsel %vm752_vm3, %v4117_v11, %v833_v45 }
 0x101   : > { %v635_v42 = vpop.permute.xlu0 %634  ;;  %v1256_v34 = vsel %vm1212_vm7, %v707_v41, %v745_v36 }
 0x102   : > { %v1204_v6 = vsel %vm1157_vm5, %v635_v42, %v709_v16  ;;  %v1149_v12 = vsel %vm1102_vm6, %v5008_v33, %v635_v42 }
 0x104   : > { %2085 = vmatmul.mubr.bf16.gmra.mxu0 %v1146_v44  ;;  %v711_v62 = vpop.permute.xlu1 %710 }
 0x105   : > { %v902_v55 = vpop.permute.xlu0 %901  ;;  %2092 = vmatprep.mubr.bf16.mxu0 %v1204_v6 }
 0x106   : > { %v1325_v54 = vsel %vm1102_vm6, %v815_v61, %v902_v55 }
 0x107   : > { %2261 = vmatprep.mubr.bf16.mxu1 %v1325_v54  ;;  %v5011_v54 = vld [vmem:[#allocation17_spill] sm:$0xff] }
 0x108   : > { %2262 = vmatmul.mubr.bf16.gmra.mxu1 %v1256_v34  ;;  %v747_v57 = vpop.permute.xlu1 %746 }
 0x109   : > { %v637_v43 = vpop.permute.xlu0 %636  ;;  %v1259_v41 = vsel %vm1212_vm7, %v709_v16, %v747_v57 }
 0x10a   : > { %v1207_v17 = vsel %vm1157_vm5, %v637_v43, %v711_v62  ;;  %v1152_v38 = vsel %vm1102_vm6, %v5010_v49, %v637_v43  ;;  %v3357_v49 = vld [vmem:[%s4955_s2 + $0x188] sm:$0xff]  }
 0x10c   : > { %2093 = vmatmul.mubr.bf16.gmra.mxu0 %v1149_v12  ;;  %v713_v48 = vpop.permute.xlu1 %712 }
 0x10d   : > { %v4556_v7 = vpop.permute.xlu0 %903  ;;  %2100 = vmatprep.mubr.bf16.mxu0 %v1207_v17  ;;  %v3354_v17 = vld [vmem:[%s4955_s2 + $0x1a0] sm:$0xff]  }
 0x10e   : > { %v1329_v0 = vsel %vm1102_vm6, %v5009_v56, %v4556_v7 }
 0x10f   : > { %2269 = vmatprep.mubr.bf16.mxu1 %v1329_v0  ;;  %v3355_v0 = vld [vmem:[%s4955_s2 + $0x198] sm:$0xff]  }
 0x110   : > { %2270 = vmatmul.mubr.bf16.gmra.mxu1 %v1259_v41  ;;  %v749_v23 = vpop.permute.xlu1 %748 }
 0x111   : > { %v639_v40 = vpop.permute.xlu0 %638  ;;  %v1262_v13 = vsel %vm1212_vm7, %v711_v62, %v749_v23 }
 0x112   : > { %v1210_v10 = vsel %vm1157_vm5, %v639_v40, %v713_v48  ;;  %v1155_v6 = vsel %vm1102_vm6, %v4059_v14, %v639_v40 }
 0x114   : > { %2101 = vmatmul.mubr.bf16.gmra.mxu0 %v1152_v38  ;;  %v912_v8 = vpop.permute.xlu1 %911 }
 0x115   : > { %v4569_v30 = vpop.permute.xlu0 %905  ;;  %2108 = vmatprep.mubr.bf16.mxu0 %v1210_v10  ;;  %v1340_v34 = vsel %vm1157_vm5, %v5011_v54, %v912_v8 }
 0x116   : > { %v1333_v25 = vsel %vm1102_vm6, %v4132_v53, %v4569_v30 }
 0x117   : > { %2277 = vmatprep.mubr.bf16.mxu1 %v1333_v25  ;;  %v3358_v25 = vld [vmem:[%s4955_s2 + $0x180] sm:$0xff]  }
 0x118   : > { %2278 = vmatmul.mubr.bf16.gmra.mxu1 %v1262_v13  ;;  %v751_v16 = vpop.permute.xlu1 %750 }
 0x119   : > { %v4577_v36 = vpop.permute.xlu0 %907  ;;  %v1265_v47 = vsel %vm1212_vm7, %v713_v48, %v751_v16 }
 0x11a   : > { %v1337_v42 = vsel %vm1102_vm6, %v834_v59, %v4577_v36 }
 0x11b   : > { %2285 = vmatprep.mubr.bf16.mxu1 %v1337_v42  ;;  %v1065_v42 = vrot.slane %v4188_v37, 3 }
 0x11c   : > { %2109 = vmatmul.mubr.bf16.gmra.mxu0 %v1155_v6  ;;  %v940_v31 = vpop.permute.xlu1 %939  ;;  %v1066_v6 = vrot.slane %v4244_v28, 3  ;;  %v1068_v28 = vrot.slane %v4284_v27, 3  ;;  %v1072_v27 = vrot.slane %v4364_v18, 3  ;;  %v1076_v18 = vrot.slane %v4436_v4, 3 }
 0x11d   : > { %v1029_v53 = vpop.permute.xlu0 %1028  ;;  %v1382_v33 = vsel %vm1157_vm5, %v902_v55, %v940_v31 }
 0x11e   : > { %v1394_v44 = vsel %vm1212_vm7, %v912_v8, %v1029_v53  ;;  %v1069_v54 = vsel %vm1064_vm8, %v1066_v6, %v1068_v28 }
 0x11f   : > { %2326 = vmatprep.mubr.bf16.mxu0 %v1394_v44  ;;  %v1067_v44 = vsel %vm1064_vm8, %v1065_v42, %v1066_v6 }
 0x120   : > { %2286 = vmatmul.mubr.bf16.gmra.mxu1 %v1265_v47  ;;  %v1057_v11 = vpop.permute.xlu1 %1056 }
 0x121   : > { %v914_v61 = vpop.permute.xlu0 %913  ;;  %v1436_v62 = vsel %vm1212_vm7, %v940_v31, %v1057_v11 }
 0x122   : > { %2438 = vmatprep.mubr.bf16.mxu1 %v1436_v62  ;;  %v1343_v41 = vsel %vm1157_vm5, %v4149_v2, %v914_v61 }
 0x124   : > { %2327 = vmatmul.mubr.bf16.vlgmr.msra.gmra.mxu0 %v1340_v34  ;;  %v942_v14 = vpop.permute.xlu1 %941 }
 0x125   : > { %v1031_v57 = vpop.permute.xlu0 %1030  ;;  %v1385_v23 = vsel %vm1157_vm5, %v4556_v7, %v942_v14 }
 0x126   : > { %v1397_v43 = vsel %vm1212_vm7, %v914_v61, %v1031_v57  ;;  %v1070_v61 = vrot.slane %v4328_v3, 3  ;;  %v1074_v3 = vrot.slane %v4398_v26, 3  ;;  %v1078_v26 = vrot.slane %v4463_v35, 3 }
 0x127   : > { %2334 = vmatprep.mubr.bf16.mxu0 %v1397_v43 }
 0x128   : > { %2439 = vmatmul.mubr.bf16.vlgmr.msra.gmra.mxu1 %v1382_v33  ;;  %v1059_v12 = vpop.permute.xlu1 %1058  ;;  %v1073_v43 = vsel %vm1064_vm8, %v1070_v61, %v1072_v27  ;;  %v1079_v4 = vsel %vm1064_vm8, %v1076_v18, %v1078_v26 }
 0x129   : > { %v916_v48 = vpop.permute.xlu0 %915  ;;  %3173 = vmatpush3.bf16.msra.mxu1 %v4431_v24  ;;  %v1439_v56 = vsel %vm1212_vm7, %v942_v14, %v1059_v12  ;;  %v3356_v24 = vld [vmem:[%s4955_s2 + $0x190] sm:$0xff]  }
 0x12a   : > { %2446 = vmatprep.mubr.bf16.mxu1 %v1439_v56  ;;  %3174 = vmatprep.subr.bf16.mxu1 %v3354_v17  ;;  %v1346_v38 = vsel %vm1157_vm5, %v4217_v39, %v916_v48  ;;  %v4654_v56 = vld [vmem:[%s4956_s3] ss:$0 sm:$0xff] }
 0x12c   : > { %2335 = vmatmul.mubr.bf16.gmra.mxu0 %v1343_v41  ;;  %v944_v22 = vpop.permute.xlu1 %943  ;;  %v1077_v41 = vsel %vm1064_vm8, %v1074_v3, %v1076_v18 }
 0x12d   : > { %v1033_v55 = vpop.permute.xlu0 %1032  ;;  %3175 = vmatpush3.bf16.msra.mxu1 %v3354_v17  ;;  %v1388_v13 = vsel %vm1157_vm5, %v4569_v30, %v944_v22  ;;  %v1075_v17 = vsel %vm1064_vm8, %v1072_v27, %v1074_v3 }
 0x12e   : > { %v1400_v29 = vsel %vm1212_vm7, %v916_v48, %v1033_v55  ;;  %3176 = vmatprep.subr.bf16.mxu1 %v3355_v0 }
 0x12f   : > { %2342 = vmatprep.mubr.bf16.mxu0 %v1400_v29 }
 0x130   : > { %2447 = vmatmul.mubr.bf16.gmra.mxu1 %v1385_v23  ;;  %v1061_v40 = vpop.permute.xlu1 %1060 }
 0x131   : > { %v918_v10 = vpop.permute.xlu0 %917  ;;  %v1442_v2 = vsel %vm1212_vm7, %v944_v22, %v1061_v40  ;;  %3177 = vmatpush3.bf16.msra.mxu1 %v3355_v0  ;;  %v1080_v40 = vrot.slane %v4485_v60, 3 }
 0x132   : > { %2454 = vmatprep.mubr.bf16.mxu1 %v1442_v2  ;;  %3178 = vmatprep.subr.bf16.mxu1 %v3356_v24  ;;  %v1349_v31 = vsel %vm1157_vm5, %v4257_v52, %v918_v10 }
 0x134   : > { %2343 = vmatmul.mubr.bf16.gmra.mxu0 %v1346_v38  ;;  %v946_v45 = vpop.permute.xlu1 %945  ;;  %v1082_v38 = vrot.slane %v4508_v58, 3 }
 0x135   : > { %v1035_v8 = vpop.permute.xlu0 %1034  ;;  %3179 = vmatpush3.bf16.msra.mxu1 %v3356_v24  ;;  %v1391_v47 = vsel %vm1157_vm5, %v4577_v36, %v946_v45  ;;  %v1071_v36 = vsel %vm1064_vm8, %v1068_v28, %v1070_v61 }
 0x136   : > { %v1403_v7 = vsel %vm1212_vm7, %v918_v10, %v1035_v8  ;;  %3180 = vmatprep.subr.bf16.mxu1 %v3357_v49 }
 0x137   : > { %2350 = vmatprep.mubr.bf16.mxu0 %v1403_v7 }
 0x138   : > { %2455 = vmatmul.mubr.bf16.gmra.mxu1 %v1388_v13  ;;  %v1063_v59 = vpop.permute.xlu1 %1062 }
 0x139   : > { %v920_v16 = vpop.permute.xlu0 %919  ;;  %v1445_v39 = vsel %vm1212_vm7, %v946_v45, %v1063_v59  ;;  %3181 = vmatpush3.bf16.msra.mxu1 %v3357_v49  ;;  %v1081_v59 = vsel %vm1064_vm8, %v1078_v26, %v1080_v40 }
 0x13a   : > { %2462 = vmatprep.mubr.bf16.mxu1 %v1445_v39  ;;  %3182 = vmatprep.subr.bf16.mxu1 %v3358_v25  ;;  %v1352_v62 = vsel %vm1157_vm5, %v4297_v9, %v920_v16  ;;  %v1083_v39 = vsel %vm1064_vm8, %v1080_v40, %v1082_v38 }
 0x13c   : > { %2351 = vmatmul.mubr.bf16.gmra.mxu0 %v1349_v31  ;;  %v1039_v11 = vpop.permute.xlu1 %1038 }
 0x13d   : > { %v1037_v53 = vpop.permute.xlu0 %1036  ;;  %3183 = vmatpush3.bf16.msra.mxu1 %v3358_v25 }
 0x13e   : > { %v1406_v30 = vsel %vm1212_vm7, %v920_v16, %v1037_v53 }
 0x13f   : > { %2358 = vmatprep.mubr.bf16.mxu0 %v1406_v30  ;;  %v1084_v30 = vrot.slane %v4525_v63, 3 }
 0x140   : > { %2463 = vmatmul.mubr.bf16.gmra.mxu1 %v1391_v47  ;;  %v1041_v34 = vpop.permute.xlu1 %1040 }
 0x141   : > { %v922_v37 = vpop.permute.xlu0 %921  ;;  %3184 = vmatprep.mubr.msk.bf16.mxu1 %vm1102_vm6, %v1067_v44 }
 0x142   : > { %v1409_v52 = vsel %vm1212_vm7, %v922_v37, %v1039_v11  ;;  %v1355_v9 = vsel %vm1157_vm5, %v4337_v5, %v922_v37  ;;  %v3372_v37 = vld [vmem:[%s3473_s30 + $0x68] sm:$0xff]  }
 0x143   : > { %v1086_v28 = vrot.slane %v3372_v37, 3 }
 0x144   : > { %2359 = vmatmul.mubr.bf16.gmra.mxu0 %v1352_v62  ;;  %v1043_v33 = vpop.permute.xlu1 %1042 }
 0x145   : > { %2366 = vmatprep.mubr.bf16.mxu0 %v1409_v52  ;;  %v924_v14 = vpop.permute.xlu0 %923  ;;  %v1087_v27 = vsel %vm1064_vm8, %v1084_v30, %v1086_v28 }
 0x146   : > { %v1412_v57 = vsel %vm1212_vm7, %v924_v14, %v1041_v34  ;;  %v1358_v5 = vsel %vm1157_vm5, %v4373_v20, %v924_v14  ;;  %v1085_v34 = vsel %vm1064_vm8, %v1082_v38, %v1084_v30 }
 0x148   : > { %3185 = vmatmul.mubr.msk.bf16.vlgmr.msra.gmra.mxu1 %vm1102_vm6, %v1069_v54  ;;  %v1045_v29 = vpop.permute.xlu1 %1044 }
 0x149   : > { %3188 = vmatprep.mubr.msk.bf16.mxu1 %vm1102_vm6, %v1071_v36  ;;  %v926_v12 = vpop.permute.xlu0 %925 }
 0x14a   : > { %v1415_v48 = vsel %vm1212_vm7, %v926_v12, %v1043_v33  ;;  %v1361_v8 = vsel %vm1157_vm5, %v4406_v21, %v926_v12  ;;  %v3373_v33 = vld [vmem:[%s3473_s30 + $0x70] sm:$0xff]  }
 0x14b   : > { %v1088_v12 = vrot.slane %v3373_v33, 3 }
 0x14c   : > { %2367 = vmatmul.mubr.bf16.gmra.mxu0 %v1355_v9  ;;  %v1047_v42 = vpop.permute.xlu1 %1046 }
 0x14d   : > { %2374 = vmatprep.mubr.bf16.mxu0 %v1412_v57  ;;  %v928_v20 = vpop.permute.xlu0 %927 }
 0x14e   : > { %v1418_v49 = vsel %vm1212_vm7, %v928_v20, %v1045_v29  ;;  %v1364_v61 = vsel %vm1157_vm5, %v4441_v51, %v928_v20 }
 0x150   : > { %3189 = vmatmul.mubr.msk.bf16.gmra.mxu1 %vm1102_vm6, %v1073_v43  ;;  %v1049_v3 = vpop.permute.xlu1 %1048 }
 0x151   : > { %3192 = vmatprep.mubr.msk.bf16.mxu1 %vm1102_vm6, %v1075_v17  ;;  %v930_v21 = vpop.permute.xlu0 %929 }
 0x152   : > { %v1421_v11 = vsel %vm1212_vm7, %v930_v21, %v1047_v42 }
 0x154   : > { %v1974_v0 = vpop.f32.mrf.mxu0  ;;  %2375 = vmatmul.mubr.bf16.gmra.mxu0 %v1358_v5  ;;  %v3374_v5 = vld [vmem:[%s3473_s30 + $0x78] sm:$0xff]  }
 0x155   : > { %2382 = vmatprep.mubr.bf16.mxu0 %v1415_v48  ;;  %v1975_v55 = vadd.f32 %v4654_v56, %v1974_v0  ;;  %v932_v51 = vpop.permute.xlu0 %931  ;;  %v1090_v0 = vrot.slane %v3374_v5, 3 }
 0x156   : > { %v1976_v22 = vpop.f32.mrf.mxu0  ;;  %v1424_v26 = vsel %vm1212_vm7, %v932_v51, %v1049_v3 }
 0x157   : > { %v1367_v22 = vsel %vm1157_vm5, %v4469_v46, %v930_v21  ;;  %v1091_v40 = vsel %vm1064_vm8, %v1088_v12, %v1090_v0 }
 0x158   : > { %v1977_v35 = vpop.f32.mrf.mxu0  ;;  %v2151_v24 = vpop.f32.mrf.mxu1  ;;  %3193 = vmatmul.mubr.msk.bf16.gmra.mxu1 %vm1102_vm6, %v1077_v41 }
 0x159   : > { %v4660_v23 = vadd.f32 %v2151_v24, %v1975_v55  ;;  %3196 = vmatprep.mubr.msk.bf16.mxu1 %vm1102_vm6, %v1079_v4  ;;  %v1978_v45 = vadd.f32 %v4654_v56, %v1977_v35  ;;  %v1089_v35 = vsel %vm1064_vm8, %v1086_v28, %v1088_v12  ;;  %v934_v46 = vpop.permute.xlu0 %933 }
 0x15a   : > { %v1979_v10 = vpop.f32.mrf.mxu0  ;;  %v2153_v2 = vpop.f32.mrf.mxu1 }
 0x15b   : > { %v1051_v2 = vpop.permute.xlu1 %1050 }
 0x15c   : > { %v1982_v7 = vpop.f32.mrf.mxu0  ;;  %v2154_v25 = vpop.f32.mrf.mxu1  ;;  %2383 = vmatmul.mubr.bf16.gmra.mxu0 %v1361_v8  ;;  %v3375_v8 = vld [vmem:[%s3473_s30 + $0x80] sm:$0xff]  }
 0x15d   : > { %v4669_v13 = vadd.f32 %v2154_v25, %v1978_v45  ;;  %2390 = vmatprep.mubr.bf16.mxu0 %v1418_v49  ;;  %v1983_v58 = vadd.f32 %v4654_v56, %v1982_v7  ;;  %v1092_v7 = vrot.slane %v3375_v8, 3 }
 0x15e   : > { %v1984_v60 = vpop.f32.mrf.mxu0  ;;  %v2156_v16 = vpop.f32.mrf.mxu1 }
 0x15f   : > { %v1427_v60 = vsel %vm1212_vm7, %v934_v46, %v1051_v2  ;;  %v3376_v16 = vld [vmem:[%s3473_s30 + $0x88] sm:$0xff]   ;;  %v1093_v30 = vsel %vm1064_vm8, %v1090_v0, %v1092_v7  ;;  %v1053_v28 = vpop.permute.xlu1 %1052  ;;  %s3254_s30 = smul.u32 144, %s5017_s15 }
 0x160   : > { %v1985_v6 = vpop.f32.mrf.mxu0  ;;  %v2159_v31 = vpop.f32.mrf.mxu1  ;;  %3197 = vmatmul.mubr.msk.bf16.gmra.mxu1 %vm1102_vm6, %v1081_v59 }
 0x161   : > { %v4675_v53 = vadd.f32 %v2159_v31, %v1983_v58  ;;  %3200 = vmatprep.mubr.msk.bf16.mxu1 %vm1102_vm6, %v1083_v39  ;;  %v1986_v52 = vadd.f32 %v4654_v56, %v1985_v6  ;;  %v1094_v39 = vrot.slane %v3376_v16, 3  ;;  %v1370_v58 = vsel %vm1157_vm5, %v4492_v32, %v932_v51  ;;  %s4830_s5 = scalar_lea.vmem %s4957_s4, %s3254_s30 }
 0x162   : > { %v1987_v44 = vpop.f32.mrf.mxu0  ;;  %v2161_v47 = vpop.f32.mrf.mxu1 }
 0x164   : > { %v1990_v62 = vpop.f32.mrf.mxu0  ;;  %v2162_v54 = vpop.f32.mrf.mxu1  ;;  %2391 = vmatmul.mubr.bf16.gmra.mxu0 %v1364_v61 }
 0x165   : > { %v4684_v36 = vadd.f32 %v2162_v54, %v1986_v52  ;;  %2398 = vmatprep.mubr.bf16.mxu0 %v1421_v11  ;;  %v1991_v57 = vadd.f32 %v4654_v56, %v1990_v62  ;;  %v1095_v11 = vsel %vm1064_vm8, %v1092_v7, %v1094_v39  ;;  %v936_v61 = vpop.permute.xlu0 %935  ;;  %v3377_v54 = vld [vmem:[%s3708_s22] sm:$0xff]  }
 0x166   : > { %v1992_v63 = vpop.f32.mrf.mxu0  ;;  %v2164_v14 = vpop.f32.mrf.mxu1 }
 0x168   : > { %v1993_v9 = vpop.f32.mrf.mxu0  ;;  %v2167_v43 = vpop.f32.mrf.mxu1  ;;  %3201 = vmatmul.mubr.msk.bf16.gmra.mxu1 %vm1102_vm6, %v1085_v34  ;;  %v1096_v34 = vrot.slane %v3377_v54, 3 }
 0x169   : > { %v4690_v17 = vadd.f32 %v2167_v43, %v1991_v57  ;;  %3204 = vmatprep.mubr.msk.bf16.mxu1 %vm1102_vm6, %v1087_v27  ;;  %v1994_v41 = vadd.f32 %v4654_v56, %v1993_v9  ;;  %v1430_v27 = vsel %vm1212_vm7, %v936_v61, %v1053_v28  ;;  %v3378_v57 = vld [vmem:[%s3708_s22 + $0x8] sm:$0xff]   ;;  %v1373_v9 = vsel %vm1157_vm5, %v4516_v50, %v934_v46  ;;  %v938_v50 = vpop.permute.xlu0 %937 }
 0x16a   : > { %v1995_v18 = vpop.f32.mrf.mxu0  ;;  %v2169_v48 = vpop.f32.mrf.mxu1  ;;  %v1098_v3 = vrot.slane %v3378_v57, 3 }
 0x16b   : > { %v1097_v18 = vsel %vm1064_vm8, %v1094_v39, %v1096_v34 }
 0x16c   : > { %v1998_v4 = vpop.f32.mrf.mxu0  ;;  %v2170_v55 = vpop.f32.mrf.mxu1  ;;  %2399 = vmatmul.mubr.bf16.gmra.mxu0 %v1367_v22  ;;  %v1099_v5 = vsel %vm1064_vm8, %v1096_v34, %v1098_v3 }
 0x16d   : > { %v4699_v29 = vadd.f32 %v2170_v55, %v1994_v41  ;;  %2406 = vmatprep.mubr.bf16.mxu0 %v1424_v26  ;;  %v1999_v10 = vadd.f32 %v4654_v56, %v1998_v4  ;;  %v1055_v41 = vpop.permute.xlu1 %1054 }
 0x16e   : > { %v2000_v24 = vpop.f32.mrf.mxu0  ;;  %v2172_v20 = vpop.f32.mrf.mxu1 }
 0x170   : > { %v2001_v49 = vpop.f32.mrf.mxu0  ;;  %v2175_v38 = vpop.f32.mrf.mxu1  ;;  %3205 = vmatmul.mubr.msk.bf16.gmra.mxu1 %vm1102_vm6, %v1089_v35  ;;  %v1100_v35 = vrot.slane %v4300_v1, 3 }
 0x171   : > { %v4705_v45 = vadd.f32 %v2175_v38, %v1999_v10  ;;  %3208 = vmatprep.mubr.msk.bf16.mxu1 %vm1102_vm6, %v1091_v40  ;;  %v2002_v42 = vadd.f32 %v4654_v56, %v2001_v49  ;;  %v1433_v40 = vsel %vm1212_vm7, %v938_v50, %v1055_v41  ;;  %v1376_v10 = vsel %vm1157_vm5, %v4532_v19, %v936_v61 }
 0x172   : > { %v2003_v25 = vpop.f32.mrf.mxu0  ;;  %v2177_v59 = vpop.f32.mrf.mxu1  ;;  %v1101_v8 = vsel %vm1064_vm8, %v1098_v3, %v1100_v35 }
 0x174   : > { %v2006_v6 = vpop.f32.mrf.mxu0  ;;  %v2178_v31 = vpop.f32.mrf.mxu1  ;;  %2407 = vmatmul.mubr.bf16.gmra.mxu0 %v1370_v58  ;;  %v1379_v58 = vsel %vm1157_vm5, %v4541_v15, %v938_v50 }
 0x175   : > { %v4714_v21 = vadd.f32 %v2178_v31, %v2002_v42  ;;  %2414 = vmatprep.mubr.bf16.mxu0 %v1427_v60  ;;  %v2007_v37 = vadd.f32 %v4654_v56, %v2006_v6 }
 0x176   : > { %v2008_v44 = vpop.f32.mrf.mxu0  ;;  %v2180_v47 = vpop.f32.mrf.mxu1 }
 0x178   : > { %v2009_v32 = vpop.f32.mrf.mxu0  ;;  %v2183_v52 = vpop.f32.mrf.mxu1  ;;  %3209 = vmatmul.mubr.msk.bf16.gmra.mxu1 %vm1102_vm6, %v1093_v30 }
 0x179   : > { %v4720_v62 = vadd.f32 %v2183_v52, %v2007_v37  ;;  %3212 = vmatprep.mubr.msk.bf16.mxu1 %vm1102_vm6, %v1095_v11  ;;  %v2010_v43 = vadd.f32 %v4654_v56, %v2009_v32 }
 0x17a   : > { %v2011_v63 = vpop.f32.mrf.mxu0  ;;  %v2185_v14 = vpop.f32.mrf.mxu1 }
 0x17c   : > { %v2014_v51 = vpop.f32.mrf.mxu0  ;;  %v2186_v33 = vpop.f32.mrf.mxu1  ;;  %2415 = vmatmul.mubr.bf16.gmra.mxu0 %v1373_v9 }
 0x17d   : > { %v4729_v12 = vadd.f32 %v2186_v33, %v2010_v43  ;;  %2422 = vmatprep.mubr.bf16.mxu0 %v1430_v27  ;;  %v2015_v0 = vadd.f32 %v4654_v56, %v2014_v51 }
 0x17e   : > { %v2016_v48 = vpop.f32.mrf.mxu0  ;;  %v2188_v26 = vpop.f32.mrf.mxu1 }
 0x180   : > { %v2017_v22 = vpop.f32.mrf.mxu0  ;;  %v2191_v4 = vpop.f32.mrf.mxu1  ;;  %3213 = vmatmul.mubr.msk.bf16.gmra.mxu1 %vm1102_vm6, %v1097_v18 }
 0x181   : > { %v4735_v55 = vadd.f32 %v2191_v4, %v2015_v0  ;;  %3216 = vmatprep.mubr.msk.bf16.mxu1 %vm1102_vm6, %v1099_v5  ;;  %v2018_v2 = vadd.f32 %v4654_v56, %v2017_v22 }
 0x182   : > { %v2019_v24 = vpop.f32.mrf.mxu0  ;;  %v2193_v20 = vpop.f32.mrf.mxu1 }
 0x184   : > { %v2022_v49 = vpop.f32.mrf.mxu0  ;;  %v2194_v38 = vpop.f32.mrf.mxu1  ;;  %2423 = vmatmul.mubr.bf16.gmra.mxu0 %v1376_v10 }
 0x185   : > { %v4743_v46 = vadd.f32 %v2194_v38, %v2018_v2  ;;  %2430 = vmatprep.mubr.bf16.mxu0 %v1433_v40  ;;  %v2023_v1 = vadd.f32 %v4654_v56, %v2022_v49 }
 0x186   : > { %v2024_v7 = vpop.f32.mrf.mxu0  ;;  %v2196_v25 = vpop.f32.mrf.mxu1 }
 0x188   : > { %v2025_v59 = vpop.f32.mrf.mxu0  ;;  %v2199_v60 = vpop.f32.mrf.mxu1  ;;  %3217 = vmatmul.mubr.msk.bf16.gmra.mxu1 %vm1102_vm6, %v1101_v8 }
 0x189   : > { %v4748_v16 = vadd.f32 %v2199_v60, %v2023_v1  ;;  %v2026_v42 = vadd.f32 %v4654_v56, %v2025_v59 }
 0x18a   : > { %v2027_v19 = vpop.f32.mrf.mxu0  ;;  %v2201_v39 = vpop.f32.mrf.mxu1 }
 0x18c   : > { %v2030_v6 = vpop.f32.mrf.mxu0  ;;  %v2202_v31 = vpop.f32.mrf.mxu1  ;;  %2431 = vmatmul.mubr.bf16.gmra.mxu0 %v1379_v58 }
 0x18d   : > { %v4753_v30 = vadd.f32 %v2202_v31, %v2026_v42  ;;  %v2031_v11 = vadd.f32 %v4654_v56, %v2030_v6 }
 0x18e   : > { %v2032_v44 = vpop.f32.mrf.mxu0  ;;  %v2204_v47 = vpop.f32.mrf.mxu1 }
 0x190   : > { %v2033_v37 = vpop.f32.mrf.mxu0  ;;  %v2207_v28 = vpop.f32.mrf.mxu1 }
 0x191   : > { %v4756_v32 = vadd.f32 %v2207_v28, %v2031_v11  ;;  %v2034_v54 = vadd.f32 %v4654_v56, %v2033_v37 }
 0x192   : > { %v2035_v52 = vpop.f32.mrf.mxu0  ;;  %v2209_v61 = vpop.f32.mrf.mxu1 }
 0x194   : > { %v2038_v15 = vpop.f32.mrf.mxu0  ;;  %v2210_v34 = vpop.f32.mrf.mxu1 }
 0x195   : > { %v4759_v63 = vadd.f32 %v2210_v34, %v2034_v54  ;;  %v2039_v57 = vadd.f32 %v4654_v56, %v2038_v15 }
 0x196   : > { %v2040_v14 = vpop.f32.mrf.mxu0  ;;  %v2212_v27 = vpop.f32.mrf.mxu1 }
 0x198   : > { %v2041_v3 = vpop.f32.mrf.mxu0  ;;  %v2215_v9 = vpop.f32.mrf.mxu1 }
 0x199   : > { %v4762_v43 = vadd.f32 %v2215_v9, %v2039_v57  ;;  %v2042_v18 = vadd.f32 %v4654_v56, %v2041_v3 }
 0x19a   : > { %v2043_v51 = vpop.f32.mrf.mxu0  ;;  %v2217_v33 = vpop.f32.mrf.mxu1 }
 0x19c   : > { %v2046_v48 = vpop.f32.mrf.mxu0  ;;  %v2218_v26 = vpop.f32.mrf.mxu1 }
 0x19d   : > { %v4765_v5 = vadd.f32 %v2218_v26, %v2042_v18  ;;  %v2047_v22 = vadd.f32 %v4654_v56, %v2046_v48 }
 0x19e   : > { %v2048_v0 = vpop.f32.mrf.mxu0  ;;  %v2220_v41 = vpop.f32.mrf.mxu1 }
 0x1a0   : > { %v2049_v4 = vpop.f32.mrf.mxu0  ;;  %v2223_v50 = vpop.f32.mrf.mxu1 }
 0x1a1   : > { %v4768_v35 = vadd.f32 %v2223_v50, %v2047_v22  ;;  %v2050_v40 = vadd.f32 %v4654_v56, %v2049_v4 }
 0x1a2   : > { %v2051_v24 = vpop.f32.mrf.mxu0  ;;  %v2225_v20 = vpop.f32.mrf.mxu1 }
 0x1a4   : > { %v2054_v10 = vpop.f32.mrf.mxu0  ;;  %v2226_v2 = vpop.f32.mrf.mxu1 }
 0x1a5   : > { %v4771_v49 = vadd.f32 %v2226_v2, %v2050_v40  ;;  %v2055_v7 = vadd.f32 %v4654_v56, %v2054_v10 }
 0x1a6   : > { %v2056_v38 = vpop.f32.mrf.mxu0  ;;  %v2228_v8 = vpop.f32.mrf.mxu1 }
 0x1a8   : > { %v2057_v25 = vpop.f32.mrf.mxu0  ;;  %v2231_v1 = vpop.f32.mrf.mxu1 }
 0x1a9   : > { %v4774_v59 = vadd.f32 %v2231_v1, %v2055_v7  ;;  %v2058_v39 = vadd.f32 %v4654_v56, %v2057_v25 }
 0x1aa   : > { %v2059_v60 = vpop.f32.mrf.mxu0  ;;  %v2233_v19 = vpop.f32.mrf.mxu1 }
 0x1ac   : > { %v2062_v58 = vpop.f32.mrf.mxu0  ;;  %v2234_v42 = vpop.f32.mrf.mxu1 }
 0x1ad   : > { %v4777_v6 = vadd.f32 %v2234_v42, %v2058_v39  ;;  %v2063_v47 = vadd.f32 %v4654_v56, %v2062_v58 }
 0x1ae   : > { %v2064_v31 = vpop.f32.mrf.mxu0  ;;  %v2236_v44 = vpop.f32.mrf.mxu1 }
 0x1b0   : > { %v2065_v11 = vpop.f32.mrf.mxu0  ;;  %v2239_v37 = vpop.f32.mrf.mxu1 }
 0x1b1   : > { %v4780_v28 = vadd.f32 %v2239_v37, %v2063_v47  ;;  %v2066_v54 = vadd.f32 %v4654_v56, %v2065_v11 }
 0x1b2   : > { %v2067_v52 = vpop.f32.mrf.mxu0  ;;  %v2241_v61 = vpop.f32.mrf.mxu1 }
 0x1b4   : > { %v2070_v15 = vpop.f32.mrf.mxu0  ;;  %v2242_v34 = vpop.f32.mrf.mxu1 }
 0x1b5   : > { %v4783_v14 = vadd.f32 %v2242_v34, %v2066_v54  ;;  %v2071_v3 = vadd.f32 %v4654_v56, %v2070_v15 }
 0x1b6   : > { %v2072_v27 = vpop.f32.mrf.mxu0  ;;  %v2244_v57 = vpop.f32.mrf.mxu1 }
 0x1b8   : > { %v2073_v9 = vpop.f32.mrf.mxu0  ;;  %v2247_v51 = vpop.f32.mrf.mxu1 }
 0x1b9   : > { %v4786_v33 = vadd.f32 %v2247_v51, %v2071_v3  ;;  %v2074_v26 = vadd.f32 %v4654_v56, %v2073_v9 }
 0x1ba   : > { %v2075_v18 = vpop.f32.mrf.mxu0  ;;  %v2249_v48 = vpop.f32.mrf.mxu1 }
 0x1bc   : > { %v2078_v0 = vpop.f32.mrf.mxu0  ;;  %v2250_v41 = vpop.f32.mrf.mxu1 }
 0x1bd   : > { %v4789_v22 = vadd.f32 %v2250_v41, %v2074_v26  ;;  %v2079_v24 = vadd.f32 %v4654_v56, %v2078_v0 }
 0x1be   : > { %v2080_v4 = vpop.f32.mrf.mxu0  ;;  %v2252_v50 = vpop.f32.mrf.mxu1 }
 0x1c0   : > { %v2081_v20 = vpop.f32.mrf.mxu0  ;;  %v2255_v40 = vpop.f32.mrf.mxu1 }
 0x1c1   : > { %v4792_v10 = vadd.f32 %v2255_v40, %v2079_v24  ;;  %v2082_v8 = vadd.f32 %v4654_v56, %v2081_v20 }
 0x1c2   : > { %v2083_v2 = vpop.f32.mrf.mxu0  ;;  %v2257_v38 = vpop.f32.mrf.mxu1 }
 0x1c4   : > { %v2086_v7 = vpop.f32.mrf.mxu0  ;;  %v2258_v25 = vpop.f32.mrf.mxu1 }
 0x1c5   : > { %v4795_v1 = vadd.f32 %v2258_v25, %v2082_v8  ;;  %v2087_v39 = vadd.f32 %v4654_v56, %v2086_v7 }
 0x1c6   : > { %v2088_v60 = vpop.f32.mrf.mxu0  ;;  %v2260_v19 = vpop.f32.mrf.mxu1 }
 0x1c8   : > { %v2089_v58 = vpop.f32.mrf.mxu0  ;;  %v2263_v42 = vpop.f32.mrf.mxu1 }
 0x1c9   : > { %v2264_v31 = vadd.f32 %v2263_v42, %v2087_v39  ;;  %v2090_v11 = vadd.f32 %v4654_v56, %v2089_v58 }
 0x1ca   : > { %v2091_v44 = vpop.f32.mrf.mxu0  ;;  %v2265_v47 = vpop.f32.mrf.mxu1 }
 0x1cc   : > { %v2094_v37 = vpop.f32.mrf.mxu0  ;;  %v2266_v52 = vpop.f32.mrf.mxu1 }
 0x1cd   : > { %v2267_v61 = vadd.f32 %v2266_v52, %v2090_v11  ;;  %v2095_v34 = vadd.f32 %v4654_v56, %v2094_v37 }
 0x1ce   : > { %v2096_v54 = vpop.f32.mrf.mxu0  ;;  %v2268_v15 = vpop.f32.mrf.mxu1 }
 0x1d0   : > { %v2097_v27 = vpop.f32.mrf.mxu0  ;;  %v2271_v57 = vpop.f32.mrf.mxu1 }
 0x1d1   : > { %v2272_v3 = vadd.f32 %v2271_v57, %v2095_v34  ;;  %v2098_v18 = vadd.f32 %v4654_v56, %v2097_v27 }
 0x1d2   : > { %v2099_v9 = vpop.f32.mrf.mxu0  ;;  %v2273_v51 = vpop.f32.mrf.mxu1 }
 0x1d4   : > { %v2102_v48 = vpop.f32.mrf.mxu0  ;;  %v2274_v26 = vpop.f32.mrf.mxu1 }
 0x1d5   : > { %v2275_v0 = vadd.f32 %v2274_v26, %v2098_v18  ;;  %v2103_v50 = vadd.f32 %v4654_v56, %v2102_v48 }
 0x1d6   : > { %v2104_v41 = vpop.f32.mrf.mxu0  ;;  %v2276_v4 = vpop.f32.mrf.mxu1 }
 0x1d8   : > { %v2105_v24 = vpop.f32.mrf.mxu0  ;;  %v2279_v20 = vpop.f32.mrf.mxu1 }
 0x1d9   : > { %v2280_v40 = vadd.f32 %v2279_v20, %v2103_v50  ;;  %v2106_v8 = vadd.f32 %v4654_v56, %v2105_v24 }
 0x1da   : > { %v2107_v2 = vpop.f32.mrf.mxu0  ;;  %v2281_v38 = vpop.f32.mrf.mxu1 }
 0x1dc   : > { %v2110_v7 = vpop.f32.mrf.mxu0  ;;  %v2282_v25 = vpop.f32.mrf.mxu1 }
 0x1dd   : > { %v2283_v60 = vadd.f32 %v2282_v25, %v2106_v8  ;;  %v2111_v58 = vadd.f32 %v4654_v56, %v2110_v7 }
 0x1de   : > { %v2112_v19 = vpop.f32.mrf.mxu0  ;;  %v2284_v39 = vpop.f32.mrf.mxu1 }
 0x1e0   : > { %v2113_v42 = vpop.f32.mrf.mxu0  ;;  %v2287_v44 = vpop.f32.mrf.mxu1 }
 0x1e1   : > { %v2288_v47 = vadd.f32 %v2287_v44, %v2111_v58  ;;  %v2114_v52 = vadd.f32 %v4654_v56, %v2113_v42 }
 0x1e2   : > { %v2115_v11 = vpop.f32.mrf.mxu0  ;;  %v2289_v37 = vpop.f32.mrf.mxu1 }
 0x1e4   : > { %v2290_v54 = vpop.f32.mrf.mxu1  ;;  %v2328_v15 = vpop.f32.mrf.mxu0 }
 0x1e5   : > { %v2291_v34 = vadd.f32 %v2290_v54, %v2114_v52 }
 0x1e6   : > { %v2292_v27 = vpop.f32.mrf.mxu1  ;;  %v2330_v57 = vpop.f32.mrf.mxu0 }
 0x1e8   : > { %v2331_v9 = vpop.f32.mrf.mxu0  ;;  %v2440_v51 = vpop.f32.mrf.mxu1 }
 0x1e9   : > { %v4805_v18 = vadd.f32 %v2440_v51, %v2264_v31 }
 0x1ea   : > { %v2333_v48 = vpop.f32.mrf.mxu0  ;;  %v2442_v26 = vpop.f32.mrf.mxu1 }
 0x1ec   : > { %v2336_v41 = vpop.f32.mrf.mxu0  ;;  %v2443_v4 = vpop.f32.mrf.mxu1 }
 0x1ed   : > { %v4807_v50 = vadd.f32 %v2443_v4, %v2267_v61 }
 0x1ee   : > { %v2338_v24 = vpop.f32.mrf.mxu0  ;;  %v2445_v20 = vpop.f32.mrf.mxu1 }
 0x1f0   : > { %v2339_v2 = vpop.f32.mrf.mxu0  ;;  %v2448_v38 = vpop.f32.mrf.mxu1 }
 0x1f1   : > { %v4809_v56 = vadd.f32 %v2448_v38, %v2272_v3 }
 0x1f2   : > { %v2341_v8 = vpop.f32.mrf.mxu0  ;;  %v2450_v7 = vpop.f32.mrf.mxu1 }
 0x1f3   : > { %v2337_v7 = vadd.f32 %v2336_v41, %v4675_v53  ;;  %v2332_v41 = vadd.f32 %v2331_v9, %v4669_v13 }
 0x1f4   : > { %v2344_v25 = vpop.f32.mrf.mxu0  ;;  %v2451_v19 = vpop.f32.mrf.mxu1 }
 0x1f5   : > { %v4811_v39 = vadd.f32 %v2451_v19, %v2275_v0 }
 0x1f6   : > { %v2346_v31 = vpop.f32.mrf.mxu0  ;;  %v2453_v58 = vpop.f32.mrf.mxu1 }
 0x1f7   : > { %v2329_v31 = vadd.f32 %v2328_v15, %v4660_v23 }
 0x1f8   : > { %v2347_v42 = vpop.f32.mrf.mxu0  ;;  %v2456_v44 = vpop.f32.mrf.mxu1 }
 0x1f9   : > { %v4813_v11 = vadd.f32 %v2456_v44, %v2280_v40 }
 0x1fa   : > { %v2349_v61 = vpop.f32.mrf.mxu0  ;;  %v2458_v37 = vpop.f32.mrf.mxu1 }
 0x1fb   : > { %v2340_v61 = vadd.f32 %v2339_v2, %v4684_v36 }
 0x1fc   : > { %v2352_v52 = vpop.f32.mrf.mxu0  ;;  %v2459_v54 = vpop.f32.mrf.mxu1 }
 0x1fd   : > { %v4815_v27 = vadd.f32 %v2459_v54, %v2283_v60  ;;  %v2353_v36 = vadd.f32 %v2352_v52, %v4705_v45 }
 0x1fe   : > { %v2354_v3 = vpop.f32.mrf.mxu0  ;;  %v2461_v57 = vpop.f32.mrf.mxu1 }
 0x200   : > { %v2355_v51 = vpop.f32.mrf.mxu0  ;;  %v2464_v48 = vpop.f32.mrf.mxu1 }
 0x201   : > { %v4817_v26 = vadd.f32 %v2464_v48, %v2288_v47  ;;  %v2356_v45 = vadd.f32 %v2355_v51, %v4714_v21 }
 0x202   : > { %v2357_v0 = vpop.f32.mrf.mxu0  ;;  %v2466_v4 = vpop.f32.mrf.mxu1 }
 0x204   : > { %v2360_v24 = vpop.f32.mrf.mxu0  ;;  %v2467_v20 = vpop.f32.mrf.mxu1 }
 0x205   : > { %v4819_v38 = vadd.f32 %v2467_v20, %v2291_v34 }
 0x206   : > { %v2362_v40 = vpop.f32.mrf.mxu0  ;;  %v2469_v8 = vpop.f32.mrf.mxu1 }
 0x207   : > { %v2345_v8 = vadd.f32 %v2344_v25, %v4690_v17  ;;  %v2348_v17 = vadd.f32 %v2347_v42, %v4699_v29  ;;  %v2361_v29 = vadd.f32 %v2360_v24, %v4720_v62 }
 0x208   : > { %v4822_v19 = vpop.f32.mrf.mxu0  ;;  %v3186_v60 = vpop.f32.mrf.mxu1 }
 0x209   : > { %v2514_v58 = vadd.f32 %v3186_v60, %v2337_v7  ;;  %v2364_v62 = vadd.f32 %v4822_v19, %v4729_v12 }
 0x20a   : > { %v2365_v44 = vpop.f32.mrf.mxu0  ;;  %v2505_v47 = vpop.f32.mrf.mxu1 }
 0x20b   : > { %v2650_v37 = vmax.f32 %v2514_v58, 0.0  ;;  %v2506_v54 = vadd.f32 %v2505_v47, %v2329_v31 }
 0x20c   : > { %v2368_v53 = vpop.f32.mrf.mxu0  ;;  %v3187_v34 = vpop.f32.mrf.mxu1 }
 0x20d   : > { %v3114_v23 = vpack.c.bf16 %v2650_v37, %v2650_v37  ;;  %v2648_v15 = vmax.f32 %v2506_v54, 0.0  ;;  %v2517_v3 = vadd.f32 %v3187_v34, %v2340_v61  ;;  %v2369_v21 = vadd.f32 %v2368_v53, %v4735_v55 }
 0x20e   : > { %v2370_v57 = vpop.f32.mrf.mxu0  ;;  %v2508_v48 = vpop.f32.mrf.mxu1 }
 0x20f   : > { %2831 = vst.msk [vmem:[%s4830_s5 + $0x8] sm:$0xf] %vm2828_vm9, %v3114_v23  ;;  %v3112_v2 = vpack.c.bf16 %v2648_v15, %v2648_v15  ;;  %v2651_v0 = vmax.f32 %v2517_v3, 0.0  ;;  %v2509_v4 = vadd.f32 %v2508_v48, %v2332_v41 }
 0x210   : > { %v2371_v20 = vpop.f32.mrf.mxu0  ;;  %v3190_v40 = vpop.f32.mrf.mxu1 }
 0x211   : > { %2829 = vst.msk [vmem:[%s4830_s5] sm:$0xf] %vm2828_vm9, %v3112_v2  ;;  %v3115_v13 = vpack.c.bf16 %v2651_v0, %v2651_v0  ;;  %v2649_v9 = vmax.f32 %v2509_v4, 0.0  ;;  %v2530_v7 = vadd.f32 %v3190_v40, %v2353_v36  ;;  %v2372_v55 = vadd.f32 %v2371_v20, %v4743_v46 }
 0x212   : > { %v2373_v60 = vpop.f32.mrf.mxu0  ;;  %v2521_v31 = vpop.f32.mrf.mxu1 }
 0x213   : > { %2832 = vst.msk [vmem:[%s4830_s5 + $0xc] sm:$0xf] %vm2828_vm9, %v3115_v13  ;;  %v3113_v52 = vpack.c.bf16 %v2649_v9, %v2649_v9  ;;  %v2654_v58 = vmax.f32 %v2530_v7, 0.0  ;;  %v2522_v44 = vadd.f32 %v2521_v31, %v2345_v8 }
 0x214   : > { %v2376_v47 = vpop.f32.mrf.mxu0  ;;  %v3191_v61 = vpop.f32.mrf.mxu1 }
 0x215   : > { %2830 = vst.msk [vmem:[%s4830_s5 + $0x4] sm:$0xf] %vm2828_vm9, %v3113_v52  ;;  %v3118_v25 = vpack.c.bf16 %v2654_v58, %v2654_v58  ;;  %v2652_v37 = vmax.f32 %v2522_v44, 0.0  ;;  %v2533_v54 = vadd.f32 %v3191_v61, %v2356_v45  ;;  %v2377_v12 = vadd.f32 %v2376_v47, %v4748_v16 }
 0x216   : > { %v2378_v34 = vpop.f32.mrf.mxu0  ;;  %v2524_v41 = vpop.f32.mrf.mxu1 }
 0x217   : > { %2835 = vst.msk [vmem:[%s4830_s5 + $0x18] sm:$0xf] %vm2828_vm9, %v3118_v25  ;;  %v3116_v51 = vpack.c.bf16 %v2652_v37, %v2652_v37  ;;  %v2655_v23 = vmax.f32 %v2533_v54, 0.0  ;;  %v2525_v15 = vadd.f32 %v2524_v41, %v2348_v17 }
 0x218   : > { %v2379_v3 = vpop.f32.mrf.mxu0  ;;  %v3194_v57 = vpop.f32.mrf.mxu1 }
 0x219   : > { %2833 = vst.msk [vmem:[%s4830_s5 + $0x10] sm:$0xf] %vm2828_vm9, %v3116_v51  ;;  %v3119_v42 = vpack.c.bf16 %v2655_v23, %v2655_v23  ;;  %v2653_v48 = vmax.f32 %v2525_v15, 0.0  ;;  %v2546_v36 = vadd.f32 %v3194_v57, %v2369_v21  ;;  %v2380_v16 = vadd.f32 %v2379_v3, %v4753_v30 }
 0x21a   : > { %v2381_v2 = vpop.f32.mrf.mxu0  ;;  %v2537_v0 = vpop.f32.mrf.mxu1 }
 0x21b   : > { %2836 = vst.msk [vmem:[%s4830_s5 + $0x1c] sm:$0xf] %vm2828_vm9, %v3119_v42  ;;  %v3117_v53 = vpack.c.bf16 %v2653_v48, %v2653_v48  ;;  %v2658_v4 = vmax.f32 %v2546_v36, 0.0  ;;  %v2538_v40 = vadd.f32 %v2537_v0, %v2361_v29 }
 0x21c   : > { %v2384_v8 = vpop.f32.mrf.mxu0  ;;  %v3195_v13 = vpop.f32.mrf.mxu1 }
 0x21d   : > { %2834 = vst.msk [vmem:[%s4830_s5 + $0x14] sm:$0xf] %vm2828_vm9, %v3117_v53  ;;  %v3122_v24 = vpack.c.bf16 %v2658_v4, %v2658_v4  ;;  %v2656_v9 = vmax.f32 %v2538_v40, 0.0  ;;  %v2549_v7 = vadd.f32 %v3195_v13, %v2372_v55  ;;  %v2385_v20 = vadd.f32 %v2384_v8, %v4756_v32 }
 0x21e   : > { %v2386_v60 = vpop.f32.mrf.mxu0  ;;  %v2540_v31 = vpop.f32.mrf.mxu1 }
 0x21f   : > { %2839 = vst.msk [vmem:[%s4830_s5 + $0x28] sm:$0xf] %vm2828_vm9, %v3122_v24  ;;  %v3120_v46 = vpack.c.bf16 %v2656_v9, %v2656_v9  ;;  %v2659_v45 = vmax.f32 %v2549_v7, 0.0  ;;  %v2541_v52 = vadd.f32 %v2540_v31, %v2364_v62 }
 0x220   : > { %v2387_v58 = vpop.f32.mrf.mxu0  ;;  %v3198_v44 = vpop.f32.mrf.mxu1 }
 0x221   : > { %2837 = vst.msk [vmem:[%s4830_s5 + $0x20] sm:$0xf] %vm2828_vm9, %v3120_v46  ;;  %v3123_v19 = vpack.c.bf16 %v2659_v45, %v2659_v45  ;;  %v2657_v61 = vmax.f32 %v2541_v52, 0.0  ;;  %v2562_v17 = vadd.f32 %v3198_v44, %v2385_v20  ;;  %v2388_v32 = vadd.f32 %v2387_v58, %v4759_v63 }
 0x222   : > { %v2389_v25 = vpop.f32.mrf.mxu0  ;;  %v2553_v37 = vpop.f32.mrf.mxu1 }
 0x223   : > { %2840 = vst.msk [vmem:[%s4830_s5 + $0x2c] sm:$0xf] %vm2828_vm9, %v3123_v19  ;;  %v3121_v54 = vpack.c.bf16 %v2657_v61, %v2657_v61  ;;  %v2662_v34 = vmax.f32 %v2562_v17, 0.0  ;;  %v2554_v41 = vadd.f32 %v2553_v37, %v2377_v12 }
 0x224   : > { %v2392_v21 = vpop.f32.mrf.mxu0  ;;  %v3199_v51 = vpop.f32.mrf.mxu1 }
 0x225   : > { %2838 = vst.msk [vmem:[%s4830_s5 + $0x24] sm:$0xf] %vm2828_vm9, %v3121_v54  ;;  %v3126_v47 = vpack.c.bf16 %v2662_v34, %v2662_v34  ;;  %v2660_v23 = vmax.f32 %v2554_v41, 0.0  ;;  %v2565_v15 = vadd.f32 %v3199_v51, %v2388_v32  ;;  %v2393_v30 = vadd.f32 %v2392_v21, %v4762_v43 }
 0x226   : > { %v2394_v57 = vpop.f32.mrf.mxu0  ;;  %v2556_v29 = vpop.f32.mrf.mxu1 }
 0x227   : > { %2843 = vst.msk [vmem:[%s4830_s5 + $0x38] sm:$0xf] %vm2828_vm9, %v3126_v47  ;;  %v3124_v42 = vpack.c.bf16 %v2660_v23, %v2660_v23  ;;  %v2663_v63 = vmax.f32 %v2565_v15, 0.0  ;;  %v2557_v48 = vadd.f32 %v2556_v29, %v2380_v16 }
 0x228   : > { %v2395_v36 = vpop.f32.mrf.mxu0  ;;  %v3202_v2 = vpop.f32.mrf.mxu1 }
 0x229   : > { %2841 = vst.msk [vmem:[%s4830_s5 + $0x30] sm:$0xf] %vm2828_vm9, %v3124_v42  ;;  %v3127_v3 = vpack.c.bf16 %v2663_v63, %v2663_v63  ;;  %v2661_v0 = vmax.f32 %v2557_v48, 0.0  ;;  %v2396_v62 = vadd.f32 %v2395_v36, %v4765_v5 }
 0x22a   : > { %v2397_v55 = vpop.f32.mrf.mxu0  ;;  %v2569_v53 = vpop.f32.mrf.mxu1 }
 0x22b   : > { %2844 = vst.msk [vmem:[%s4830_s5 + $0x3c] sm:$0xf] %vm2828_vm9, %v3127_v3  ;;  %v3125_v4 = vpack.c.bf16 %v2661_v0, %v2661_v0  ;;  %v2570_v40 = vadd.f32 %v2569_v53, %v2393_v30 }
 0x22c   : > { %v2400_v8 = vpop.f32.mrf.mxu0  ;;  %v3203_v13 = vpop.f32.mrf.mxu1 }
 0x22d   : > { %2842 = vst.msk [vmem:[%s4830_s5 + $0x34] sm:$0xf] %vm2828_vm9, %v3125_v4  ;;  %v2664_v24 = vmax.f32 %v2570_v40, 0.0  ;;  %v2401_v9 = vadd.f32 %v2400_v8, %v4768_v35 }
 0x22e   : > { %v2402_v7 = vpop.f32.mrf.mxu0  ;;  %v2572_v43 = vpop.f32.mrf.mxu1 }
 0x22f   : > { %v3128_v60 = vpack.c.bf16 %v2664_v24, %v2664_v24  ;;  %v2578_v31 = vadd.f32 %v3202_v2, %v2401_v9  ;;  %v2573_v46 = vadd.f32 %v2572_v43, %v2396_v62 }
 0x230   : > { %v2403_v20 = vpop.f32.mrf.mxu0  ;;  %v3206_v45 = vpop.f32.mrf.mxu1 }
 0x231   : > { %2845 = vst.msk [vmem:[%s4830_s5 + $0x40] sm:$0xf] %vm2828_vm9, %v3128_v60  ;;  %v2666_v52 = vmax.f32 %v2578_v31, 0.0  ;;  %v2665_v58 = vmax.f32 %v2573_v46, 0.0  ;;  %v2404_v44 = vadd.f32 %v2403_v20, %v4771_v49 }
 0x232   : > { %v2405_v12 = vpop.f32.mrf.mxu0  ;;  %v2585_v5 = vpop.f32.mrf.mxu1 }
 0x233   : > { %v3130_v19 = vpack.c.bf16 %v2666_v52, %v2666_v52  ;;  %v3129_v35 = vpack.c.bf16 %v2665_v58, %v2665_v58  ;;  %v2581_v61 = vadd.f32 %v3203_v13, %v2404_v44 }
 0x234   : > { %v2408_v17 = vpop.f32.mrf.mxu0  ;;  %v3207_v25 = vpop.f32.mrf.mxu1 }
 0x235   : > { %2847 = vst.msk [vmem:[%s4830_s5 + $0x48] sm:$0xf] %vm2828_vm9, %v3130_v19  ;;  %2846 = vst.msk [vmem:[%s4830_s5 + $0x44] sm:$0xf] %vm2828_vm9, %v3129_v35  ;;  %v2667_v37 = vmax.f32 %v2581_v61, 0.0  ;;  %v2409_v54 = vadd.f32 %v2408_v17, %v4774_v59 }
 0x236   : > { %v2410_v32 = vpop.f32.mrf.mxu0  ;;  %v2588_v34 = vpop.f32.mrf.mxu1 }
 0x237   : > { %v3131_v41 = vpack.c.bf16 %v2667_v37, %v2667_v37  ;;  %v2586_v49 = vadd.f32 %v2585_v5, %v2409_v54 }
 0x238   : > { %v2411_v21 = vpop.f32.mrf.mxu0  ;;  %v4889_v51 = vpop.f32.mrf.mxu1 }
 0x239   : > { %2848 = vst.msk [vmem:[%s4830_s5 + $0x4c] sm:$0xf] %vm2828_vm9, %v3131_v41  ;;  %v2668_v16 = vmax.f32 %v2586_v49, 0.0  ;;  %v2412_v47 = vadd.f32 %v2411_v21, %v4777_v6 }
 0x23a   : > { %v2413_v23 = vpop.f32.mrf.mxu0  ;;  %v2601_v15 = vpop.f32.mrf.mxu1 }
 0x23b   : > { %v3132_v57 = vpack.c.bf16 %v2668_v16, %v2668_v16  ;;  %v2589_v29 = vadd.f32 %v2588_v34, %v2412_v47 }
 0x23c   : > { %v2416_v42 = vpop.f32.mrf.mxu0  ;;  %v4894_v59 = vpop.f32.mrf.mxu1 }
 0x23d   : > { %2849 = vst.msk [vmem:[%s4830_s5 + $0x50] sm:$0xf] %vm2828_vm9, %v3132_v57  ;;  %v2669_v63 = vmax.f32 %v2589_v29, 0.0  ;;  %v2417_v48 = vadd.f32 %v2416_v42, %v4780_v28 }
 0x23e   : > { %v2418_v36 = vpop.f32.mrf.mxu0  ;;  %v2604_v2 = vpop.f32.mrf.mxu1 }
 0x23f   : > { %v3133_v30 = vpack.c.bf16 %v2669_v63, %v2669_v63  ;;  %v2594_v3 = vadd.f32 %v3206_v45, %v2417_v48 }
 0x240   : > { %v2419_v0 = vpop.f32.mrf.mxu0  ;;  %v3214_v6 = vpop.f32.mrf.mxu1 }
 0x241   : > { %2850 = vst.msk [vmem:[%s4830_s5 + $0x54] sm:$0xf] %vm2828_vm9, %v3133_v30  ;;  %v2670_v55 = vmax.f32 %v2594_v3, 0.0  ;;  %v2420_v53 = vadd.f32 %v2419_v0, %v4783_v14  ;;  %v2626_v4 = vadd.f32 %v3214_v6, %v4809_v56 }
 0x242   : > { %v2421_v40 = vpop.f32.mrf.mxu0  ;;  %v2617_v8 = vpop.f32.mrf.mxu1 }
 0x243   : > { %v3134_v13 = vpack.c.bf16 %v2670_v55, %v2670_v55  ;;  %v2597_v62 = vadd.f32 %v3207_v25, %v2420_v53  ;;  %v2678_v28 = vmax.f32 %v2626_v4, 0.0  ;;  %v2618_v24 = vadd.f32 %v2617_v8, %v4805_v18 }
 0x244   : > { %v2424_v9 = vpop.f32.mrf.mxu0  ;;  %v3215_v7 = vpop.f32.mrf.mxu1 }
 0x245   : > { %2851 = vst.msk [vmem:[%s4830_s5 + $0x58] sm:$0xf] %vm2828_vm9, %v3134_v13  ;;  %v2671_v43 = vmax.f32 %v2597_v62, 0.0  ;;  %v3142_v60 = vpack.c.bf16 %v2678_v28, %v2678_v28  ;;  %v2676_v31 = vmax.f32 %v2618_v24, 0.0  ;;  %v2425_v14 = vadd.f32 %v2424_v9, %v4786_v33 }
 0x246   : > { %v2629_v56 = vadd.f32 %v3215_v7, %v4811_v39  ;;  %v2426_v46 = vpop.f32.mrf.mxu0  ;;  %v2620_v20 = vpop.f32.mrf.mxu1 }
 0x247   : > { %v3135_v45 = vpack.c.bf16 %v2671_v43, %v2671_v43  ;;  %2859 = vst.msk [vmem:[%s4830_s5 + $0x78] sm:$0xf] %vm2828_vm9, %v3142_v60  ;;  %v3140_v52 = vpack.c.bf16 %v2676_v31, %v2676_v31  ;;  %v2602_v18 = vadd.f32 %v2601_v15, %v2425_v14  ;;  %v2621_v58 = vadd.f32 %v2620_v20, %v4807_v50 }
 0x248   : > { %v2679_v44 = vmax.f32 %v2629_v56, 0.0  ;;  %v2427_v12 = vpop.f32.mrf.mxu0  ;;  %v3218_v5 = vpop.f32.mrf.mxu1 }
 0x249   : > { %2852 = vst.msk [vmem:[%s4830_s5 + $0x5c] sm:$0xf] %vm2828_vm9, %v3135_v45  ;;  %2857 = vst.msk [vmem:[%s4830_s5 + $0x70] sm:$0xf] %vm2828_vm9, %v3140_v52  ;;  %v2672_v33 = vmax.f32 %v2602_v18, 0.0  ;;  %v2677_v39 = vmax.f32 %v2621_v58, 0.0  ;;  %v2428_v19 = vadd.f32 %v2427_v12, %v4789_v22  ;;  %v2642_v35 = vadd.f32 %v3218_v5, %v4817_v26 }
 0x24a   : > { %v3143_v61 = vpack.c.bf16 %v2679_v44, %v2679_v44  ;;  %v2429_v17 = vpop.f32.mrf.mxu0  ;;  %v2633_v25 = vpop.f32.mrf.mxu1 }
 0x24b   : > { %v3136_v50 = vpack.c.bf16 %v2672_v33, %v2672_v33  ;;  %v3141_v37 = vpack.c.bf16 %v2677_v39, %v2677_v39  ;;  %v2605_v54 = vadd.f32 %v2604_v2, %v2428_v19  ;;  %v2682_v32 = vmax.f32 %v2642_v35, 0.0 }
 0x24c   : > { %2860 = vst.msk [vmem:[%s4830_s5 + $0x7c] sm:$0xf] %vm2828_vm9, %v3143_v61  ;;  %v2634_v34 = vadd.f32 %v2633_v25, %v4813_v11  ;;  %v2432_v41 = vpop.f32.mrf.mxu0  ;;  %v3219_v49 = vpop.f32.mrf.mxu1 }
 0x24d   : > { %2853 = vst.msk [vmem:[%s4830_s5 + $0x60] sm:$0xf] %vm2828_vm9, %v3136_v50  ;;  %2858 = vst.msk [vmem:[%s4830_s5 + $0x74] sm:$0xf] %vm2828_vm9, %v3141_v37  ;;  %v2673_v22 = vmax.f32 %v2605_v54, 0.0  ;;  %v3146_v26 = vpack.c.bf16 %v2682_v32, %v2682_v32  ;;  %v2433_v21 = vadd.f32 %v2432_v41, %v4792_v10  ;;  %v2645_v16 = vadd.f32 %v3219_v49, %v4819_v38 }
 0x24e   : > { %v2680_v47 = vmax.f32 %v2634_v34, 0.0  ;;  %v2434_v23 = vpop.f32.mrf.mxu0  ;;  %v2636_v15 = vpop.f32.mrf.mxu1 }
 0x24f   : > { %v3137_v57 = vpack.c.bf16 %v2673_v22, %v2673_v22  ;;  %2863 = vst.msk [vmem:[%s4830_s5 + $0x88] sm:$0xf] %vm2828_vm9, %v3146_v26  ;;  %v2610_v11 = vadd.f32 %v4889_v51, %v2433_v21  ;;  %v2683_v29 = vmax.f32 %v2645_v16, 0.0  ;;  %v2637_v42 = vadd.f32 %v2636_v15, %v4815_v27 }
 0x250   : > { %v3144_v63 = vpack.c.bf16 %v2680_v47, %v2680_v47  ;;  %v2435_v48 = vpop.f32.mrf.mxu0 }
 0x251   : > { %2854 = vst.msk [vmem:[%s4830_s5 + $0x64] sm:$0xf] %vm2828_vm9, %v3137_v57  ;;  %v2674_v10 = vmax.f32 %v2610_v11, 0.0  ;;  %v3147_v38 = vpack.c.bf16 %v2683_v29, %v2683_v29  ;;  %v2681_v36 = vmax.f32 %v2637_v42, 0.0  ;;  %v2436_v2 = vadd.f32 %v2435_v48, %v4795_v1 }
 0x252   : > { %2861 = vst.msk [vmem:[%s4830_s5 + $0x80] sm:$0xf] %vm2828_vm9, %v3144_v63  ;;  %v2437_v30 = vpop.f32.mrf.mxu0 }
 0x253   : > { %v3138_v3 = vpack.c.bf16 %v2674_v10, %v2674_v10  ;;  %2864 = vst.msk [vmem:[%s4830_s5 + $0x8c] sm:$0xf] %vm2828_vm9, %v3147_v38  ;;  %v3145_v51 = vpack.c.bf16 %v2681_v36, %v2681_v36  ;;  %v2613_v0 = vadd.f32 %v4894_v59, %v2436_v2 }
 0x255   : > { %2855 = vst.msk [vmem:[%s4830_s5 + $0x68] sm:$0xf] %vm2828_vm9, %v3138_v3  ;;  %2862 = vst.msk [vmem:[%s4830_s5 + $0x84] sm:$0xf] %vm2828_vm9, %v3145_v51  ;;  %v2675_v27 = vmax.f32 %v2613_v0, 0.0 }
 0x257   : > { %v3139_v6 = vpack.c.bf16 %v2675_v27, %v2675_v27 }
 0x259   : > { %2856 = vst.msk [vmem:[%s4830_s5 + $0x6c] sm:$0xf] %vm2828_vm9, %v3139_v6 }
 0x25a PF: > { %s14_s17 = sadd.s32 1, %s3401_s17   ;;  %s5012_s15 = smov %s3397_s16 }
 0x25b   : > { %p11_p5 = scmp.ge.s32.totalorder %s14_s17, 4   ;;  %s5013_s16 = smov %s5015_s18 }
 0x25d   :  { %13 = sbr.rel (!%p11_p5) target bundleno = 2 (0x2), region = 69 }

// kernel: merge_forward.3
= control target key start
LH: loop header
LB: loop body
LE: loop exit
PB: predicated region body
PF: predicated region fallthrough
CT: control target
= control target key end

     0   :  { %s2483_s15 = smov 0   ;;  %s2485_s16 = smov 0   ;;  %s3605_s0 = inlined_call_operand.vmem [shape: bf16[2,432,48], index: 0, kind: input, shape index: {}, may-alias: {0,1}]   ;;  %s3606_s1 = inlined_call_operand.vmem [shape: bf16[2,432,48], index: 1, kind: input, shape index: {}, may-alias: {0,1}]   ;;  %s3607_s2 = inlined_call_operand.vmem [shape: bf16[432,64], index: 2, kind: input, shape index: {}]   ;;  %s3608_s3 = inlined_call_operand.vmem [shape: f32[1,64], index: 3, kind: input, shape index: {}]   ;;  %s3609_s4 = inlined_call_operand.vmem [shape: f32[2,288,64], index: 4, kind: output, shape index: {}]  }
   0x1   :  { %s2487_s17 = smov 0  }
   0x2 LB: > { %s26_s18 = sadd.s32 1, %s2444_s16  ;;  %p2263_p0 = scmp.ge.s32.totalorder %s2448_s17, 1  ;;  %s2448_s17 = sphi %s2487_s17, %s14_s17   ;;  %s2444_s16 = sphi %s2485_s16, %s3611_s16   ;;  %s2440_s15 = sphi %s2483_s15, %s3610_s15  }
   0x3   : > { %p28_p1 = scmp.ge.s32.totalorder %s26_s18, 2  ;;  %p216_p2 = scmp.lt.s32.totalorder %s2448_s17, 3 }
   0x5   : > { %s3613_s18 = smov (%p28_p1, %s26_s18), 0  ;;  %p217_p3 = pnand %p2263_p0, %p216_p2 }
   0x6   : > { %p270_p4 = scmp.lt.s32.totalorder (!%p217_p3), %s2440_s15, 1  ;;  %s2451_s29 = smov (!%p217_p3), 32  }
   0x7   : > { %220 = sbr.rel (%p217_p3) target bundleno = 589 (0x24d), region = 36  ;;  %s2452_s6 = smov (!%p217_p3), 96  }
   0x8   : > { %s2453_s7 = smov (!%p217_p3), 16   ;;  %s2454_s10 = smov (!%p217_p3), 64  }
   0x9   : > { %s2455_s19 = smov (!%p217_p3), 112   ;;  %s2456_s20 = smov (!%p217_p3), 48  }
   0xa   : > { %s2457_s8 = smov (!%p217_p3), 80  }
   0xc   : > { %s3615_s15 = smov (!%p270_p4, %s2440_s15), 1  ;;  %v2450_v0 = vmov 0   ;;  %v2382_v1 = vld [vmem:[%s3607_s2 + $0x38] sm:$0xff]   ;;  %v2383_v2 = vld [vmem:[%s3607_s2 + $0x30] sm:$0xff]   ;;  %vm871_vm0 = vcmask 1045504   ;;  %v2384_v3 = vld [vmem:[%s3607_s2 + $0x28] sm:$0xff]  }
   0xd   : > { %1728 = vmatprep.subr.bf16.mxu0 %v2450_v0  ;;  %1905 = vmatprep.subr.bf16.mxu1 %v2450_v0  ;;  %s2338_s21 = smul.u32 216, %s3615_s15  ;;  %vm752_vm1 = vsmask.f32 6400  ;;  %vm640_vm2 = vcmask 1046528   ;;  %vm455_vm3 = vsmask.f32 7424 }
   0xe   : > { %1729 = vmatpush1.bf16.msra.mxu0 %v2382_v1  ;;  %v2385_v20 = vld [vmem:[%s3607_s2 + $0x20] sm:$0xff]   ;;  %v2387_v41 = vld [vmem:[%s3607_s2 + $0x18] sm:$0xff]   ;;  %v2388_v48 = vld [vmem:[%s3607_s2 + $0x10] sm:$0xff]   ;;  %vm983_vm4 = vsmask.f32 5376  ;;  %vm1100_vm5 = vcmask 1044480  }
   0xf   : > { %s2517_s26 = scalar_lea.vmem %s3605_s0, %s2338_s21  ;;  %1730 = vmatprep.subr.bf16.mxu0 %v2450_v0  ;;  %v2389_v49 = vld [vmem:[%s3607_s2 + $0xb8] sm:$0xff]   ;;  %v2390_v57 = vld [vmem:[%s3607_s2 + $0x8] sm:$0xff]   ;;  %v2392_v58 = vld [vmem:[%s3607_s2 + $0xb0] sm:$0xff]   ;;  %vm1138_vm6 = vcmask 392192   ;;  %s2337_s23 = sadd.s32 144, %s2338_s21  ;;  %vm1230_vm7 = vcmask 130048  }
  0x10   : > { %v2524_v4 = vld [vmem:[%s2517_s26 + $0x10] sm:$0xff]   ;;  %v2527_v5 = vld [vmem:[%s2517_s26 + $0x18] sm:$0xff]   ;;  %v2532_v8 = vld [vmem:[%s2517_s26] sm:$0xff]   ;;  %1906 = vmatpush1.bf16.msra.mxu1 %v2389_v49  ;;  %s2884_s27 = scalar_lea.vmem %s3606_s1, %s2337_s23  ;;  %vm1267_vm8 = vcmask 523264   ;;  %vm1304_vm9 = vcmask 916480   ;;  %vm1175_vm10 = vcmask 785408  }
  0x11   : > { %v873_v6 = vrot.slane %v2524_v4, 2  ;;  %v875_v7 = vrot.slane %v2527_v5, 2  ;;  %v2535_v9 = vld [vmem:[%s2517_s26 + $0x8] sm:$0xff]   ;;  %v644_v10 = vrot.slane %v2524_v4, 1  ;;  %v2540_v11 = vshll.u32 %v2524_v4, 16  ;;  %v2579_v34 = vld [vmem:[%s2517_s26 + $0x20] sm:$0xff]   ;;  %1907 = vmatprep.subr.bf16.mxu1 %v2450_v0 }
  0x12   : > { %1731 = vmatpush1.bf16.msra.mxu0 %v2383_v2  ;;  %v2543_v12 = vshrl.u32 %v2524_v4, 16  ;;  %v641_v14 = vrot.slane %v2532_v8, 1  ;;  %v642_v15 = vrot.slane %v2535_v9, 1  ;;  %v464_v16 = vshll.u32 %v2535_v9, 16  ;;  %v2394_v60 = vld [vmem:[%s3607_s2 + $0xa8] sm:$0xff]   ;;  %v2393_v1 = vld [vmem:[%s3607_s2] sm:$0xff]  }
  0x13   : > { %1732 = vmatprep.subr.bf16.mxu0 %v2450_v0  ;;  %v2548_v13 = vsel %vm871_vm0, %v873_v6, %v875_v7  ;;  %v468_v17 = vshrl.u32 %v2535_v9, 16  ;;  %v757_v19 = vrot.slane %v2540_v11, 2  ;;  %v872_v26 = vrot.slane %v2535_v9, 2 }
  0x14   : > { %947 = vrot.lane.b32.xlu1 %v2548_v13, %s2451_s29  ;;  %v756_v18 = vrot.slane %v2543_v12, 1  ;;  %v643_v21 = vsel %vm640_vm2, %v641_v14, %v642_v15  ;;  %v645_v22 = vsel %vm640_vm2, %v642_v15, %v644_v10  ;;  %v754_v23 = vrot.slane %v464_v16, 2  ;;  %1908 = vmatpush1.bf16.msra.mxu1 %v2392_v58 }
  0x15   : > { %678 = vrot.lane.b32.xlu0 %v643_v21, %s2452_s6  ;;  %v753_v24 = vrot.slane %v468_v17, 1  ;;  %v457_v27 = vshrl.u32 %v2532_v8, 16  ;;  %v459_v28 = vshll.u32 %v2532_v8, 16  ;;  %v2571_v29 = vshll.u32 %v2527_v5, 16  ;;  %1909 = vmatprep.subr.bf16.mxu1 %v2450_v0 }
  0x16   : > { %1733 = vmatpush1.bf16.msra.mxu0 %v2384_v3  ;;  %v758_v25 = vor.u32 %v757_v19, %v756_v18  ;;  %v2574_v30 = vshrl.u32 %v2527_v5, 16  ;;  %v646_v32 = vrot.slane %v2527_v5, 1  ;;  %v466_v33 = vrot.slane %v464_v16, 1  ;;  %v2396_v3 = vld [vmem:[%s3607_s2 + $0xa0] sm:$0xff]   ;;  %v2663_v16 = vld [vmem:[%s2517_s26 + $0x28] sm:$0xff]  }
  0x17   : > { %1734 = vmatprep.subr.bf16.mxu0 %v2450_v0  ;;  %v755_v31 = vor.u32 %v754_v23, %v753_v24  ;;  %v461_v35 = vrot.slane %v459_v28, 1  ;;  %v984_v36 = vrot.slane %v2543_v12, 2  ;;  %v985_v37 = vrot.slane %v2540_v11, 3 }
  0x18   : > { %680 = vrot.lane.b32.xlu1 %v645_v22, %s2452_s6  ;;  %v760_v38 = vrot.slane %v2574_v30, 1  ;;  %v761_v40 = vrot.slane %v2571_v29, 2  ;;  %v874_v42 = vsel %vm871_vm0, %v872_v26, %v873_v6  ;;  %v987_v44 = vrot.slane %v2574_v30, 2  ;;  %1910 = vmatpush1.bf16.msra.mxu1 %v2394_v60  ;;  %v2399_v26 = vld [vmem:[%s3607_s2 + $0x68] sm:$0xff]  }
  0x19   : > { %716 = vrot.lane.b32.xlu0 %v645_v22, %s2453_s7  ;;  %v759_v39 = vsel %vm752_vm1, %v755_v31, %v758_v25  ;;  %v462_v43 = vor.u32 %v461_v35, %v457_v27  ;;  %v988_v45 = vrot.slane %v2571_v29, 3  ;;  %v2596_v46 = vshll.u32 %v2579_v34, 16  ;;  %1911 = vmatprep.subr.bf16.mxu1 %v2450_v0  ;;  %v2717_v35 = vld [vmem:[%s2517_s26 + $0x30] sm:$0xff]   ;;  %v2410_v60 = vld [vmem:[%s3607_s2 + $0xc8] sm:$0xff]  }
  0x1a   : > { %1735 = vmatpush1.bf16.msra.mxu0 %v2385_v20  ;;  %v2599_v47 = vshrl.u32 %v2579_v34, 16  ;;  %v2608_v51 = vor.u32 %v761_v40, %v760_v38  ;;  %v2615_v52 = vsel %vm640_vm2, %v644_v10, %v646_v32  ;;  %v986_v53 = vor.u32 %v985_v37, %v984_v36  ;;  %v2397_v20 = vld [vmem:[%s3607_s2 + $0x70] sm:$0xff]   ;;  %v2402_v36 = vld [vmem:[%s3607_s2 + $0x60] sm:$0xff]  }
  0x1b   : > { %1736 = vmatprep.subr.bf16.mxu0 %v2450_v0  ;;  %v467_v50 = vsel %vm455_vm3, %v462_v43, %v466_v33  ;;  %v989_v54 = vor.u32 %v988_v45, %v987_v44  ;;  %v992_v56 = vrot.slane %v2596_v46, 3  ;;  %v470_v62 = vor.u32 %v468_v17, %v466_v33  ;;  %v2403_v33 = vld [vmem:[%s3607_s2 + $0x88] sm:$0xff]   ;;  %v2404_v43 = vld [vmem:[%s3607_s2 + $0x58] sm:$0xff]  }
  0x1c   : > { %835 = vrot.lane.b32.xlu1 %v759_v39, %s2454_s10  ;;  %v991_v55 = vrot.slane %v2599_v47, 2  ;;  %v763_v59 = vsel %vm752_vm1, %v758_v25, %v2608_v51  ;;  %v474_v63 = vrot.slane %v2540_v11, 1  ;;  %v877_v10 = vrot.slane %v2579_v34, 2  ;;  %v2395_v11 = vld [vmem:[%s3607_s2 + $0x78] sm:$0xff]   ;;  %1912 = vmatpush1.bf16.msra.mxu1 %v2396_v3 }
  0x1d   : > { %909 = vrot.lane.b32.xlu0 %v874_v42, %s2455_s19  ;;  %v990_v61 = vsel %vm983_vm4, %v986_v53, %v989_v54  ;;  %v648_v15 = vrot.slane %v2579_v34, 1  ;;  %v764_v18 = vrot.slane %v2599_v47, 1  ;;  %v765_v19 = vrot.slane %v2596_v46, 2  ;;  %1913 = vmatprep.subr.bf16.mxu1 %v2450_v0 }
  0x1e   : > { %1737 = vmatpush1.bf16.msra.mxu0 %v2387_v41  ;;  %v2644_v2 = vor.u32 %v992_v56, %v991_v55  ;;  %v475_v6 = vsel %vm455_vm3, %v470_v62, %v474_v63  ;;  %v878_v17 = vsel %vm871_vm0, %v875_v7, %v877_v10  ;;  %v478_v7 = vor.u32 %v2543_v12, %v474_v63  ;;  %v2401_v12 = vld [vmem:[%s3607_s2 + $0x90] sm:$0xff]   ;;  %v2405_v41 = vld [vmem:[%s3607_s2 + $0x80] sm:$0xff]  }
  0x1f   : > { %1738 = vmatprep.subr.bf16.mxu0 %v2450_v0  ;;  %v649_v21 = vsel %vm640_vm2, %v646_v32, %v648_v15  ;;  %v482_v22 = vrot.slane %v2571_v29, 1  ;;  %v2688_v23 = vshrl.u32 %v2663_v16, 16  ;;  %v766_v24 = vor.u32 %v765_v19, %v764_v18  ;;  %v2412_v63 = vld [vmem:[%s3607_s2 + $0xc0] sm:$0xff]  }
  0x20   : > { %604 = vrot.lane.b32.xlu1 %v467_v50, %s2456_s20  ;;  %v994_v14 = vsel %vm983_vm4, %v989_v54, %v2644_v2  ;;  %v2693_v25 = vshll.u32 %v2663_v16, 16  ;;  %v879_v28 = vrot.slane %v2663_v16, 2  ;;  %v2735_v42 = vshrl.u32 %v2717_v35, 16  ;;  %v2408_v50 = vld [vmem:[%s3607_s2 + $0xd0] sm:$0xff]  }
  0x21   : > { %718 = vrot.lane.b32.xlu0 %v2615_v52, %s2453_s7  ;;  %v483_v27 = vsel %vm455_vm3, %v478_v7, %v482_v22  ;;  %v995_v29 = vrot.slane %v2688_v23, 2  ;;  %v767_v31 = vsel %vm752_vm1, %v2608_v51, %v766_v24  ;;  %v768_v38 = vrot.slane %v2688_v23, 1 }
  0x22   : > { %1739 = vmatpush1.bf16.msra.mxu0 %v2388_v48  ;;  %v996_v32 = vrot.slane %v2693_v25, 3  ;;  %v880_v37 = vsel %vm871_vm0, %v877_v10, %v879_v28  ;;  %v769_v39 = vrot.slane %v2693_v25, 2  ;;  %v2743_v45 = vshll.u32 %v2717_v35, 16 }
  0x23   : > { %1740 = vmatprep.subr.bf16.mxu0 %v2450_v0  ;;  %v650_v49 = vrot.slane %v2663_v16, 1  ;;  %v999_v51 = vrot.slane %v2735_v42, 2  ;;  %v1101_v55 = vrot.slane %v2524_v4, 3  ;;  %v1102_v56 = vrot.slane %v2527_v5, 3  ;;  %v2409_v4 = vld [vmem:[%s3607_s2 + $0x48] sm:$0xff]  }
  0x24   : > { %837 = vrot.lane.b32.xlu1 %v763_v59, %s2454_s10  ;;  %v997_v40 = vor.u32 %v996_v32, %v995_v29  ;;  %v2740_v44 = vor.u32 %v769_v39, %v768_v38  ;;  %v1000_v54 = vrot.slane %v2743_v45, 3  ;;  %v486_v58 = vor.u32 %v2574_v30, %v482_v22 }
  0x25   : > { %1064 = vrot.lane.b32.xlu0 %v990_v61, %s2457_s8  ;;  %v490_v59 = vrot.slane %v2596_v46, 1  ;;  %v1103_v61 = vsel %vm1100_vm5, %v1101_v55, %v1102_v56  ;;  %v881_v46 = vrot.slane %v2717_v35, 2  ;;  %v652_v3 = vrot.slane %v2717_v35, 1 }
  0x26   : > { %1741 = vmatpush1.bf16.msra.mxu0 %v2390_v57  ;;  %v998_v48 = vsel %vm983_vm4, %v2644_v2, %v997_v40  ;;  %v771_v53 = vsel %vm752_vm1, %v766_v24, %v2740_v44  ;;  %v651_v57 = vsel %vm640_vm2, %v648_v15, %v650_v49  ;;  %v1001_v62 = vor.u32 %v1000_v54, %v999_v51 }
  0x27   : > { %1742 = vmatprep.subr.bf16.mxu0 %v2450_v0  ;;  %2316 = vmatprep.mubr.msk.bf16.mxu1 %vm1138_vm6, %v1103_v61  ;;  %v491_v30 = vsel %vm455_vm3, %v486_v58, %v490_v59  ;;  %v772_v10 = vrot.slane %v2735_v42, 1  ;;  %v653_v15 = vsel %vm640_vm2, %v650_v49, %v652_v3  ;;  %vm1359_vm11 = vcmask 261120  }
  0x28   : > { %911 = vrot.lane.b32.xlu1 %v2548_v13, %s2455_s19  ;;  %v2398_v13 = vld [vmem:[%s3607_s2 + $0x98] sm:$0xff]   ;;  %v1002_v2 = vsel %vm983_vm4, %v997_v40, %v1001_v62  ;;  %vm1396_vm12 = vcmask 654336  }
  0x29   : > { %606 = vrot.lane.b32.xlu0 %v475_v6, %s2456_s20  ;;  %1914 = vmatpush1.bf16.msra.mxu1 %v2398_v13  ;;  %v882_v6 = vsel %vm871_vm0, %v879_v28, %v881_v46  ;;  %v498_v13 = vrot.slane %v2693_v25, 1 }
  0x2a   : > { %1743 = vmatpush1.bf16.msra.mxu0 %v2393_v1  ;;  %1915 = vmatprep.subr.bf16.mxu1 %v2450_v0  ;;  %v2411_v1 = vld [vmem:[%s3607_s2 + $0x40] sm:$0xff]  }
  0x2b   : > { %1744 = vmatprep.subr.bf16.mxu0 %v2450_v0  ;;  %v502_v40 = vor.u32 %v2688_v23, %v498_v13 }
  0x2c   : > { %1066 = vrot.lane.b32.xlu1 %v994_v14, %s2457_s8  ;;  %v2806_v14 = vld [vmem:[%s2517_s26 + $0x38] sm:$0xff]  }
  0x2d   : > { %949 = vrot.lane.b32.xlu0 %v878_v17, %s2451_s29  ;;  %1916 = vmatpush1.bf16.msra.mxu1 %v2401_v12  ;;  %v2814_v18 = vshll.u32 %v2806_v14, 16  ;;  %v2817_v19 = vshrl.u32 %v2806_v14, 16 }
  0x2e   : > { %1745 = vmatpush2.bf16.msra.mxu0 %v2395_v11  ;;  %1917 = vmatprep.subr.bf16.mxu1 %v2450_v0  ;;  %v773_v11 = vrot.slane %v2743_v45, 2 }
  0x2f   : > { %1746 = vmatprep.subr.bf16.mxu0 %v2450_v0  ;;  %v1003_v7 = vrot.slane %v2817_v19, 2  ;;  %v1004_v22 = vrot.slane %v2814_v18, 3  ;;  %v776_v25 = vrot.slane %v2817_v19, 1  ;;  %v777_v12 = vrot.slane %v2814_v18, 2 }
  0x30   : > { %720 = vrot.lane.b32.xlu1 %v649_v21, %s2453_s7  ;;  %v514_v55 = vrot.slane %v2814_v18, 1 }
  0x31   : > { %682 = vrot.lane.b32.xlu0 %v2615_v52, %s2452_s6  ;;  %1918 = vmatpush1.bf16.msra.mxu1 %v2403_v33  ;;  %v2406_v52 = vld [vmem:[%s3607_s2 + $0x50] sm:$0xff]   ;;  %v778_v28 = vor.u32 %v777_v12, %v776_v25  ;;  %v654_v33 = vrot.slane %v2806_v14, 1 }
  0x32   : > { %1747 = vmatpush2.bf16.msra.mxu0 %v2397_v20  ;;  %1919 = vmatprep.subr.bf16.mxu1 %v2450_v0 }
  0x33   : > { %1748 = vmatprep.subr.bf16.mxu0 %v2450_v0  ;;  %v655_v39 = vsel %vm640_vm2, %v652_v3, %v654_v33 }
  0x34   : > { %608 = vrot.lane.b32.xlu1 %v483_v27, %s2456_s20  ;;  %v1005_v27 = vor.u32 %v1004_v22, %v1003_v7 }
  0x35   : > { %839 = vrot.lane.b32.xlu0 %v767_v31, %s2454_s10  ;;  %1920 = vmatpush1.bf16.msra.mxu1 %v2405_v41  ;;  %v506_v41 = vrot.slane %v2743_v45, 1 }
  0x36   : > { %1749 = vmatpush2.bf16.msra.mxu0 %v2399_v26  ;;  %1931 = vmatprep.subr.bf16.mxu1 %v2450_v0  ;;  %v2832_v26 = vld [vmem:[%s2517_s26 + $0x40] sm:$0xff]   ;;  %v1006_v32 = vsel %vm983_vm4, %v1001_v62, %v1005_v27 }
  0x37   : > { %1750 = vmatprep.subr.bf16.mxu0 %v2450_v0  ;;  %v2837_v29 = vshll.u32 %v2832_v26, 16  ;;  %v2840_v31 = vshrl.u32 %v2832_v26, 16  ;;  %v510_v54 = vor.u32 %v2735_v42, %v506_v41 }
  0x38   : > { %951 = vrot.lane.b32.xlu1 %v880_v37, %s2451_s29 }
  0x39   : > { %913 = vrot.lane.b32.xlu0 %v878_v17, %s2455_s19  ;;  %1932 = vmatpush2.bf16.msra.mxu1 %v2408_v50  ;;  %v774_v17 = vor.u32 %v773_v11, %v772_v10  ;;  %v1008_v38 = vrot.slane %v2837_v29, 3  ;;  %v656_v50 = vrot.slane %v2832_v26, 1  ;;  %v780_v45 = vrot.slane %v2840_v31, 1 }
  0x3a   : > { %1751 = vmatpush2.bf16.msra.mxu0 %v2402_v36  ;;  %1933 = vmatprep.subr.bf16.mxu1 %v2450_v0  ;;  %v781_v51 = vrot.slane %v2837_v29, 2  ;;  %v515_v42 = vsel %vm455_vm3, %v510_v54, %v514_v55 }
  0x3b   : > { %1752 = vmatprep.subr.bf16.mxu0 %v2450_v0  ;;  %v779_v36 = vsel %vm752_vm1, %v774_v17, %v778_v28 }
  0x3c   : > { %684 = vrot.lane.b32.xlu1 %v649_v21, %s2452_s6  ;;  %v883_v21 = vrot.slane %v2806_v14, 2 }
  0x3d   : > { %1068 = vrot.lane.b32.xlu0 %v998_v48, %s2457_s8  ;;  %1934 = vmatpush2.bf16.msra.mxu1 %v2410_v60  ;;  %v885_v48 = vrot.slane %v2832_v26, 2 }
  0x3e   : > { %1753 = vmatpush2.bf16.msra.mxu0 %v2404_v43  ;;  %1935 = vmatprep.subr.bf16.mxu1 %v2450_v0  ;;  %v884_v24 = vsel %vm871_vm0, %v881_v46, %v883_v21 }
  0x3f   : > { %1754 = vmatprep.subr.bf16.mxu0 %v2450_v0  ;;  %v886_v23 = vsel %vm871_vm0, %v883_v21, %v885_v48  ;;  %v522_v21 = vrot.slane %v2837_v29, 1 }
  0x40   : > { %841 = vrot.lane.b32.xlu1 %v771_v53, %s2454_s10  ;;  %v657_v53 = vsel %vm640_vm2, %v654_v33, %v656_v50 }
  0x41   : > { %722 = vrot.lane.b32.xlu0 %v651_v57, %s2453_s7  ;;  %1936 = vmatpush2.bf16.msra.mxu1 %v2412_v63 }
  0x42   : > { %1755 = vmatpush2.bf16.msra.mxu0 %v2406_v52  ;;  %v2865_v52 = vld [vmem:[%s2517_s26 + $0x48] sm:$0xff]  }
  0x43   : > { %1756 = vmatprep.subr.bf16.mxu0 %v2450_v0  ;;  %v2873_v58 = vshll.u32 %v2865_v52, 16  ;;  %v887_v60 = vrot.slane %v2865_v52, 2 }
  0x44   : > { %915 = vrot.lane.b32.xlu1 %v880_v37, %s2455_s19  ;;  %v1007_v37 = vrot.slane %v2840_v31, 2 }
  0x45   : > { %610 = vrot.lane.b32.xlu0 %v491_v30, %s2456_s20  ;;  %v1012_v62 = vrot.slane %v2873_v58, 3  ;;  %v888_v30 = vsel %vm871_vm0, %v885_v48, %v887_v60  ;;  %v785_v63 = vrot.slane %v2873_v58, 2  ;;  %v530_v33 = vrot.slane %v2873_v58, 1 }
  0x46   : > { %1757 = vmatpush2.bf16.msra.mxu0 %v2409_v4  ;;  %v1009_v43 = vor.u32 %v1008_v38, %v1007_v37 }
  0x47   : > { %1758 = vmatprep.subr.bf16.mxu0 %v2450_v0  ;;  %v494_v0 = vor.u32 %v2599_v47, %v490_v59  ;;  %v775_v47 = vsel %vm752_vm1, %v2740_v44, %v774_v17  ;;  %v507_v44 = vsel %vm455_vm3, %v502_v40, %v506_v41  ;;  %v2876_v59 = vshrl.u32 %v2865_v52, 16 }
  0x48   : > { %1070 = vrot.lane.b32.xlu1 %v1002_v2, %s2457_s8  ;;  %v1010_v49 = vsel %vm983_vm4, %v1005_v27, %v1009_v43 }
  0x49   : > { %953 = vrot.lane.b32.xlu0 %v882_v6, %s2451_s29  ;;  %v499_v20 = vsel %vm455_vm3, %v494_v0, %v498_v13  ;;  %v1011_v61 = vrot.slane %v2876_v59, 2  ;;  %v784_v46 = vrot.slane %v2876_v59, 1 }
  0x4a   : > { %1759 = vmatpush2.bf16.msra.mxu0 %v2411_v1  ;;  %v2897_v1 = vld [vmem:[%s2517_s26 + $0x50] sm:$0xff]  }
  0x4b   : > { %v1013_v2 = vor.u32 %v1012_v62, %v1011_v61  ;;  %v786_v3 = vor.u32 %v785_v63, %v784_v46  ;;  %v2905_v10 = vshrl.u32 %v2897_v1, 16  ;;  %v889_v22 = vrot.slane %v2897_v1, 2 }
  0x4c   : > { %724 = vrot.lane.b32.xlu1 %v653_v15, %s2453_s7  ;;  %v660_v25 = vrot.slane %v2897_v1, 1 }
  0x4d   : > { %686 = vrot.lane.b32.xlu0 %v651_v57, %s2452_s6  ;;  %v782_v57 = vor.u32 %v781_v51, %v780_v45  ;;  %v1014_v11 = vsel %vm983_vm4, %v1009_v43, %v1013_v2  ;;  %v1015_v13 = vrot.slane %v2905_v10, 2  ;;  %v788_v12 = vrot.slane %v2905_v10, 1  ;;  %v2957_v45 = vld [vmem:[%s2517_s26 + $0x60] sm:$0xff]  }
  0x4e   : > { %v2969_v58 = vshrl.u32 %v2957_v45, 16 }
  0x4f   : > { %v783_v4 = vsel %vm752_vm1, %v778_v28, %v782_v57  ;;  %v787_v0 = vsel %vm752_vm1, %v782_v57, %v786_v3  ;;  %v2930_v28 = vld [vmem:[%s2517_s26 + $0x58] sm:$0xff]   ;;  %v2966_v57 = vshll.u32 %v2957_v45, 16 }
  0x50   : > { %612 = vrot.lane.b32.xlu1 %v499_v20, %s2456_s20  ;;  %v518_v20 = vor.u32 %v2817_v19, %v514_v55  ;;  %v890_v19 = vsel %vm871_vm0, %v887_v60, %v889_v22  ;;  %v2938_v37 = vshll.u32 %v2930_v28, 16  ;;  %v2941_v38 = vshrl.u32 %v2930_v28, 16 }
  0x51   : > { %843 = vrot.lane.b32.xlu0 %v775_v47, %s2454_s10  ;;  %v891_v40 = vrot.slane %v2930_v28, 2  ;;  %v662_v62 = vrot.slane %v2930_v28, 1 }
  0x52   : > { %v523_v7 = vsel %vm455_vm3, %v518_v20, %v522_v21  ;;  %v1019_v43 = vrot.slane %v2941_v38, 2 }
  0x54   : > { %955 = vrot.lane.b32.xlu1 %v884_v24, %s2451_s29 }
  0x55   : > { %917 = vrot.lane.b32.xlu0 %v882_v6, %s2455_s19  ;;  %v2902_v6 = vshll.u32 %v2897_v1, 16 }
  0x57   : > { %v1016_v17 = vrot.slane %v2902_v6, 3  ;;  %v789_v27 = vrot.slane %v2902_v6, 2 }
  0x58   : > { %688 = vrot.lane.b32.xlu1 %v653_v15, %s2452_s6  ;;  %v658_v15 = vrot.slane %v2865_v52, 1 }
  0x59   : > { %1072 = vrot.lane.b32.xlu0 %v1006_v32, %s2457_s8  ;;  %v1017_v47 = vor.u32 %v1016_v17, %v1015_v13  ;;  %v526_v32 = vor.u32 %v2840_v31, %v522_v21  ;;  %v534_v13 = vor.u32 %v2876_v59, %v530_v33  ;;  %v538_v17 = vrot.slane %v2902_v6, 1 }
  0x5a   : > { %v659_v18 = vsel %vm640_vm2, %v656_v50, %v658_v15  ;;  %v661_v29 = vsel %vm640_vm2, %v658_v15, %v660_v25  ;;  %v792_v50 = vrot.slane %v2941_v38, 1  ;;  %v1104_v21 = vrot.slane %v2579_v34, 3 }
  0x5b   : > { %v893_v59 = vrot.slane %v2957_v45, 2 }
  0x5c   : > { %845 = vrot.lane.b32.xlu1 %v779_v36, %s2454_s10  ;;  %v790_v36 = vor.u32 %v789_v27, %v788_v12  ;;  %v1105_v34 = vsel %vm1100_vm5, %v1102_v56, %v1104_v21  ;;  %v664_v12 = vrot.slane %v2957_v45, 1 }
  0x5d   : > { %726 = vrot.lane.b32.xlu0 %v655_v39, %s2453_s7  ;;  %v894_v5 = vsel %vm871_vm0, %v891_v40, %v893_v59 }
  0x5e   : > { %v791_v41 = vsel %vm752_vm1, %v786_v3, %v790_v36  ;;  %v1024_v3 = vrot.slane %v2966_v57, 3 }
  0x60   : > { %919 = vrot.lane.b32.xlu1 %v884_v24, %s2455_s19  ;;  %v1018_v24 = vsel %vm983_vm4, %v1013_v2, %v1017_v47  ;;  %v1023_v2 = vrot.slane %v2969_v58, 2 }
  0x61   : > { %614 = vrot.lane.b32.xlu0 %v507_v44, %s2456_s20  ;;  %v1020_v44 = vrot.slane %v2938_v37, 3 }
  0x64   : > { %1074 = vrot.lane.b32.xlu1 %v1010_v49, %s2457_s8  ;;  %v892_v49 = vsel %vm871_vm0, %v889_v22, %v891_v40  ;;  %v665_v40 = vsel %vm640_vm2, %v662_v62, %v664_v12 }
  0x65   : > { %957 = vrot.lane.b32.xlu0 %v886_v23, %s2451_s29 }
  0x68   : > { %728 = vrot.lane.b32.xlu1 %v657_v53, %s2453_s7 }
  0x69   : > { %690 = vrot.lane.b32.xlu0 %v655_v39, %s2452_s6  ;;  %v531_v39 = vsel %vm455_vm3, %v526_v32, %v530_v33  ;;  %v796_v32 = vrot.slane %v2969_v58, 1  ;;  %v797_v33 = vrot.slane %v2966_v57, 2 }
  0x6c   : > { %616 = vrot.lane.b32.xlu1 %v515_v42, %s2456_s20 }
  0x6d   : > { %847 = vrot.lane.b32.xlu0 %v783_v4, %s2454_s10 }
  0x70   : > { %959 = vrot.lane.b32.xlu1 %v888_v30, %s2451_s29 }
  0x71   : > { %921 = vrot.lane.b32.xlu0 %v886_v23, %s2455_s19  ;;  %v793_v23 = vrot.slane %v2938_v37, 2 }
  0x73   : > { %v2963_v55 = vor.u32 %v793_v23, %v792_v50  ;;  %v798_v50 = vor.u32 %v797_v33, %v796_v32  ;;  %v554_v32 = vrot.slane %v2966_v57, 1 }
  0x74   : > { %692 = vrot.lane.b32.xlu1 %v657_v53, %s2452_s6  ;;  %v1021_v53 = vor.u32 %v1020_v44, %v1019_v43  ;;  %v546_v43 = vrot.slane %v2938_v37, 1  ;;  %v1106_v44 = vrot.slane %v2663_v16, 3 }
  0x75   : > { %1076 = vrot.lane.b32.xlu0 %v1014_v11, %s2457_s8  ;;  %v795_v63 = vsel %vm752_vm1, %v790_v36, %v2963_v55  ;;  %v3017_v36 = vld [vmem:[%s2517_s26 + $0x68] sm:$0xff]  }
  0x76   : > { %v1022_v61 = vsel %vm983_vm4, %v1017_v47, %v1021_v53  ;;  %v2991_v47 = vor.u32 %v1024_v3, %v1023_v2  ;;  %v3058_v3 = vld [vmem:[%s2517_s26 + $0x70] sm:$0xff]  }
  0x77   : > { %v897_v57 = vrot.slane %v3058_v3, 2  ;;  %v668_v16 = vrot.slane %v3058_v3, 1 }
  0x78   : > { %849 = vrot.lane.b32.xlu1 %v787_v0, %s2454_s10  ;;  %v663_v0 = vsel %vm640_vm2, %v660_v25, %v662_v62 }
  0x79   : > { %730 = vrot.lane.b32.xlu0 %v659_v18, %s2453_s7 }
  0x7c   : > { %923 = vrot.lane.b32.xlu1 %v888_v30, %s2455_s19 }
  0x7d   : > { %618 = vrot.lane.b32.xlu0 %v523_v7, %s2456_s20  ;;  %v539_v7 = vsel %vm455_vm3, %v534_v13, %v538_v17  ;;  %v3065_v13 = vshll.u32 %v3058_v3, 16 }
  0x80   : > { %1078 = vrot.lane.b32.xlu1 %v1018_v24, %s2457_s8 }
  0x81   : > { %961 = vrot.lane.b32.xlu0 %v890_v19, %s2451_s29 }
  0x84   : > { %732 = vrot.lane.b32.xlu1 %v661_v29, %s2453_s7 }
  0x85   : > { %694 = vrot.lane.b32.xlu0 %v659_v18, %s2452_s6 }
  0x86   : > { %v948_v31 = vpop.permute.xlu1 %947 }
  0x87   : > { %v679_v48 = vpop.permute.xlu0 %678 }
  0x88   : > { %620 = vrot.lane.b32.xlu1 %v531_v39, %s2456_s20 }
  0x89   : > { %851 = vrot.lane.b32.xlu0 %v791_v41, %s2454_s10 }
  0x8a   : > { %v2960_v51 = vpop.permute.xlu1 %680 }
  0x8b   : > { %v717_v54 = vpop.permute.xlu0 %716 }
  0x8c   : > { %963 = vrot.lane.b32.xlu1 %v892_v49, %s2451_s29  ;;  %v1232_v42 = vsel %vm1230_vm7, %v679_v48, %v717_v54  ;;  %v895_v54 = vrot.slane %v3017_v36, 2 }
  0x8d   : > { %925 = vrot.lane.b32.xlu0 %v890_v19, %s2455_s19  ;;  %v1026_v19 = vsel %vm983_vm4, %v1021_v53, %v2991_v47 }
  0x8e   : > { %v836_v60 = vpop.permute.xlu1 %835 }
  0x8f   : > { %v1269_v4 = vsel %vm1267_vm8, %v1232_v42, %v836_v60  ;;  %v910_v30 = vpop.permute.xlu0 %909 }
  0x90   : > { %696 = vrot.lane.b32.xlu1 %v661_v29, %s2452_s6  ;;  %v1306_v46 = vsel %vm1304_vm9, %v1269_v4, %v910_v30  ;;  %v1361_v6 = vsel %vm1359_vm11, %v910_v30, %v948_v31  ;;  %v542_v31 = vor.u32 %v2905_v10, %v538_v17  ;;  %v3032_v10 = vshll.u32 %v3017_v36, 16 }
  0x91   : > { %1080 = vrot.lane.b32.xlu0 %v1022_v61, %s2457_s8  ;;  %1760 = vmatprep.mubr.bf16.mxu0 %v1306_v46  ;;  %v799_v4 = vsel %vm752_vm1, %v2963_v55, %v798_v50  ;;  %v896_v46 = vsel %vm871_vm0, %v893_v59, %v895_v54  ;;  %v3068_v17 = vshrl.u32 %v3058_v3, 16  ;;  %v666_v59 = vrot.slane %v3017_v36, 1 }
  0x92   : > { %v605_v11 = vpop.permute.xlu1 %604  ;;  %v547_v53 = vsel %vm455_vm3, %v542_v31, %v546_v43  ;;  %v1028_v62 = vrot.slane %v3032_v10, 3  ;;  %v801_v2 = vrot.slane %v3032_v10, 2 }
  0x93   : > { %v1140_v15 = vsel %vm1138_vm6, %v2532_v8, %v605_v11  ;;  %v719_v18 = vpop.permute.xlu0 %718 }
  0x94   : > { %853 = vrot.lane.b32.xlu1 %v795_v63, %s2454_s10  ;;  %v1177_v20 = vsel %vm1175_vm10, %v1140_v15, %v679_v48  ;;  %v1234_v24 = vsel %vm1230_vm7, %v2960_v51, %v719_v18 }
  0x95   : > { %1761 = vmatmul.mubr.bf16.vlgmr.msra.gmra.mxu0 %v1177_v20  ;;  %734 = vrot.lane.b32.xlu0 %v663_v0, %s2453_s7 }
  0x96   : > { %v838_v8 = vpop.permute.xlu1 %837 }
  0x97   : > { %v1065_v22 = vpop.permute.xlu0 %1064  ;;  %v1271_v27 = vsel %vm1267_vm8, %v1234_v24, %v838_v8 }
  0x98   : > { %927 = vrot.lane.b32.xlu1 %v892_v49, %s2455_s19  ;;  %v1398_v25 = vsel %vm1396_vm12, %v1361_v6, %v1065_v22 }
  0x99   : > { %622 = vrot.lane.b32.xlu0 %v539_v7, %s2456_s20  ;;  %1938 = vmatmul.mubr.bf16.vlgmr.msra.gmra.mxu1 %v1398_v25 }
  0x9a   : > { %v912_v29 = vpop.permute.xlu1 %911  ;;  %2317 = vmatprep.mubr.msk.bf16.mxu1 %vm1138_vm6, %v1105_v34  ;;  %v1108_v34 = vrot.slane %v2717_v35, 3 }
  0x9b   : > { %v1309_v56 = vsel %vm1304_vm9, %v1271_v27, %v912_v29  ;;  %v607_v39 = vpop.permute.xlu0 %606  ;;  %v1032_v27 = vrot.slane %v3065_v13, 3 }
  0x9c   : > { %1082 = vrot.lane.b32.xlu1 %v1026_v19, %s2457_s8  ;;  %1768 = vmatprep.mubr.bf16.mxu0 %v1309_v56  ;;  %v1142_v41 = vsel %vm1138_vm6, %v2535_v9, %v607_v39  ;;  %v3035_v9 = vshrl.u32 %v3017_v36, 16  ;;  %v1031_v19 = vrot.slane %v3068_v17, 2  ;;  %v550_v56 = vor.u32 %v2941_v38, %v546_v43 }
  0x9d   : > { %965 = vrot.lane.b32.xlu0 %v894_v5, %s2451_s29  ;;  %v1180_v48 = vsel %vm1175_vm10, %v1142_v41, %v2960_v51  ;;  %v1107_v51 = vsel %vm1100_vm5, %v1104_v21, %v1106_v44  ;;  %v2422_v21 = vld [vmem:[%s2517_s26 + $0x10] sm:$0xff]   ;;  %v1109_v31 = vsel %vm1100_vm5, %v1106_v44, %v1108_v34 }
  0x9e   : > { %v1067_v49 = vpop.permute.xlu1 %1066  ;;  %1769 = vmatmul.mubr.bf16.gmra.mxu0 %v1180_v48  ;;  %v1027_v61 = vrot.slane %v3035_v9, 2  ;;  %v800_v63 = vrot.slane %v3035_v9, 1  ;;  %v555_v38 = vsel %vm455_vm3, %v550_v56, %v554_v32 }
  0x9f   : > { %v950_v23 = vpop.permute.xlu0 %949 }
  0xa0   : > { %736 = vrot.lane.b32.xlu1 %v665_v40, %s2453_s7  ;;  %v1363_v37 = vsel %vm1359_vm11, %v912_v29, %v950_v23  ;;  %v1029_v11 = vor.u32 %v1028_v62, %v1027_v61  ;;  %v898_v23 = vsel %vm871_vm0, %v895_v54, %v897_v57  ;;  %v2423_v61 = vld [vmem:[%s2517_s26 + $0x18] sm:$0xff]   ;;  %v558_v54 = vor.u32 %v2969_v58, %v554_v32 }
  0xa1   : > { %698 = vrot.lane.b32.xlu0 %v663_v0, %s2452_s6  ;;  %v1401_v42 = vsel %vm1396_vm12, %v1363_v37, %v1067_v49  ;;  %v3062_v0 = vor.u32 %v801_v2, %v800_v63 }
  0xa2   : > { %v721_v60 = vpop.permute.xlu1 %720  ;;  %1946 = vmatmul.mubr.bf16.gmra.mxu1 %v1401_v42  ;;  %v1030_v7 = vsel %vm983_vm4, %v2991_v47, %v1029_v11  ;;  %v3118_v42 = vld [vmem:[%s2517_s26 + $0x78] sm:$0xff]  }
  0xa3   : > { %v683_v30 = vpop.permute.xlu0 %682  ;;  %2318 = vmatprep.mubr.msk.bf16.mxu1 %vm1138_vm6, %v1107_v51  ;;  %v803_v25 = vsel %vm752_vm1, %v798_v50, %v3062_v0  ;;  %v805_v51 = vrot.slane %v3065_v13, 2 }
  0xa4   : > { %624 = vrot.lane.b32.xlu1 %v547_v53, %s2456_s20  ;;  %v1236_v20 = vsel %vm1230_vm7, %v683_v30, %v721_v60  ;;  %v804_v53 = vrot.slane %v3068_v17, 1 }
  0xa5   : > { %855 = vrot.lane.b32.xlu0 %v799_v4, %s2454_s10  ;;  %v669_v4 = vsel %vm640_vm2, %v666_v59, %v668_v16 }
  0xa6   : > { %v609_v55 = vpop.permute.xlu1 %608 }
  0xa7   : > { %v840_v15 = vpop.permute.xlu0 %839  ;;  %v1144_v8 = vsel %vm1138_vm6, %v2422_v21, %v609_v55  ;;  %v806_v55 = vor.u32 %v805_v51, %v804_v53 }
  0xa8   : > { %967 = vrot.lane.b32.xlu1 %v896_v46, %s2451_s29  ;;  %v1273_v6 = vsel %vm1267_vm8, %v1236_v20, %v840_v15  ;;  %v1183_v47 = vsel %vm1175_vm10, %v1144_v8, %v683_v30  ;;  %v562_v30 = vrot.slane %v3032_v10, 1  ;;  %v3135_v15 = vshrl.u32 %v3118_v42, 16 }
  0xa9   : > { %929 = vrot.lane.b32.xlu0 %v894_v5, %s2455_s19  ;;  %v667_v5 = vsel %vm640_vm2, %v664_v12, %v666_v59  ;;  %v899_v20 = vrot.slane %v3118_v42, 2  ;;  %v807_v59 = vsel %vm752_vm1, %v3062_v0, %v806_v55 }
  0xaa   : > { %v952_v18 = vpop.permute.xlu1 %951  ;;  %v563_v10 = vsel %vm455_vm3, %v558_v54, %v562_v30  ;;  %v566_v51 = vor.u32 %v3035_v9, %v562_v30 }
  0xab   : > { %v914_v22 = vpop.permute.xlu0 %913 }
  0xac   : > { %700 = vrot.lane.b32.xlu1 %v665_v40, %s2452_s6  ;;  %v1312_v24 = vsel %vm1304_vm9, %v1273_v6, %v914_v22  ;;  %v1365_v33 = vsel %vm1359_vm11, %v914_v22, %v952_v18  ;;  %v3098_v40 = vor.u32 %v1032_v27, %v1031_v19  ;;  %v1035_v6 = vrot.slane %v3135_v15, 2  ;;  %v3158_v27 = vld [vmem:[%s2517_s26 + $0x80] sm:$0xff]  }
  0xad   : > { %1084 = vrot.lane.b32.xlu0 %v1030_v7, %s2457_s8  ;;  %1776 = vmatprep.mubr.bf16.mxu0 %v1312_v24  ;;  %v3165_v56 = vshll.u32 %v3158_v27, 16  ;;  %v3168_v32 = vshrl.u32 %v3158_v27, 16 }
  0xae   : > { %v685_v29 = vpop.permute.xlu1 %684  ;;  %1777 = vmatmul.mubr.bf16.gmra.mxu0 %v1183_v47  ;;  %v1034_v48 = vsel %vm983_vm4, %v1029_v11, %v3098_v40  ;;  %v3132_v11 = vshll.u32 %v3118_v42, 16 }
  0xaf   : > { %v1069_v39 = vpop.permute.xlu0 %1068 }
  0xb0   : > { %857 = vrot.lane.b32.xlu1 %v803_v25, %s2454_s10  ;;  %v1404_v41 = vsel %vm1396_vm12, %v1365_v33, %v1069_v39  ;;  %v1036_v22 = vrot.slane %v3132_v11, 3  ;;  %v808_v25 = vrot.slane %v3135_v15, 1  ;;  %v809_v19 = vrot.slane %v3132_v11, 2 }
  0xb1   : > { %738 = vrot.lane.b32.xlu0 %v667_v5, %s2453_s7  ;;  %1954 = vmatmul.mubr.bf16.gmra.mxu1 %v1404_v41 }
  0xb2   : > { %v842_v12 = vpop.permute.xlu1 %841  ;;  %2319 = vmatprep.mubr.msk.bf16.mxu1 %vm1138_vm6, %v1109_v31  ;;  %v1037_v47 = vor.u32 %v1036_v22, %v1035_v6  ;;  %v2424_v31 = vld [vmem:[%s2517_s26 + $0x20] sm:$0xff]  }
  0xb3   : > { %v723_v43 = vpop.permute.xlu0 %722 }
  0xb4   : > { %931 = vrot.lane.b32.xlu1 %v896_v46, %s2455_s19  ;;  %v1238_v44 = vsel %vm1230_vm7, %v685_v29, %v723_v43  ;;  %v1110_v46 = vrot.slane %v2806_v14, 3 }
  0xb5   : > { %v1275_v49 = vsel %vm1267_vm8, %v1238_v44, %v842_v12  ;;  %626 = vrot.lane.b32.xlu0 %v555_v38, %s2456_s20  ;;  %v1038_v12 = vsel %vm983_vm4, %v3098_v40, %v1037_v47  ;;  %v670_v38 = vrot.slane %v3118_v42, 1  ;;  %v1112_v44 = vrot.slane %v2832_v26, 3 }
  0xb6   : > { %v916_v50 = vpop.permute.xlu1 %915  ;;  %v1111_v21 = vsel %vm1100_vm5, %v1108_v34, %v1110_v46  ;;  %v900_v34 = vsel %vm871_vm0, %v897_v57, %v899_v20 }
  0xb7   : > { %v1315_v37 = vsel %vm1304_vm9, %v1275_v49, %v916_v50  ;;  %v611_v60 = vpop.permute.xlu0 %610  ;;  %v671_v53 = vsel %vm640_vm2, %v668_v16, %v670_v38 }
  0xb8   : > { %1086 = vrot.lane.b32.xlu1 %v1034_v48, %s2457_s8  ;;  %1784 = vmatprep.mubr.bf16.mxu0 %v1315_v37  ;;  %v1146_v62 = vsel %vm1138_vm6, %v2423_v61, %v611_v60  ;;  %v570_v60 = vrot.slane %v3065_v13, 1  ;;  %v901_v13 = vrot.slane %v3158_v27, 2 }
  0xb9   : > { %969 = vrot.lane.b32.xlu0 %v898_v23, %s2451_s29  ;;  %v1186_v63 = vsel %vm1175_vm10, %v1146_v62, %v685_v29  ;;  %v1113_v62 = vsel %vm1100_vm5, %v1110_v46, %v1112_v44  ;;  %v672_v46 = vrot.slane %v3158_v27, 1 }
  0xba   : > { %v1071_v2 = vpop.permute.xlu1 %1070  ;;  %1785 = vmatmul.mubr.bf16.gmra.mxu0 %v1186_v63  ;;  %v571_v9 = vsel %vm455_vm3, %v566_v51, %v570_v60 }
  0xbb   : > { %v954_v18 = vpop.permute.xlu0 %953  ;;  %v673_v22 = vsel %vm640_vm2, %v670_v38, %v672_v46 }
  0xbc   : > { %740 = vrot.lane.b32.xlu1 %v669_v4, %s2453_s7  ;;  %v1367_v58 = vsel %vm1359_vm11, %v916_v50, %v954_v18  ;;  %v1039_v50 = vrot.slane %v3168_v32, 2 }
  0xbd   : > { %702 = vrot.lane.b32.xlu0 %v667_v5, %s2452_s6  ;;  %v1407_v8 = vsel %vm1396_vm12, %v1367_v58, %v1071_v2  ;;  %v3162_v5 = vor.u32 %v809_v19, %v808_v25  ;;  %v578_v25 = vrot.slane %v3132_v11, 1  ;;  %v1114_v19 = vrot.slane %v2865_v52, 3 }
  0xbe   : > { %v725_v7 = vpop.permute.xlu1 %724  ;;  %1962 = vmatmul.mubr.bf16.gmra.mxu1 %v1407_v8  ;;  %v812_v8 = vrot.slane %v3168_v32, 1 }
  0xbf   : > { %v687_v24 = vpop.permute.xlu0 %686  ;;  %2320 = vmatprep.mubr.msk.bf16.mxu1 %vm1138_vm6, %v1111_v21  ;;  %v811_v49 = vsel %vm752_vm1, %v806_v55, %v3162_v5 }
  0xc0   : > { %628 = vrot.lane.b32.xlu1 %v563_v10, %s2456_s20  ;;  %v1240_v39 = vsel %vm1230_vm7, %v687_v24, %v725_v7  ;;  %v902_v10 = vsel %vm871_vm0, %v899_v20, %v901_v13  ;;  %v813_v7 = vrot.slane %v3165_v56, 2  ;;  %v574_v20 = vor.u32 %v3068_v17, %v570_v60 }
  0xc1   : > { %859 = vrot.lane.b32.xlu0 %v807_v59, %s2454_s10  ;;  %v3218_v59 = vld [vmem:[%s2517_s26 + $0x88] sm:$0xff]  }
  0xc2   : > { %v613_v0 = vpop.permute.xlu1 %612  ;;  %v579_v11 = vsel %vm455_vm3, %v574_v20, %v578_v25 }
  0xc3   : > { %v844_v29 = vpop.permute.xlu0 %843  ;;  %v1148_v41 = vsel %vm1138_vm6, %v2424_v31, %v613_v0 }
  0xc4   : > { %971 = vrot.lane.b32.xlu1 %v900_v34, %s2451_s29  ;;  %v1277_v57 = vsel %vm1267_vm8, %v1240_v39, %v844_v29  ;;  %v1189_v40 = vsel %vm1175_vm10, %v1148_v41, %v687_v24  ;;  %v2425_v24 = vld [vmem:[%s2517_s26 + $0x28] sm:$0xff]   ;;  %v814_v29 = vor.u32 %v813_v7, %v812_v8  ;;  %v3235_v39 = vshrl.u32 %v3218_v59, 16 }
  0xc5   : > { %933 = vrot.lane.b32.xlu0 %v898_v23, %s2455_s19  ;;  %v1040_v23 = vrot.slane %v3165_v56, 3  ;;  %v903_v41 = vrot.slane %v3218_v59, 2  ;;  %v582_v7 = vor.u32 %v3135_v15, %v578_v25 }
  0xc6   : > { %v956_v33 = vpop.permute.xlu1 %955 }
  0xc7   : > { %v918_v43 = vpop.permute.xlu0 %917  ;;  %v3198_v63 = vor.u32 %v1040_v23, %v1039_v50  ;;  %v816_v23 = vrot.slane %v3235_v39, 1 }
  0xc8   : > { %704 = vrot.lane.b32.xlu1 %v669_v4, %s2452_s6  ;;  %v1318_v48 = vsel %vm1304_vm9, %v1277_v57, %v918_v43  ;;  %v1369_v4 = vsel %vm1359_vm11, %v918_v43, %v956_v33  ;;  %v3232_v33 = vshll.u32 %v3218_v59, 16  ;;  %v815_v43 = vsel %vm752_vm1, %v3162_v5, %v814_v29 }
  0xc9   : > { %1088 = vrot.lane.b32.xlu0 %v1038_v12, %s2457_s8  ;;  %1792 = vmatprep.mubr.bf16.mxu0 %v1318_v48  ;;  %v1042_v55 = vsel %vm983_vm4, %v1037_v47, %v3198_v63  ;;  %v1115_v12 = vsel %vm1100_vm5, %v1112_v44, %v1114_v19  ;;  %v1043_v48 = vrot.slane %v3235_v39, 2  ;;  %v904_v44 = vsel %vm871_vm0, %v901_v13, %v903_v41 }
  0xca   : > { %v689_v37 = vpop.permute.xlu1 %688  ;;  %1793 = vmatmul.mubr.bf16.gmra.mxu0 %v1189_v40  ;;  %v817_v40 = vrot.slane %v3232_v33, 2  ;;  %v674_v13 = vrot.slane %v3218_v59, 1 }
  0xcb   : > { %v1073_v61 = vpop.permute.xlu0 %1072 }
  0xcc   : > { %861 = vrot.lane.b32.xlu1 %v811_v49, %s2454_s10  ;;  %v1410_v54 = vsel %vm1396_vm12, %v1369_v4, %v1073_v61  ;;  %v1044_v49 = vrot.slane %v3232_v33, 3  ;;  %v3260_v60 = vor.u32 %v817_v40, %v816_v23  ;;  %v675_v8 = vsel %vm640_vm2, %v672_v46, %v674_v13 }
  0xcd   : > { %742 = vrot.lane.b32.xlu0 %v671_v53, %s2453_s7  ;;  %1970 = vmatmul.mubr.bf16.gmra.mxu1 %v1410_v54  ;;  %v1118_v23 = vrot.slane %v2930_v28, 3 }
  0xce   : > { %v846_v16 = vpop.permute.xlu1 %845  ;;  %2321 = vmatprep.mubr.msk.bf16.mxu1 %vm1138_vm6, %v1113_v62 }
  0xcf   : > { %v727_v30 = vpop.permute.xlu0 %726 }
  0xd0   : > { %935 = vrot.lane.b32.xlu1 %v900_v34, %s2455_s19  ;;  %v1242_v2 = vsel %vm1230_vm7, %v689_v37, %v727_v30 }
  0xd1   : > { %v1279_v18 = vsel %vm1267_vm8, %v1242_v2, %v846_v16  ;;  %630 = vrot.lane.b32.xlu0 %v571_v9, %s2456_s20 }
  0xd2   : > { %v920_v58 = vpop.permute.xlu1 %919 }
  0xd3   : > { %v1321_v21 = vsel %vm1304_vm9, %v1279_v18, %v920_v58  ;;  %v615_v6 = vpop.permute.xlu0 %614 }
  0xd4   : > { %1090 = vrot.lane.b32.xlu1 %v1042_v55, %s2457_s8  ;;  %1800 = vmatprep.mubr.bf16.mxu0 %v1321_v21  ;;  %v1150_v34 = vsel %vm1138_vm6, %v2425_v24, %v615_v6  ;;  %v1116_v55 = vrot.slane %v2897_v1, 3  ;;  %v586_v6 = vrot.slane %v3165_v56, 1 }
  0xd5   : > { %973 = vrot.lane.b32.xlu0 %v902_v10, %s2451_s29  ;;  %v1192_v0 = vsel %vm1175_vm10, %v1150_v34, %v689_v37  ;;  %v3256_v37 = vld [vmem:[%s2884_s27] sm:$0xff]  }
  0xd6   : > { %v1075_v47 = vpop.permute.xlu1 %1074  ;;  %1801 = vmatmul.mubr.bf16.gmra.mxu0 %v1192_v0  ;;  %v3263_v4 = vshll.u32 %v3256_v37, 16  ;;  %v820_v61 = vshrl.u32 %v3256_v37, 16  ;;  %v1117_v34 = vsel %vm1100_vm5, %v1114_v19, %v1116_v55  ;;  %v587_v15 = vsel %vm455_vm3, %v582_v7, %v586_v6 }
  0xd7   : > { %v958_v31 = vpop.permute.xlu0 %957  ;;  %v905_v56 = vrot.slane %v3256_v37, 2  ;;  %v676_v25 = vrot.slane %v3256_v37, 1 }
  0xd8   : > { %744 = vrot.lane.b32.xlu1 %v673_v22, %s2453_s7  ;;  %v1371_v17 = vsel %vm1359_vm11, %v920_v58, %v958_v31  ;;  %v819_v58 = vsel %vm752_vm1, %v814_v29, %v3260_v60 }
  0xd9   : > { %706 = vrot.lane.b32.xlu0 %v671_v53, %s2452_s6  ;;  %v1413_v38 = vsel %vm1396_vm12, %v1371_v17, %v1075_v47  ;;  %v1045_v53 = vor.u32 %v1044_v49, %v1043_v48  ;;  %v677_v49 = vsel %vm640_vm2, %v674_v13, %v676_v25 }
  0xda   : > { %v729_v57 = vpop.permute.xlu1 %728  ;;  %1978 = vmatmul.mubr.bf16.gmra.mxu1 %v1413_v38  ;;  %v822_v38 = vrot.slane %v820_v61, 1 }
  0xdb   : > { %v691_v50 = vpop.permute.xlu0 %690  ;;  %2322 = vmatprep.mubr.msk.bf16.mxu1 %vm1138_vm6, %v1115_v12  ;;  %v1046_v9 = vsel %vm983_vm4, %v3198_v63, %v1045_v53 }
  0xdc   : > { %632 = vrot.lane.b32.xlu1 %v579_v11, %s2456_s20  ;;  %v1244_v54 = vsel %vm1230_vm7, %v691_v50, %v729_v57  ;;  %v906_v11 = vsel %vm871_vm0, %v903_v41, %v905_v56  ;;  %v823_v57 = vrot.slane %v3263_v4, 2  ;;  %v590_v41 = vor.u32 %v3168_v32, %v586_v6 }
  0xdd   : > { %863 = vrot.lane.b32.xlu0 %v815_v43, %s2454_s10  ;;  %v3310_v43 = vld [vmem:[%s2884_s27 + $0x8] sm:$0xff]  }
  0xde   : > { %v617_v5 = vpop.permute.xlu1 %616 }
  0xdf   : > { %v848_v51 = vpop.permute.xlu0 %847  ;;  %v1152_v16 = vsel %vm1138_vm6, %v2717_v35, %v617_v5  ;;  %v1048_v35 = vrot.slane %v3263_v4, 3 }
  0xe0   : > { %975 = vrot.lane.b32.xlu1 %v904_v44, %s2451_s29  ;;  %v1281_v30 = vsel %vm1267_vm8, %v1244_v54, %v848_v51  ;;  %v1195_v63 = vsel %vm1175_vm10, %v1152_v16, %v691_v50  ;;  %v827_v51 = vshrl.u32 %v3310_v43, 16  ;;  %v1119_v54 = vsel %vm1100_vm5, %v1116_v55, %v1118_v23 }
  0xe1   : > { %937 = vrot.lane.b32.xlu0 %v902_v10, %s2455_s19  ;;  %v1047_v10 = vrot.slane %v820_v61, 2  ;;  %v830_v61 = vshll.u32 %v3310_v43, 16 }
  0xe2   : > { %v960_v62 = vpop.permute.xlu1 %959 }
  0xe3   : > { %v922_v2 = vpop.permute.xlu0 %921  ;;  %v3291_v0 = vor.u32 %v1048_v35, %v1047_v10  ;;  %v832_v10 = vrot.slane %v830_v61, 2  ;;  %v3340_v35 = vld [vmem:[%s2884_s27 + $0x10] sm:$0xff]  }
  0xe4   : > { %708 = vrot.lane.b32.xlu1 %v673_v22, %s2452_s6  ;;  %v1324_v18 = vsel %vm1304_vm9, %v1281_v30, %v922_v2  ;;  %v1373_v22 = vsel %vm1359_vm11, %v922_v2, %v960_v62  ;;  %v1051_v30 = vrot.slane %v827_v51, 2  ;;  %v1052_v2 = vrot.slane %v830_v61, 3 }
  0xe5   : > { %1092 = vrot.lane.b32.xlu0 %v1046_v9, %s2457_s8  ;;  %1808 = vmatprep.mubr.bf16.mxu0 %v1324_v18  ;;  %v1050_v29 = vsel %vm983_vm4, %v1045_v53, %v3291_v0  ;;  %v824_v53 = vor.u32 %v823_v57, %v822_v38  ;;  %v1056_v7 = vshrl.u32 %v3340_v35, 16  ;;  %v1059_v6 = vshll.u32 %v3340_v35, 16 }
  0xe6   : > { %v693_v21 = vpop.permute.xlu1 %692  ;;  %1809 = vmatmul.mubr.bf16.gmra.mxu0 %v1195_v63  ;;  %v602_v38 = vrot.slane %v3263_v4, 1 }
  0xe7   : > { %v1077_v24 = vpop.permute.xlu0 %1076  ;;  %v825_v13 = vsel %vm752_vm1, %v3260_v60, %v824_v53 }
  0xe8   : > { %865 = vrot.lane.b32.xlu1 %v819_v58, %s2454_s10  ;;  %v1416_v20 = vsel %vm1396_vm12, %v1373_v22, %v1077_v24  ;;  %v829_v58 = vrot.slane %v827_v51, 1 }
  0xe9   : > { %746 = vrot.lane.b32.xlu0 %v675_v8, %s2453_s7  ;;  %1986 = vmatmul.mubr.bf16.gmra.mxu1 %v1416_v20 }
  0xea   : > { %v850_v47 = vpop.permute.xlu1 %849  ;;  %2323 = vmatprep.mubr.msk.bf16.mxu1 %vm1138_vm6, %v1117_v34 }
  0xeb   : > { %v731_v46 = vpop.permute.xlu0 %730 }
  0xec   : > { %939 = vrot.lane.b32.xlu1 %v904_v44, %s2455_s19  ;;  %v1246_v19 = vsel %vm1230_vm7, %v693_v21, %v731_v46  ;;  %v594_v44 = vrot.slane %v3232_v33, 1  ;;  %v907_v33 = vrot.slane %v3310_v43, 2  ;;  %v1120_v46 = vrot.slane %v2957_v45, 3 }
  0xed   : > { %v1283_v31 = vsel %vm1267_vm8, %v1246_v19, %v850_v47  ;;  %634 = vrot.lane.b32.xlu0 %v587_v15, %s2456_s20  ;;  %v714_v47 = vrot.slane %v3310_v43, 1 }
  0xee   : > { %v924_v17 = vpop.permute.xlu1 %923  ;;  %v595_v32 = vsel %vm455_vm3, %v590_v41, %v594_v44  ;;  %v908_v55 = vsel %vm871_vm0, %v905_v56, %v907_v33 }
  0xef   : > { %v1327_v12 = vsel %vm1304_vm9, %v1283_v31, %v924_v17  ;;  %v619_v48 = vpop.permute.xlu0 %618  ;;  %v1058_v31 = vrot.slane %v1056_v7, 2 }
  0xf0   : > { %1094 = vrot.lane.b32.xlu1 %v1050_v29, %s2457_s8  ;;  %1816 = vmatprep.mubr.bf16.mxu0 %v1327_v12  ;;  %v1154_v50 = vsel %vm1138_vm6, %v2806_v14, %v619_v48  ;;  %v598_v12 = vor.u32 %v3235_v39, %v594_v44  ;;  %v945_v39 = vrot.slane %v3340_v35, 2 }
  0xf1   : > { %977 = vrot.lane.b32.xlu0 %v906_v11, %s2451_s29  ;;  %v1198_v40 = vsel %vm1175_vm10, %v1154_v50, %v693_v21  ;;  %v1053_v21 = vor.u32 %v1052_v2, %v1051_v30 }
  0xf2   : > { %v1079_v5 = vpop.permute.xlu1 %1078  ;;  %1817 = vmatmul.mubr.bf16.gmra.mxu0 %v1198_v40  ;;  %v946_v51 = vsel %vm871_vm0, %v907_v33, %v945_v39 }
  0xf3   : > { %v962_v62 = vpop.permute.xlu0 %961  ;;  %v1054_v20 = vsel %vm983_vm4, %v3291_v0, %v1053_v21 }
  0xf4   : > { %748 = vrot.lane.b32.xlu1 %v677_v49, %s2453_s7  ;;  %v1375_v14 = vsel %vm1359_vm11, %v924_v17, %v962_v62  ;;  %v1061_v17 = vrot.slane %v1059_v6, 3 }
  0xf5   : > { %710 = vrot.lane.b32.xlu0 %v675_v8, %s2452_s6  ;;  %v1419_v16 = vsel %vm1396_vm12, %v1375_v14, %v1079_v5  ;;  %v833_v8 = vor.u32 %v832_v10, %v829_v58 }
  0xf6   : > { %v733_v9 = vpop.permute.xlu1 %732  ;;  %1994 = vmatmul.mubr.bf16.gmra.mxu1 %v1419_v16  ;;  %v1062_v41 = vor.u32 %v1061_v17, %v1058_v31 }
  0xf7   : > { %v695_v18 = vpop.permute.xlu0 %694  ;;  %2324 = vmatprep.mubr.msk.bf16.mxu1 %vm1138_vm6, %v1119_v54  ;;  %v834_v29 = vsel %vm752_vm1, %v824_v53, %v833_v8  ;;  %v1124_v8 = vrot.slane %v3058_v3, 3 }
  0xf8   : > { %636 = vrot.lane.b32.xlu1 %v595_v32, %s2456_s20  ;;  %v1248_v24 = vsel %vm1230_vm7, %v695_v18, %v733_v9  ;;  %v1122_v32 = vrot.slane %v3017_v36, 3 }
  0xf9   : > { %867 = vrot.lane.b32.xlu0 %v825_v13, %s2454_s10 }
  0xfa   : > { %v621_v63 = vpop.permute.xlu1 %620  ;;  %v1123_v13 = vsel %vm1100_vm5, %v1120_v46, %v1122_v32 }
  0xfb   : > { %v852_v60 = vpop.permute.xlu0 %851  ;;  %v1156_v34 = vsel %vm1138_vm6, %v2832_v26, %v621_v63 }
  0xfc   : > { %979 = vrot.lane.b32.xlu1 %v908_v55, %s2451_s29  ;;  %v1285_v15 = vsel %vm1267_vm8, %v1248_v24, %v852_v60  ;;  %v1201_v26 = vsel %vm1175_vm10, %v1156_v34, %v695_v18 }
  0xfd   : > { %941 = vrot.lane.b32.xlu0 %v906_v11, %s2455_s19  ;;  %v715_v11 = vsel %vm640_vm2, %v676_v25, %v714_v47  ;;  %v603_v25 = vsel %vm455_vm3, %v598_v12, %v602_v38 }
  0xfe   : > { %v964_v22 = vpop.permute.xlu1 %963 }
  0xff   : > { %v926_v56 = vpop.permute.xlu0 %925 }
 0x100   : > { %712 = vrot.lane.b32.xlu1 %v677_v49, %s2452_s6  ;;  %v1330_v19 = vsel %vm1304_vm9, %v1285_v15, %v926_v56  ;;  %v1377_v57 = vsel %vm1359_vm11, %v926_v56, %v964_v22  ;;  %v1121_v49 = vsel %vm1100_vm5, %v1118_v23, %v1120_v46  ;;  %v1063_v23 = vsel %vm983_vm4, %v1053_v21, %v1062_v41 }
 0x101   : > { %1096 = vrot.lane.b32.xlu0 %v1054_v20, %s2457_s8  ;;  %1824 = vmatprep.mubr.bf16.mxu0 %v1330_v19  ;;  %v1125_v20 = vsel %vm1100_vm5, %v1122_v32, %v1124_v8 }
 0x102   : > { %v697_v0 = vpop.permute.xlu1 %696  ;;  %1825 = vmatmul.mubr.bf16.gmra.mxu0 %v1201_v26  ;;  %v1126_v26 = vrot.slane %v3118_v42, 3 }
 0x103   : > { %v1081_v48 = vpop.permute.xlu0 %1080 }
 0x104   : > { %869 = vrot.lane.b32.xlu1 %v834_v29, %s2454_s10  ;;  %v1422_v50 = vsel %vm1396_vm12, %v1377_v57, %v1081_v48  ;;  %v1127_v57 = vsel %vm1100_vm5, %v1124_v8, %v1126_v26 }
 0x105   : > { %750 = vrot.lane.b32.xlu0 %v715_v11, %s2453_s7  ;;  %2002 = vmatmul.mubr.bf16.gmra.mxu1 %v1422_v50 }
 0x106   : > { %v854_v40 = vpop.permute.xlu1 %853  ;;  %2325 = vmatprep.mubr.msk.bf16.mxu1 %vm1138_vm6, %v1121_v49 }
 0x107   : > { %v735_v4 = vpop.permute.xlu0 %734 }
 0x108   : > { %943 = vrot.lane.b32.xlu1 %v908_v55, %s2455_s19  ;;  %v1250_v44 = vsel %vm1230_vm7, %v697_v0, %v735_v4 }
 0x109   : > { %v1287_v5 = vsel %vm1267_vm8, %v1250_v44, %v854_v40  ;;  %638 = vrot.lane.b32.xlu0 %v603_v25, %s2456_s20 }
 0x10a   : > { %v928_v53 = vpop.permute.xlu1 %927 }
 0x10b   : > { %v1333_v61 = vsel %vm1304_vm9, %v1287_v5, %v928_v53  ;;  %v623_v62 = vpop.permute.xlu0 %622 }
 0x10c   : > { %1832 = vmatprep.mubr.bf16.mxu0 %v1333_v61  ;;  %1098 = vrot.lane.b32.xlu1 %v1063_v23, %s2457_s8  ;;  %v1158_v14 = vsel %vm1138_vm6, %v2865_v52, %v623_v62  ;;  %v1128_v23 = vrot.slane %v3158_v27, 3 }
 0x10d   : > { %981 = vrot.lane.b32.xlu0 %v946_v51, %s2451_s29  ;;  %v1204_v54 = vsel %vm1175_vm10, %v1158_v14, %v697_v0  ;;  %s2340_s29 = smul.u32 288, %s3615_s15 }
 0x10e   : > { %v1083_v16 = vpop.permute.xlu1 %1082  ;;  %1833 = vmatmul.mubr.bf16.gmra.mxu0 %v1204_v54  ;;  %v1129_v14 = vsel %vm1100_vm5, %v1126_v26, %v1128_v23 }
 0x10f   : > { %v966_v9 = vpop.permute.xlu0 %965  ;;  %s3458_s10 = scalar_lea.vmem %s3609_s4, %s2340_s29 }
 0x110   : > { %v1379_v33 = vsel %vm1359_vm11, %v928_v53, %v966_v9 }
 0x111   : > { %v1425_v30 = vsel %vm1396_vm12, %v1379_v33, %v1083_v16 }
 0x112   : > { %v737_v2 = vpop.permute.xlu1 %736  ;;  %2010 = vmatmul.mubr.bf16.gmra.mxu1 %v1425_v30 }
 0x113   : > { %v699_v18 = vpop.permute.xlu0 %698  ;;  %2326 = vmatprep.mubr.msk.bf16.mxu1 %vm1138_vm6, %v1123_v13 }
 0x114   : > { %v1252_v10 = vsel %vm1230_vm7, %v699_v18, %v737_v2 }
 0x116   : > { %v625_v52 = vpop.permute.xlu1 %624 }
 0x117   : > { %v856_v55 = vpop.permute.xlu0 %855  ;;  %v1160_v63 = vsel %vm1138_vm6, %v2897_v1, %v625_v52 }
 0x118   : > { %v1289_v21 = vsel %vm1267_vm8, %v1252_v10, %v856_v55  ;;  %v1207_v6 = vsel %vm1175_vm10, %v1160_v63, %v699_v18  ;;  %v1130_v18 = vrot.slane %v3218_v59, 3 }
 0x11a   : > { %v968_v58 = vpop.permute.xlu1 %967  ;;  %v1131_v63 = vsel %vm1100_vm5, %v1128_v23, %v1130_v18 }
 0x11b   : > { %v930_v60 = vpop.permute.xlu0 %929 }
 0x11c   : > { %v1336_v7 = vsel %vm1304_vm9, %v1289_v21, %v930_v60  ;;  %v1381_v24 = vsel %vm1359_vm11, %v930_v60, %v968_v58 }
 0x11d   : > { %1840 = vmatprep.mubr.bf16.mxu0 %v1336_v7 }
 0x11e   : > { %v701_v22 = vpop.permute.xlu1 %700  ;;  %1841 = vmatmul.mubr.bf16.gmra.mxu0 %v1207_v6 }
 0x11f   : > { %v1085_v34 = vpop.permute.xlu0 %1084 }
 0x120   : > { %v1428_v47 = vsel %vm1396_vm12, %v1381_v24, %v1085_v34 }
 0x121   : > { %2018 = vmatmul.mubr.bf16.gmra.mxu1 %v1428_v47  ;;  %v3443_v47 = vld [vmem:[%s3608_s3] ss:$0 sm:$0xff] }
 0x122   : > { %v858_v1 = vpop.permute.xlu1 %857  ;;  %2327 = vmatprep.mubr.msk.bf16.mxu1 %vm1138_vm6, %v1125_v20 }
 0x123   : > { %v739_v15 = vpop.permute.xlu0 %738 }
 0x124   : > { %v1254_v56 = vsel %vm1230_vm7, %v701_v22, %v739_v15 }
 0x125   : > { %v1291_v46 = vsel %vm1267_vm8, %v1254_v56, %v858_v1  ;;  %v1132_v1 = vrot.slane %v3256_v37, 3 }
 0x126   : > { %v932_v19 = vpop.permute.xlu1 %931 }
 0x127   : > { %v1339_v29 = vsel %vm1304_vm9, %v1291_v46, %v932_v19  ;;  %v627_v31 = vpop.permute.xlu0 %626  ;;  %v1133_v26 = vsel %vm1100_vm5, %v1130_v18, %v1132_v1 }
 0x128   : > { %1848 = vmatprep.mubr.bf16.mxu0 %v1339_v29  ;;  %v1162_v17 = vsel %vm1138_vm6, %v2930_v28, %v627_v31 }
 0x129   : > { %v1210_v0 = vsel %vm1175_vm10, %v1162_v17, %v701_v22 }
 0x12a   : > { %v1087_v11 = vpop.permute.xlu1 %1086  ;;  %1849 = vmatmul.mubr.bf16.gmra.mxu0 %v1210_v0 }
 0x12b   : > { %v970_v12 = vpop.permute.xlu0 %969 }
 0x12c   : > { %v1383_v38 = vsel %vm1359_vm11, %v932_v19, %v970_v12 }
 0x12d   : > { %v1431_v48 = vsel %vm1396_vm12, %v1383_v38, %v1087_v11 }
 0x12e   : > { %v741_v49 = vpop.permute.xlu1 %740  ;;  %2026 = vmatmul.mubr.bf16.gmra.mxu1 %v1431_v48 }
 0x12f   : > { %v703_v50 = vpop.permute.xlu0 %702  ;;  %2328 = vmatprep.mubr.msk.bf16.mxu1 %vm1138_vm6, %v1127_v57 }
 0x130   : > { %v1256_v25 = vsel %vm1230_vm7, %v703_v50, %v741_v49 }
 0x132   : > { %v629_v41 = vpop.permute.xlu1 %628 }
 0x133   : > { %v860_v28 = vpop.permute.xlu0 %859  ;;  %v1164_v39 = vsel %vm1138_vm6, %v2957_v45, %v629_v41 }
 0x134   : > { %v1293_v4 = vsel %vm1267_vm8, %v1256_v25, %v860_v28  ;;  %v1213_v53 = vsel %vm1175_vm10, %v1164_v39, %v703_v50 }
 0x136   : > { %v972_v40 = vpop.permute.xlu1 %971 }
 0x137   : > { %v934_v44 = vpop.permute.xlu0 %933 }
 0x138   : > { %v1342_v5 = vsel %vm1304_vm9, %v1293_v4, %v934_v44  ;;  %v1385_v61 = vsel %vm1359_vm11, %v934_v44, %v972_v40 }
 0x139   : > { %1856 = vmatprep.mubr.bf16.mxu0 %v1342_v5 }
 0x13a   : > { %v705_v51 = vpop.permute.xlu1 %704  ;;  %1857 = vmatmul.mubr.bf16.gmra.mxu0 %v1213_v53 }
 0x13b   : > { %v1089_v62 = vpop.permute.xlu0 %1088 }
 0x13c   : > { %v1434_v32 = vsel %vm1396_vm12, %v1385_v61, %v1089_v62 }
 0x13d   : > { %2034 = vmatmul.mubr.bf16.gmra.mxu1 %v1434_v32 }
 0x13e   : > { %v862_v45 = vpop.permute.xlu1 %861  ;;  %2329 = vmatprep.mubr.msk.bf16.mxu1 %vm1138_vm6, %v1129_v14  ;;  %v1134_v14 = vrot.slane %v3310_v43, 3 }
 0x13f   : > { %v743_v54 = vpop.permute.xlu0 %742 }
 0x140   : > { %v1258_v16 = vsel %vm1230_vm7, %v705_v51, %v743_v54  ;;  %v1135_v43 = vsel %vm1100_vm5, %v1132_v1, %v1134_v14 }
 0x141   : > { %v1295_v9 = vsel %vm1267_vm8, %v1258_v16, %v862_v45 }
 0x142   : > { %v936_v33 = vpop.permute.xlu1 %935 }
 0x143   : > { %v1345_v13 = vsel %vm1304_vm9, %v1295_v9, %v936_v33  ;;  %v631_v30 = vpop.permute.xlu0 %630 }
 0x144   : > { %1864 = vmatprep.mubr.bf16.mxu0 %v1345_v13  ;;  %v1166_v2 = vsel %vm1138_vm6, %v3017_v36, %v631_v30 }
 0x145   : > { %v1216_v52 = vsel %vm1175_vm10, %v1166_v2, %v705_v51 }
 0x146   : > { %v1091_v55 = vpop.permute.xlu1 %1090  ;;  %1865 = vmatmul.mubr.bf16.gmra.mxu0 %v1216_v52 }
 0x147   : > { %v974_v58 = vpop.permute.xlu0 %973 }
 0x148   : > { %v1387_v10 = vsel %vm1359_vm11, %v936_v33, %v974_v58 }
 0x149   : > { %v1437_v21 = vsel %vm1396_vm12, %v1387_v10, %v1091_v55 }
 0x14a   : > { %v745_v60 = vpop.permute.xlu1 %744  ;;  %2042 = vmatmul.mubr.bf16.gmra.mxu1 %v1437_v21 }
 0x14b   : > { %v707_v8 = vpop.permute.xlu0 %706  ;;  %2330 = vmatprep.mubr.msk.bf16.mxu1 %vm1138_vm6, %v1131_v63 }
 0x14c   : > { %v1260_v22 = vsel %vm1230_vm7, %v707_v8, %v745_v60 }
 0x14e   : > { %v633_v7 = vpop.permute.xlu1 %632 }
 0x14f   : > { %v864_v36 = vpop.permute.xlu0 %863  ;;  %v1168_v24 = vsel %vm1138_vm6, %v3058_v3, %v633_v7 }
 0x150   : > { %v1297_v34 = vsel %vm1267_vm8, %v1260_v22, %v864_v36  ;;  %v1219_v46 = vsel %vm1175_vm10, %v1168_v24, %v707_v8 }
 0x152   : > { %v976_v6 = vpop.permute.xlu1 %975 }
 0x153   : > { %v938_v20 = vpop.permute.xlu0 %937 }
 0x154   : > { %v1348_v15 = vsel %vm1304_vm9, %v1297_v34, %v938_v20  ;;  %v1389_v31 = vsel %vm1359_vm11, %v938_v20, %v976_v6 }
 0x155   : > { %v1762_v56 = vpop.f32.mrf.mxu0  ;;  %1872 = vmatprep.mubr.bf16.mxu0 %v1348_v15 }
 0x156   : > { %v709_v19 = vpop.permute.xlu1 %708  ;;  %v1763_v29 = vadd.f32 %v3443_v47, %v1762_v56  ;;  %1873 = vmatmul.mubr.bf16.gmra.mxu0 %v1219_v46  ;;  %v1136_v56 = vrot.slane %v3340_v35, 3 }
 0x157   : > { %v1764_v3 = vpop.f32.mrf.mxu0  ;;  %v1093_v17 = vpop.permute.xlu0 %1092 }
 0x158   : > { %v1440_v0 = vsel %vm1396_vm12, %v1389_v31, %v1093_v17  ;;  %v1137_v35 = vsel %vm1100_vm5, %v1134_v14, %v1136_v56 }
 0x159   : > { %v1765_v37 = vpop.f32.mrf.mxu0  ;;  %v1939_v11 = vpop.f32.mrf.mxu1  ;;  %2050 = vmatmul.mubr.bf16.gmra.mxu1 %v1440_v0 }
 0x15a   : > { %v866_v12 = vpop.permute.xlu1 %865  ;;  %v1940_v38 = vadd.f32 %v1939_v11, %v1763_v29  ;;  %v1766_v57 = vadd.f32 %v3443_v47, %v1765_v37  ;;  %2331 = vmatprep.mubr.msk.bf16.mxu1 %vm1138_vm6, %v1133_v26 }
 0x15b   : > { %v1767_v48 = vpop.f32.mrf.mxu0  ;;  %v1941_v49 = vpop.f32.mrf.mxu1 }
 0x15c   : > { %v747_v50 = vpop.permute.xlu0 %746  ;;  %v2082_v41 = vmax.f32 %v1940_v38, 0.0 }
 0x15d   : > { %v1262_v28 = vsel %vm1230_vm7, %v709_v19, %v747_v50  ;;  %v1942_v25 = vpop.f32.mrf.mxu1 }
 0x15e   : > { %v1299_v40 = vsel %vm1267_vm8, %v1262_v28, %v866_v12  ;;  %v940_v39 = vpop.permute.xlu1 %939  ;;  %2118 = vst.msk [vmem:[%s3458_s10] sm:$0xff] %vm1267_vm8, %v2082_v41  ;;  %v1943_v4 = vadd.f32 %v1942_v25, %v1766_v57  ;;  %v1770_v44 = vpop.f32.mrf.mxu0 }
 0x15f   : > { %v1351_v23 = vsel %vm1304_vm9, %v1299_v40, %v940_v39  ;;  %v1944_v5 = vpop.f32.mrf.mxu1  ;;  %v1771_v32 = vadd.f32 %v3443_v47, %v1770_v44 }
 0x160   : > { %v635_v53 = vpop.permute.xlu0 %634  ;;  %1880 = vmatprep.mubr.bf16.mxu0 %v1351_v23  ;;  %v2083_v51 = vmax.f32 %v1943_v4, 0.0  ;;  %v1772_v62 = vpop.f32.mrf.mxu0 }
 0x161   : > { %v1170_v61 = vsel %vm1138_vm6, %v3118_v42, %v635_v53 }
 0x162   : > { %v1222_v45 = vsel %vm1175_vm10, %v1170_v61, %v709_v19  ;;  %v1095_v54 = vpop.permute.xlu1 %1094  ;;  %2119 = vst.msk [vmem:[%s3458_s10 + $0x8] sm:$0xff] %vm1267_vm8, %v2083_v51  ;;  %v1773_v16 = vpop.f32.mrf.mxu0 }
 0x163   : > { %1881 = vmatmul.mubr.bf16.gmra.mxu0 %v1222_v45  ;;  %v1947_v9 = vpop.f32.mrf.mxu1  ;;  %v1774_v18 = vadd.f32 %v3443_v47, %v1773_v16 }
 0x164   : > { %v1948_v33 = vadd.f32 %v1947_v9, %v1771_v32  ;;  %v978_v13 = vpop.permute.xlu0 %977  ;;  %v1775_v2 = vpop.f32.mrf.mxu0 }
 0x165   : > { %v1391_v30 = vsel %vm1359_vm11, %v940_v39, %v978_v13  ;;  %v1949_v42 = vpop.f32.mrf.mxu1 }
 0x166   : > { %v2084_v52 = vmax.f32 %v1948_v33, 0.0  ;;  %v1443_v55 = vsel %vm1396_vm12, %v1391_v30, %v1095_v54  ;;  %v749_v58 = vpop.permute.xlu1 %748 }
 0x167   : > { %v1950_v10 = vpop.f32.mrf.mxu1  ;;  %2058 = vmatmul.mubr.bf16.gmra.mxu1 %v1443_v55 }
 0x168   : > { %2120 = vst.msk [vmem:[%s3458_s10 + $0x10] sm:$0xff] %vm1267_vm8, %v2084_v52  ;;  %v1951_v63 = vadd.f32 %v1950_v10, %v1774_v18  ;;  %v711_v21 = vpop.permute.xlu0 %710  ;;  %2332 = vmatprep.mubr.msk.bf16.mxu1 %vm1138_vm6, %v1135_v43 }
 0x169   : > { %v1952_v60 = vpop.f32.mrf.mxu1  ;;  %v1264_v22 = vsel %vm1230_vm7, %v711_v21, %v749_v58 }
 0x16a   : > { %v2085_v8 = vmax.f32 %v1951_v63, 0.0  ;;  %v637_v7 = vpop.permute.xlu1 %636 }
 0x16b   : > { %v1172_v24 = vsel %vm1138_vm6, %v3158_v27, %v637_v7 }
 0x16c   : > { %2121 = vst.msk [vmem:[%s3458_s10 + $0x18] sm:$0xff] %vm1267_vm8, %v2085_v8  ;;  %v868_v36 = vpop.permute.xlu0 %867  ;;  %v1225_v3 = vsel %vm1175_vm10, %v1172_v24, %v711_v21 }
 0x16d   : > { %v1301_v20 = vsel %vm1267_vm8, %v1264_v22, %v868_v36 }
 0x16e   : > { %v980_v6 = vpop.permute.xlu1 %979  ;;  %v1778_v34 = vpop.f32.mrf.mxu0 }
 0x16f   : > { %v1779_v1 = vadd.f32 %v3443_v47, %v1778_v34 }
 0x170   : > { %v942_v15 = vpop.permute.xlu0 %941  ;;  %v1780_v46 = vpop.f32.mrf.mxu0 }
 0x171   : > { %v1354_v19 = vsel %vm1304_vm9, %v1301_v20, %v942_v15  ;;  %v1955_v29 = vpop.f32.mrf.mxu1  ;;  %v1393_v27 = vsel %vm1359_vm11, %v942_v15, %v980_v6 }
 0x172   : > { %1888 = vmatprep.mubr.bf16.mxu0 %v1354_v19  ;;  %v713_v31 = vpop.permute.xlu1 %712  ;;  %v1956_v17 = vadd.f32 %v1955_v29, %v1779_v1  ;;  %v1781_v26 = vpop.f32.mrf.mxu0 }
 0x173   : > { %1889 = vmatmul.mubr.bf16.gmra.mxu0 %v1225_v3  ;;  %v1782_v0 = vadd.f32 %v3443_v47, %v1781_v26  ;;  %v1957_v11 = vpop.f32.mrf.mxu1 }
 0x174   : > { %v1097_v37 = vpop.permute.xlu0 %1096  ;;  %v2086_v12 = vmax.f32 %v1956_v17, 0.0  ;;  %v1783_v38 = vpop.f32.mrf.mxu0 }
 0x175   : > { %v1446_v57 = vsel %vm1396_vm12, %v1393_v27, %v1097_v37  ;;  %v1958_v48 = vpop.f32.mrf.mxu1 }
 0x176   : > { %2066 = vmatmul.mubr.bf16.gmra.mxu1 %v1446_v57  ;;  %v870_v49 = vpop.permute.xlu1 %869  ;;  %2122 = vst.msk [vmem:[%s3458_s10 + $0x20] sm:$0xff] %vm1267_vm8, %v2086_v12  ;;  %v1959_v50 = vadd.f32 %v1958_v48, %v1782_v0 }
 0x177   : > { %2333 = vmatprep.mubr.msk.bf16.mxu1 %vm1138_vm6, %v1137_v35  ;;  %v1960_v28 = vpop.f32.mrf.mxu1 }
 0x178   : > { %v751_v41 = vpop.permute.xlu0 %750  ;;  %v2087_v40 = vmax.f32 %v1959_v50, 0.0 }
 0x179   : > { %v1266_v25 = vsel %vm1230_vm7, %v713_v31, %v751_v41 }
 0x17a   : > { %v1303_v39 = vsel %vm1267_vm8, %v1266_v25, %v870_v49  ;;  %v944_v4 = vpop.permute.xlu1 %943  ;;  %2123 = vst.msk [vmem:[%s3458_s10 + $0x28] sm:$0xff] %vm1267_vm8, %v2087_v40  ;;  %v1786_v44 = vpop.f32.mrf.mxu0 }
 0x17b   : > { %v1357_v23 = vsel %vm1304_vm9, %v1303_v39, %v944_v4  ;;  %v1787_v61 = vadd.f32 %v3443_v47, %v1786_v44 }
 0x17c   : > { %v639_v5 = vpop.permute.xlu0 %638  ;;  %1896 = vmatprep.mubr.bf16.mxu0 %v1357_v23  ;;  %v1788_v51 = vpop.f32.mrf.mxu0 }
 0x17d   : > { %v1174_v53 = vsel %vm1138_vm6, %v3218_v59, %v639_v5 }
 0x17e   : > { %v1228_v62 = vsel %vm1175_vm10, %v1174_v53, %v713_v31  ;;  %v1099_v14 = vpop.permute.xlu1 %1098  ;;  %v1789_v32 = vpop.f32.mrf.mxu0 }
 0x17f   : > { %1897 = vmatmul.mubr.bf16.gmra.mxu0 %v1228_v62  ;;  %v1963_v45 = vpop.f32.mrf.mxu1  ;;  %v1790_v30 = vadd.f32 %v3443_v47, %v1789_v32 }
 0x180   : > { %v1964_v54 = vadd.f32 %v1963_v45, %v1787_v61  ;;  %v982_v16 = vpop.permute.xlu0 %981  ;;  %v1791_v33 = vpop.f32.mrf.mxu0 }
 0x181   : > { %v1395_v9 = vsel %vm1359_vm11, %v944_v4, %v982_v16  ;;  %v1965_v13 = vpop.f32.mrf.mxu1 }
 0x182   : > { %v2088_v59 = vmax.f32 %v1964_v54, 0.0  ;;  %v1449_v2 = vsel %vm1396_vm12, %v1395_v9, %v1099_v14 }
 0x183   : > { %v1966_v42 = vpop.f32.mrf.mxu1  ;;  %2074 = vmatmul.mubr.bf16.gmra.mxu1 %v1449_v2 }
 0x184   : > { %2124 = vst.msk [vmem:[%s3458_s10 + $0x30] sm:$0xff] %vm1267_vm8, %v2088_v59  ;;  %v1967_v43 = vadd.f32 %v1966_v42, %v1790_v30 }
 0x185   : > { %v1968_v18 = vpop.f32.mrf.mxu1 }
 0x186   : > { %v2089_v52 = vmax.f32 %v1967_v43, 0.0 }
 0x188   : > { %2125 = vst.msk [vmem:[%s3458_s10 + $0x38] sm:$0xff] %vm1267_vm8, %v2089_v52 }
 0x18a   : > { %v1794_v55 = vpop.f32.mrf.mxu0 }
 0x18b   : > { %v1795_v58 = vadd.f32 %v3443_v47, %v1794_v55 }
 0x18c   : > { %v1796_v10 = vpop.f32.mrf.mxu0 }
 0x18d   : > { %v1971_v63 = vpop.f32.mrf.mxu1 }
 0x18e   : > { %v1972_v21 = vadd.f32 %v1971_v63, %v1795_v58  ;;  %v1797_v60 = vpop.f32.mrf.mxu0 }
 0x18f   : > { %v1798_v8 = vadd.f32 %v3443_v47, %v1797_v60  ;;  %v1973_v7 = vpop.f32.mrf.mxu1 }
 0x190   : > { %v2090_v36 = vmax.f32 %v1972_v21, 0.0  ;;  %v1799_v6 = vpop.f32.mrf.mxu0 }
 0x191   : > { %v1974_v22 = vpop.f32.mrf.mxu1 }
 0x192   : > { %2126 = vst.msk [vmem:[%s3458_s10 + $0x40] sm:$0xff] %vm1267_vm8, %v2090_v36  ;;  %v1975_v24 = vadd.f32 %v1974_v22, %v1798_v8 }
 0x193   : > { %v1976_v34 = vpop.f32.mrf.mxu1 }
 0x194   : > { %v2091_v20 = vmax.f32 %v1975_v24, 0.0 }
 0x196   : > { %2127 = vst.msk [vmem:[%s3458_s10 + $0x48] sm:$0xff] %vm1267_vm8, %v2091_v20  ;;  %v1802_v1 = vpop.f32.mrf.mxu0 }
 0x197   : > { %v1803_v56 = vadd.f32 %v3443_v47, %v1802_v1 }
 0x198   : > { %v1804_v15 = vpop.f32.mrf.mxu0 }
 0x19a   : > { %v1805_v46 = vpop.f32.mrf.mxu0  ;;  %v1979_v19 = vpop.f32.mrf.mxu1 }
 0x19b   : > { %v1980_v29 = vadd.f32 %v1979_v19, %v1803_v56  ;;  %v1806_v17 = vadd.f32 %v3443_v47, %v1805_v46 }
 0x19c   : > { %v1807_v3 = vpop.f32.mrf.mxu0  ;;  %v1981_v31 = vpop.f32.mrf.mxu1 }
 0x19d   : > { %v2092_v26 = vmax.f32 %v1980_v29, 0.0 }
 0x19e   : > { %v1982_v27 = vpop.f32.mrf.mxu1 }
 0x19f   : > { %2128 = vst.msk [vmem:[%s3458_s10 + $0x50] sm:$0xff] %vm1267_vm8, %v2092_v26  ;;  %v1983_v0 = vadd.f32 %v1982_v27, %v1806_v17 }
 0x1a0   : > { %v1984_v37 = vpop.f32.mrf.mxu1 }
 0x1a1   : > { %v2093_v11 = vmax.f32 %v1983_v0, 0.0 }
 0x1a3   : > { %2129 = vst.msk [vmem:[%s3458_s10 + $0x58] sm:$0xff] %vm1267_vm8, %v2093_v11 }
 0x1a6   : > { %v1810_v35 = vpop.f32.mrf.mxu0 }
 0x1a7   : > { %v1811_v12 = vadd.f32 %v3443_v47, %v1810_v35 }
 0x1a8   : > { %v1812_v38 = vpop.f32.mrf.mxu0 }
 0x1a9   : > { %v1987_v57 = vpop.f32.mrf.mxu1 }
 0x1aa   : > { %v1988_v48 = vadd.f32 %v1987_v57, %v1811_v12  ;;  %v1813_v49 = vpop.f32.mrf.mxu0 }
 0x1ab   : > { %v1814_v50 = vadd.f32 %v3443_v47, %v1813_v49  ;;  %v1989_v41 = vpop.f32.mrf.mxu1 }
 0x1ac   : > { %v2094_v28 = vmax.f32 %v1988_v48, 0.0  ;;  %v1815_v40 = vpop.f32.mrf.mxu0 }
 0x1ad   : > { %v1990_v25 = vpop.f32.mrf.mxu1 }
 0x1ae   : > { %2130 = vst.msk [vmem:[%s3458_s10 + $0x60] sm:$0xff] %vm1267_vm8, %v2094_v28  ;;  %v1991_v39 = vadd.f32 %v1990_v25, %v1814_v50 }
 0x1af   : > { %v1992_v4 = vpop.f32.mrf.mxu1 }
 0x1b0   : > { %v2095_v44 = vmax.f32 %v1991_v39, 0.0 }
 0x1b2   : > { %2131 = vst.msk [vmem:[%s3458_s10 + $0x68] sm:$0xff] %vm1267_vm8, %v2095_v44  ;;  %v1818_v23 = vpop.f32.mrf.mxu0 }
 0x1b3   : > { %v1819_v53 = vadd.f32 %v3443_v47, %v1818_v23 }
 0x1b4   : > { %v1820_v5 = vpop.f32.mrf.mxu0 }
 0x1b6   : > { %v1821_v51 = vpop.f32.mrf.mxu0  ;;  %v1995_v61 = vpop.f32.mrf.mxu1 }
 0x1b7   : > { %v1996_v62 = vadd.f32 %v1995_v61, %v1819_v53  ;;  %v1822_v45 = vadd.f32 %v3443_v47, %v1821_v51 }
 0x1b8   : > { %v1823_v14 = vpop.f32.mrf.mxu0  ;;  %v1997_v32 = vpop.f32.mrf.mxu1 }
 0x1b9   : > { %v2096_v54 = vmax.f32 %v1996_v62, 0.0 }
 0x1ba   : > { %v1998_v16 = vpop.f32.mrf.mxu1 }
 0x1bb   : > { %2132 = vst.msk [vmem:[%s3458_s10 + $0x70] sm:$0xff] %vm1267_vm8, %v2096_v54  ;;  %v1999_v9 = vadd.f32 %v1998_v16, %v1822_v45 }
 0x1bc   : > { %v2000_v33 = vpop.f32.mrf.mxu1 }
 0x1bd   : > { %v2097_v13 = vmax.f32 %v1999_v9, 0.0 }
 0x1bf   : > { %2133 = vst.msk [vmem:[%s3458_s10 + $0x78] sm:$0xff] %vm1267_vm8, %v2097_v13 }
 0x1c2   : > { %v1826_v30 = vpop.f32.mrf.mxu0 }
 0x1c3   : > { %v1827_v59 = vadd.f32 %v3443_v47, %v1826_v30 }
 0x1c4   : > { %v1828_v2 = vpop.f32.mrf.mxu0 }
 0x1c5   : > { %v2003_v42 = vpop.f32.mrf.mxu1 }
 0x1c6   : > { %v2004_v43 = vadd.f32 %v2003_v42, %v1827_v59  ;;  %v1829_v18 = vpop.f32.mrf.mxu0 }
 0x1c7   : > { %v1830_v52 = vadd.f32 %v3443_v47, %v1829_v18  ;;  %v2005_v55 = vpop.f32.mrf.mxu1 }
 0x1c8   : > { %v2098_v58 = vmax.f32 %v2004_v43, 0.0  ;;  %v1831_v10 = vpop.f32.mrf.mxu0 }
 0x1c9   : > { %v2006_v63 = vpop.f32.mrf.mxu1 }
 0x1ca   : > { %2134 = vst.msk [vmem:[%s3458_s10 + $0x80] sm:$0xff] %vm1267_vm8, %v2098_v58  ;;  %v2007_v21 = vadd.f32 %v2006_v63, %v1830_v52 }
 0x1cb   : > { %v2008_v60 = vpop.f32.mrf.mxu1 }
 0x1cc   : > { %v2099_v8 = vmax.f32 %v2007_v21, 0.0 }
 0x1ce   : > { %2135 = vst.msk [vmem:[%s3458_s10 + $0x88] sm:$0xff] %vm1267_vm8, %v2099_v8  ;;  %v1834_v7 = vpop.f32.mrf.mxu0 }
 0x1cf   : > { %v1835_v6 = vadd.f32 %v3443_v47, %v1834_v7 }
 0x1d0   : > { %v1836_v36 = vpop.f32.mrf.mxu0 }
 0x1d2   : > { %v1837_v22 = vpop.f32.mrf.mxu0  ;;  %v2011_v24 = vpop.f32.mrf.mxu1 }
 0x1d3   : > { %v2012_v34 = vadd.f32 %v2011_v24, %v1835_v6  ;;  %v1838_v15 = vadd.f32 %v3443_v47, %v1837_v22 }
 0x1d4   : > { %v1839_v20 = vpop.f32.mrf.mxu0  ;;  %v2013_v1 = vpop.f32.mrf.mxu1 }
 0x1d5   : > { %v2100_v56 = vmax.f32 %v2012_v34, 0.0 }
 0x1d6   : > { %v2014_v46 = vpop.f32.mrf.mxu1 }
 0x1d7   : > { %2136 = vst.msk [vmem:[%s3458_s10 + $0x90] sm:$0xff] %vm1267_vm8, %v2100_v56  ;;  %v2015_v19 = vadd.f32 %v2014_v46, %v1838_v15 }
 0x1d8   : > { %v2016_v29 = vpop.f32.mrf.mxu1 }
 0x1d9   : > { %v2101_v3 = vmax.f32 %v2015_v19, 0.0 }
 0x1db   : > { %2137 = vst.msk [vmem:[%s3458_s10 + $0x98] sm:$0xff] %vm1267_vm8, %v2101_v3 }
 0x1de   : > { %v1842_v31 = vpop.f32.mrf.mxu0 }
 0x1df   : > { %v1843_v17 = vadd.f32 %v3443_v47, %v1842_v31 }
 0x1e0   : > { %v1844_v26 = vpop.f32.mrf.mxu0 }
 0x1e1   : > { %v2019_v27 = vpop.f32.mrf.mxu1 }
 0x1e2   : > { %v2020_v0 = vadd.f32 %v2019_v27, %v1843_v17  ;;  %v1845_v37 = vpop.f32.mrf.mxu0 }
 0x1e3   : > { %v1846_v11 = vadd.f32 %v3443_v47, %v1845_v37  ;;  %v2021_v35 = vpop.f32.mrf.mxu1 }
 0x1e4   : > { %v2102_v12 = vmax.f32 %v2020_v0, 0.0  ;;  %v1847_v38 = vpop.f32.mrf.mxu0 }
 0x1e5   : > { %v2022_v57 = vpop.f32.mrf.mxu1 }
 0x1e6   : > { %2138 = vst.msk [vmem:[%s3458_s10 + $0xa0] sm:$0xff] %vm1267_vm8, %v2102_v12  ;;  %v2023_v48 = vadd.f32 %v2022_v57, %v1846_v11 }
 0x1e7   : > { %v2024_v49 = vpop.f32.mrf.mxu1 }
 0x1e8   : > { %v2103_v50 = vmax.f32 %v2023_v48, 0.0 }
 0x1ea   : > { %2139 = vst.msk [vmem:[%s3458_s10 + $0xa8] sm:$0xff] %vm1267_vm8, %v2103_v50  ;;  %v1850_v41 = vpop.f32.mrf.mxu0 }
 0x1eb   : > { %v1851_v40 = vadd.f32 %v3443_v47, %v1850_v41 }
 0x1ec   : > { %v1852_v28 = vpop.f32.mrf.mxu0 }
 0x1ee   : > { %v1853_v25 = vpop.f32.mrf.mxu0  ;;  %v2027_v39 = vpop.f32.mrf.mxu1 }
 0x1ef   : > { %v2028_v4 = vadd.f32 %v2027_v39, %v1851_v40  ;;  %v1854_v5 = vadd.f32 %v3443_v47, %v1853_v25 }
 0x1f0   : > { %v1855_v44 = vpop.f32.mrf.mxu0  ;;  %v2029_v23 = vpop.f32.mrf.mxu1 }
 0x1f1   : > { %v2104_v53 = vmax.f32 %v2028_v4, 0.0 }
 0x1f2   : > { %v2030_v51 = vpop.f32.mrf.mxu1 }
 0x1f3   : > { %2140 = vst.msk [vmem:[%s3458_s10 + $0xb0] sm:$0xff] %vm1267_vm8, %v2104_v53  ;;  %v2031_v61 = vadd.f32 %v2030_v51, %v1854_v5 }
 0x1f4   : > { %v2032_v62 = vpop.f32.mrf.mxu1 }
 0x1f5   : > { %v2105_v14 = vmax.f32 %v2031_v61, 0.0 }
 0x1f7   : > { %2141 = vst.msk [vmem:[%s3458_s10 + $0xb8] sm:$0xff] %vm1267_vm8, %v2105_v14 }
 0x1fa   : > { %v1858_v32 = vpop.f32.mrf.mxu0 }
 0x1fb   : > { %v1859_v45 = vadd.f32 %v3443_v47, %v1858_v32 }
 0x1fc   : > { %v1860_v54 = vpop.f32.mrf.mxu0 }
 0x1fd   : > { %v2035_v16 = vpop.f32.mrf.mxu1 }
 0x1fe   : > { %v2036_v9 = vadd.f32 %v2035_v16, %v1859_v45  ;;  %v1861_v33 = vpop.f32.mrf.mxu0 }
 0x1ff   : > { %v1862_v13 = vadd.f32 %v3443_v47, %v1861_v33  ;;  %v2037_v30 = vpop.f32.mrf.mxu1 }
 0x200   : > { %v2106_v59 = vmax.f32 %v2036_v9, 0.0  ;;  %v1863_v2 = vpop.f32.mrf.mxu0 }
 0x201   : > { %v2038_v42 = vpop.f32.mrf.mxu1 }
 0x202   : > { %2142 = vst.msk [vmem:[%s3458_s10 + $0xc0] sm:$0xff] %vm1267_vm8, %v2106_v59  ;;  %v2039_v43 = vadd.f32 %v2038_v42, %v1862_v13 }
 0x203   : > { %v2040_v18 = vpop.f32.mrf.mxu1 }
 0x204   : > { %v2107_v52 = vmax.f32 %v2039_v43, 0.0 }
 0x206   : > { %2143 = vst.msk [vmem:[%s3458_s10 + $0xc8] sm:$0xff] %vm1267_vm8, %v2107_v52  ;;  %v1866_v55 = vpop.f32.mrf.mxu0 }
 0x207   : > { %v1867_v10 = vadd.f32 %v3443_v47, %v1866_v55 }
 0x208   : > { %v1868_v58 = vpop.f32.mrf.mxu0 }
 0x20a   : > { %v1869_v63 = vpop.f32.mrf.mxu0  ;;  %v2043_v21 = vpop.f32.mrf.mxu1 }
 0x20b   : > { %v2044_v60 = vadd.f32 %v2043_v21, %v1867_v10  ;;  %v1870_v36 = vadd.f32 %v3443_v47, %v1869_v63 }
 0x20c   : > { %v1871_v8 = vpop.f32.mrf.mxu0  ;;  %v2045_v7 = vpop.f32.mrf.mxu1 }
 0x20d   : > { %v2108_v6 = vmax.f32 %v2044_v60, 0.0 }
 0x20e   : > { %v2046_v22 = vpop.f32.mrf.mxu1 }
 0x20f   : > { %2144 = vst.msk [vmem:[%s3458_s10 + $0xd0] sm:$0xff] %vm1267_vm8, %v2108_v6  ;;  %v2047_v24 = vadd.f32 %v2046_v22, %v1870_v36 }
 0x210   : > { %v2048_v34 = vpop.f32.mrf.mxu1 }
 0x211   : > { %v2109_v20 = vmax.f32 %v2047_v24, 0.0 }
 0x213   : > { %2145 = vst.msk [vmem:[%s3458_s10 + $0xd8] sm:$0xff] %vm1267_vm8, %v2109_v20 }
 0x216   : > { %v1874_v1 = vpop.f32.mrf.mxu0 }
 0x217   : > { %v1875_v15 = vadd.f32 %v3443_v47, %v1874_v1 }
 0x218   : > { %v1876_v56 = vpop.f32.mrf.mxu0 }
 0x219   : > { %v2051_v46 = vpop.f32.mrf.mxu1 }
 0x21a   : > { %v2052_v19 = vadd.f32 %v2051_v46, %v1875_v15  ;;  %v1877_v29 = vpop.f32.mrf.mxu0 }
 0x21b   : > { %v1878_v3 = vadd.f32 %v3443_v47, %v1877_v29  ;;  %v2053_v31 = vpop.f32.mrf.mxu1 }
 0x21c   : > { %v2110_v17 = vmax.f32 %v2052_v19, 0.0  ;;  %v1879_v26 = vpop.f32.mrf.mxu0 }
 0x21d   : > { %v2054_v27 = vpop.f32.mrf.mxu1 }
 0x21e   : > { %2146 = vst.msk [vmem:[%s3458_s10 + $0xe0] sm:$0xff] %vm1267_vm8, %v2110_v17  ;;  %v2055_v0 = vadd.f32 %v2054_v27, %v1878_v3 }
 0x21f   : > { %v2056_v37 = vpop.f32.mrf.mxu1 }
 0x220   : > { %v2111_v11 = vmax.f32 %v2055_v0, 0.0 }
 0x222   : > { %2147 = vst.msk [vmem:[%s3458_s10 + $0xe8] sm:$0xff] %vm1267_vm8, %v2111_v11 }
 0x223   : > { %v1882_v35 = vpop.f32.mrf.mxu0 }
 0x224   : > { %v1883_v38 = vadd.f32 %v3443_v47, %v1882_v35 }
 0x225   : > { %v1884_v12 = vpop.f32.mrf.mxu0 }
 0x227   : > { %v1885_v57 = vpop.f32.mrf.mxu0  ;;  %v2059_v48 = vpop.f32.mrf.mxu1 }
 0x228   : > { %v2060_v49 = vadd.f32 %v2059_v48, %v1883_v38  ;;  %v1886_v28 = vadd.f32 %v3443_v47, %v1885_v57 }
 0x229   : > { %v1887_v50 = vpop.f32.mrf.mxu0  ;;  %v2061_v41 = vpop.f32.mrf.mxu1 }
 0x22a   : > { %v2112_v40 = vmax.f32 %v2060_v49, 0.0 }
 0x22b   : > { %v2062_v25 = vpop.f32.mrf.mxu1 }
 0x22c   : > { %2148 = vst.msk [vmem:[%s3458_s10 + $0xf0] sm:$0xff] %vm1267_vm8, %v2112_v40  ;;  %v2063_v39 = vadd.f32 %v2062_v25, %v1886_v28 }
 0x22d   : > { %v2064_v4 = vpop.f32.mrf.mxu1 }
 0x22e   : > { %v2113_v44 = vmax.f32 %v2063_v39, 0.0 }
 0x230   : > { %2149 = vst.msk [vmem:[%s3458_s10 + $0xf8] sm:$0xff] %vm1267_vm8, %v2113_v44 }
 0x233   : > { %v1890_v23 = vpop.f32.mrf.mxu0 }
 0x234   : > { %v1891_v5 = vadd.f32 %v3443_v47, %v1890_v23 }
 0x235   : > { %v1892_v53 = vpop.f32.mrf.mxu0 }
 0x236   : > { %v2067_v51 = vpop.f32.mrf.mxu1 }
 0x237   : > { %v2068_v61 = vadd.f32 %v2067_v51, %v1891_v5  ;;  %v1893_v62 = vpop.f32.mrf.mxu0 }
 0x238   : > { %v1894_v14 = vadd.f32 %v3443_v47, %v1893_v62  ;;  %v2069_v32 = vpop.f32.mrf.mxu1 }
 0x239   : > { %v2114_v45 = vmax.f32 %v2068_v61, 0.0  ;;  %v1895_v54 = vpop.f32.mrf.mxu0 }
 0x23a   : > { %v2070_v16 = vpop.f32.mrf.mxu1 }
 0x23b   : > { %2150 = vst.msk [vmem:[%s3458_s10 + $0x100] sm:$0xff] %vm1267_vm8, %v2114_v45  ;;  %v2071_v9 = vadd.f32 %v2070_v16, %v1894_v14 }
 0x23c   : > { %v2072_v33 = vpop.f32.mrf.mxu1 }
 0x23d   : > { %v2115_v13 = vmax.f32 %v2071_v9, 0.0 }
 0x23f   : > { %2151 = vst.msk [vmem:[%s3458_s10 + $0x108] sm:$0xff] %vm1267_vm8, %v2115_v13  ;;  %v1898_v30 = vpop.f32.mrf.mxu0 }
 0x240   : > { %v1899_v2 = vadd.f32 %v3443_v47, %v1898_v30 }
 0x241   : > { %v1900_v59 = vpop.f32.mrf.mxu0 }
 0x243   : > { %v1901_v42 = vpop.f32.mrf.mxu0  ;;  %v2075_v43 = vpop.f32.mrf.mxu1 }
 0x244   : > { %v2076_v18 = vadd.f32 %v2075_v43, %v1899_v2  ;;  %v1902_v58 = vadd.f32 %v3443_v47, %v1901_v42 }
 0x245   : > { %v1903_v52 = vpop.f32.mrf.mxu0  ;;  %v2077_v55 = vpop.f32.mrf.mxu1 }
 0x246   : > { %v2116_v10 = vmax.f32 %v2076_v18, 0.0 }
 0x247   : > { %v2078_v63 = vpop.f32.mrf.mxu1 }
 0x248   : > { %2152 = vst.msk [vmem:[%s3458_s10 + $0x110] sm:$0xff] %vm1267_vm8, %v2116_v10  ;;  %v2079_v21 = vadd.f32 %v2078_v63, %v1902_v58 }
 0x249   : > { %v2080_v60 = vpop.f32.mrf.mxu1 }
 0x24a   : > { %v2117_v8 = vmax.f32 %v2079_v21, 0.0 }
 0x24c   : > { %2153 = vst.msk [vmem:[%s3458_s10 + $0x118] sm:$0xff] %vm1267_vm8, %v2117_v8 }
 0x24d PF: > { %s14_s17 = sadd.s32 1, %s2448_s17   ;;  %s3610_s15 = smov %s2444_s16 }
 0x24e   : > { %p11_p5 = scmp.ge.s32.totalorder %s14_s17, 4   ;;  %s3611_s16 = smov %s3613_s18 }
 0x250   :  { %13 = sbr.rel (!%p11_p5) target bundleno = 2 (0x2), region = 69 }

</bundles_post_ra>
